<compile_context>
chip_gen: v6e
topology: v6e:2x2x1
jax: 0.10.0
libtpu: 0.0.40
codegen_flags: <defaults>
</compile_context>

<pallas_src>
import jax
import jax.numpy as jnp
from jax.experimental import pallas as pl
from jax.experimental.pallas import tpu as pltpu


def _round_up(n, m):
    return ((n + m - 1) // m) * m


_SQRT_2_OVER_PI = 0.7978845608028654


def _gelu_tanh(x):
    # nn.GELU(approximate='tanh'): 0.5*x*(1 + tanh(c*(x + 0.044715*x^3))).
    # Identity 0.5*(1 + tanh(z)) == sigmoid(2z): one EUP logistic, fewer VALU ops.
    z = jnp.float32(2.0 * _SQRT_2_OVER_PI) * (x + jnp.float32(0.044715) * (x * x * x))
    return x * jax.nn.sigmoid(z)


# ----------------------------- kernels --------------------------------------

def _kernel_identity(x_ref, w0_ref, b0_ref, w1_ref, b1_ref, o_ref):
    # size_in == size_out: shortcut is the identity -> direct residual add.
    xf = x_ref[...].astype(jnp.float32)                                   # (tm, in)
    a0 = _gelu_tanh(xf)
    net = jnp.dot(a0.astype(w0_ref.dtype), w0_ref[...],
                  preferred_element_type=jnp.float32) + b0_ref[...]       # (tm, h)
    a1 = _gelu_tanh(net)
    dx = jnp.dot(a1.astype(w1_ref.dtype), w1_ref[...],
                 preferred_element_type=jnp.float32) + b1_ref[...]        # (tm, out)
    o_ref[...] = (xf + dx).astype(o_ref.dtype)


def _kernel_shortcut(x_ref, w0_ref, b0_ref, w1_ref, b1_ref, ws_ref, o_ref):
    # size_in != size_out: learned shortcut. Two dots accumulated in f32
    # (no lane-concat VMEM copy; the MXU streams the same total K either way).
    xf = x_ref[...].astype(jnp.float32)                                   # (tm, in)
    a0 = _gelu_tanh(xf)
    net = jnp.dot(a0.astype(w0_ref.dtype), w0_ref[...],
                  preferred_element_type=jnp.float32) + b0_ref[...]       # (tm, h)
    a1 = _gelu_tanh(net)
    dx = jnp.dot(a1.astype(w1_ref.dtype), w1_ref[...],
                 preferred_element_type=jnp.float32)                      # (tm, out)
    xs = jnp.dot(xf.astype(ws_ref.dtype), ws_ref[...],
                 preferred_element_type=jnp.float32)                      # (tm, out)
    o_ref[...] = (dx + xs + b1_ref[...]).astype(o_ref.dtype)


# ----------------------- hardware-aware helpers ------------------------------

def _tpu_vmem_capacity_bytes():
    try:
        info = pltpu.get_tpu_info()
        cap = getattr(info, "vmem_capacity_bytes", None)
        if cap:
            return int(cap)
    except Exception:
        pass
    return 64 * 1024 * 1024          # most restrictive generation (v7x per-TC)


def _tpu_num_tensorcores():
    try:
        info = pltpu.get_tpu_info()
        for name in ("tensorcores_per_chip", "num_tensorcores", "num_cores",
                     "cores_per_chip"):
            v = getattr(info, name, None)
            if isinstance(v, int) and v > 0:
                return v
    except Exception:
        pass
    try:
        if "7" in jax.devices()[0].device_kind.lower():
            return 2                 # v7x: 2 TensorCores per chip
    except Exception:
        pass
    return 1                         # v5e / v6e: single TensorCore


# ----------------------------- params ----------------------------------------

def prepare_params(params, compute_dtype=jnp.bfloat16):
    """One-time weight prep (call at init, NOT per forward): cast weights to the
    MXU compute dtype (bf16 recommended on v5e/v6e/v7x), keep biases f32 (1, N)."""
    out = {
        "w0": jnp.asarray(params["w0"], compute_dtype),
        "b0": jnp.asarray(params["b0"], jnp.float32).reshape(1, -1),
        "w1": jnp.asarray(params["w1"], compute_dtype),
        "b1": jnp.asarray(params["b1"], jnp.float32).reshape(1, -1),
    }
    if params.get("ws", None) is not None:
        out["ws"] = jnp.asarray(params["ws"], compute_dtype)
    return out


def _xavier_uniform(key, fan_in, fan_out):
    # torch.nn.init.xavier_uniform_ (gain=1) on a Linear weight (fan_out, fan_in),
    # stored transposed as (fan_in, fan_out) so the kernel computes x @ W.
    limit = jnp.sqrt(6.0 / (fan_in + fan_out))
    w = jax.random.uniform(key, (fan_out, fan_in), jnp.float32, -limit, limit)
    return w.T


def init_resnet_block_fc(key, size_in, size_out=None, size_h=None):
    if size_out is None:
        size_out = size_in
    if size_h is None:
        size_h = min(size_in, size_out)
    k0, k1, ks = jax.random.split(key, 3)
    params = {
        "w0": _xavier_uniform(k0, size_in, size_h),              # (size_in, size_h)
        "b0": jnp.zeros((1, size_h), jnp.float32),
        "w1": _xavier_uniform(k1, size_h, size_out),             # (size_h, size_out)
        "b1": jnp.zeros((1, size_out), jnp.float32),
    }
    if size_in != size_out:
        params["ws"] = _xavier_uniform(ks, size_in, size_out)    # (size_in, size_out)
    return params


# ----------------------------- forward ----------------------------------------

def resnet_block_fc(x, params, *, tm=1024):
    """ResnetBlockFC forward. x: (..., size_in). params: from prepare_params()."""
    orig_shape = x.shape
    size_in = orig_shape[-1]
    x2 = x.reshape(-1, size_in)                     # collapse leading dims (free)
    M = x2.shape[0]

    size_h = params["w0"].shape[1]
    size_out = params["w1"].shape[1]
    has_shortcut = params.get("ws", None) is not None
    if not has_shortcut:
        assert size_in == size_out, "identity shortcut requires size_in == size_out"
    w_item = jnp.dtype(params["w0"].dtype).itemsize
    x_item = jnp.dtype(x2.dtype).itemsize

    # ---- generation-aware row tile ------------------------------------------
    ncores = _tpu_num_tensorcores()
    vmem_budget = (_tpu_vmem_capacity_bytes() * 3) // 4   # headroom for Mosaic scratch

    if ncores > 1 and M >= 512 * ncores:
        # multi-TC (v7x): >= 2 grid steps per core so DMA/compute overlap survives.
        tm_cap = _round_up(pl.cdiv(M, 2 * ncores), 8)
    else:
        # single-TC chips (v5e/v6e) or small M: one big tile, no per-step overhead.
        tm_cap = M
    tm_eff = min(tm, tm_cap)

    # lane-rounded dims only used for the VMEM estimate (Mosaic pads internally).
    ip, hp, op = (_round_up(d, 128) for d in (size_in, size_h, size_out))

    def vmem_need(rows, n_steps, weight_bufs):
        r = _round_up(rows, 8)
        io_bufs = 2 if n_steps > 1 else 1
        x_t = io_bufs * r * ip * x_item
        o_t = io_bufs * r * op * x_item
        w_b = weight_bufs * ((ip * hp + hp * op + (ip * op if has_shortcut else 0)) * w_item
                             + (hp + op) * 4)
        live = (r * (2 * ip + 2 * hp + op) * 4
                + r * (ip + hp + (ip if has_shortcut else 0)) * w_item)
        return x_t + o_t + w_b + live

    # shrink the row tile until the conservative (double-buffered-weights)
    # estimate fits the budget.
    while tm_eff > 64 and vmem_need(tm_eff, pl.cdiv(M, tm_eff), 2) > vmem_budget:
        tm_eff = max(64, tm_eff // 2)
    if tm_eff >= M:
        tm_eff = M                                   # full-extent block: any row count is legal
    else:
        tm_eff = max(8, _round_up(tm_eff, 8))
        if tm_eff >= M:
            tm_eff = M
    grid_m = pl.cdiv(M, tm_eff)                      # ragged last block handled by Pallas

    # ---- scheduler / VMEM hints ----------------------------------------------
    mm_elems = (size_in * size_h + size_h * size_out
                + (size_in * size_out if has_shortcut else 0))
    cost = pl.CostEstimate(
        flops=2 * M * mm_elems,
        transcendentals=M * (size_in + size_h),      # one logistic per GELU element
        bytes_accessed=(M * size_in * x_item + M * size_out * x_item
                        + mm_elems * w_item + (size_h + size_out) * 4))
    vmem_limit = int(min(vmem_budget,
                         max(32 * 1024 * 1024,
                             int(1.5 * vmem_need(tm_eff, grid_m, 2)))))

    # ---- operands / specs -----------------------------------------------------
    operands = [x2, params["w0"], params["b0"], params["w1"], params["b1"]]
    const_shapes = [(size_in, size_h), (1, size_h), (size_h, size_out), (1, size_out)]
    kernel_fn = _kernel_identity
    if has_shortcut:
        operands.append(params["ws"])
        const_shapes.append((size_in, size_out))
        kernel_fn = _kernel_shortcut

    def run(weight_mode):
        kw = {} if weight_mode is None else {"pipeline_mode": weight_mode}
        in_specs = [pl.BlockSpec((tm_eff, size_in), lambda i: (i, 0))]
        in_specs += [pl.BlockSpec(s, lambda i: (0, 0), **kw) for s in const_shapes]
        out = pl.pallas_call(
            kernel_fn,
            out_shape=jax.ShapeDtypeStruct((M, size_out), x2.dtype),
            grid=(grid_m,),
            in_specs=in_specs,
            out_specs=pl.BlockSpec((tm_eff, size_out), lambda i: (i, 0)),
            compiler_params=pltpu.CompilerParams(
                dimension_semantics=("parallel",),
                vmem_limit_bytes=vmem_limit),
            cost_estimate=cost,
        )(*operands)
        return out.reshape(*orig_shape[:-1], size_out)

    # Constant-index weights/biases only need a single resident VMEM buffer;
    # fall back to default double-buffering if this build rejects Buffered(1).
    buffered = getattr(pl, "Buffered", None)
    if buffered is not None:
        try:
            return run(buffered(1))
        except Exception:
            pass
    return run(None)


# ----------------------------- reference / test -------------------------------

def _reference(x, params):
    c = 0.7978845608028654
    gelu = lambda t: 0.5 * t * (1.0 + jnp.tanh(c * (t + 0.044715 * t ** 3)))
    net = gelu(x) @ params["w0"] + params["b0"]
    dx = gelu(net) @ params["w1"] + params["b1"]
    x_s = x @ params["ws"] if params.get("ws", None) is not None else x
    return x_s + dx


if __name__ == "__main__":
    key = jax.random.PRNGKey(0)
    k_p1, k_p2, k_x1, k_x2 = jax.random.split(key, 4)

    # Case 1: size_in != size_out -> learned shortcut (two-dot path),
    #         3-D input, row count not a multiple of 8 (exercises ragged rows).
    size_in, size_h, size_out = 32, 32, 64
    B, N = 2, 150
    master1 = init_resnet_block_fc(k_p1, size_in, size_out, size_h)
    x1 = jax.random.normal(k_x1, (B, N, size_in), jnp.float32)
    ref1 = _reference(x1, master1)

    out1_bf16 = jax.block_until_ready(
        resnet_block_fc(x1, prepare_params(master1, jnp.bfloat16)))     # default bf16 MXU
    assert out1_bf16.shape == (B, N, size_out)
    assert jnp.allclose(out1_bf16, ref1, atol=1e-1, rtol=5e-2), "bf16 shortcut-path mismatch"

    out1_f32 = jax.block_until_ready(
        resnet_block_fc(x1, prepare_params(master1, jnp.float32)))      # full-precision path
    assert jnp.allclose(out1_f32, ref1, atol=1e-3, rtol=1e-3), "f32 shortcut-path mismatch"

    # Case 2: size_in == size_out -> identity shortcut (pure residual add).
    size_in2, M2 = 64, 256
    master2 = init_resnet_block_fc(k_p2, size_in2)
    x2 = jax.random.normal(k_x2, (M2, size_in2), jnp.float32)
    ref2 = _reference(x2, master2)
    out2 = jax.block_until_ready(
        resnet_block_fc(x2, prepare_params(master2, jnp.bfloat16)))
    assert out2.shape == (M2, size_in2)
    assert jnp.allclose(out2, ref2, atol=1e-1, rtol=5e-2), "identity-path mismatch"

    print("KERNEL_OK")
</pallas_src>

<mosaic_0001>
module attributes {stable_mosaic.version = 11 : i64} {
  func.func @_kernel_shortcut(%arg0: i32, %arg1: memref<300x32xf32, #tpu.memory_space<vmem>>, %arg2: memref<32x32xbf16, #tpu.memory_space<vmem>>, %arg3: memref<1x32xf32, #tpu.memory_space<vmem>>, %arg4: memref<32x64xbf16, #tpu.memory_space<vmem>>, %arg5: memref<1x64xf32, #tpu.memory_space<vmem>>, %arg6: memref<32x64xbf16, #tpu.memory_space<vmem>>, %arg7: memref<300x64xf32, #tpu.memory_space<vmem>>) attributes {dimension_semantics = [#tpu.dimension_semantics<parallel>], iteration_bounds = array<i64: 1>, scalar_prefetch = 0 : i64, scratch_operands = 0 : i64, tpu.core_type = #tpu.core_type<tc>, window_params = [{transform_indices = @transform_0, window_bounds = array<i64: 300, 32>}, {pipeline_mode = #tpu.pipeline_mode<synchronous>, transform_indices = @transform_1, window_bounds = array<i64: 32, 32>}, {pipeline_mode = #tpu.pipeline_mode<synchronous>, transform_indices = @transform_2, window_bounds = array<i64: 1, 32>}, {pipeline_mode = #tpu.pipeline_mode<synchronous>, transform_indices = @transform_3, window_bounds = array<i64: 32, 64>}, {pipeline_mode = #tpu.pipeline_mode<synchronous>, transform_indices = @transform_4, window_bounds = array<i64: 1, 64>}, {pipeline_mode = #tpu.pipeline_mode<synchronous>, transform_indices = @transform_5, window_bounds = array<i64: 32, 64>}, {transform_indices = @transform_6, window_bounds = array<i64: 300, 64>}]} {
    %c0 = arith.constant 0 : index
    %c0_0 = arith.constant 0 : index
    %0 = vector.load %arg1[%c0, %c0_0] : memref<300x32xf32, #tpu.memory_space<vmem>>, vector<300x32xf32>
    %1 = arith.mulf %0, %0 : vector<300x32xf32>
    %2 = arith.mulf %1, %0 : vector<300x32xf32>
    %cst = arith.constant 4.471500e-02 : f32
    %3 = vector.broadcast %cst : f32 to vector<300x32xf32>
    %4 = arith.mulf %3, %2 : vector<300x32xf32>
    %5 = arith.addf %0, %4 : vector<300x32xf32>
    %cst_1 = arith.constant 1.59576917 : f32
    %6 = vector.broadcast %cst_1 : f32 to vector<300x32xf32>
    %7 = arith.mulf %6, %5 : vector<300x32xf32>
    %8 = arith.negf %7 : vector<300x32xf32>
    %9 = math.exp %8 : vector<300x32xf32>
    %cst_2 = arith.constant 1.000000e+00 : f32
    %10 = vector.broadcast %cst_2 : f32 to vector<300x32xf32>
    %11 = arith.addf %10, %9 : vector<300x32xf32>
    %12 = arith.divf %10, %11 : vector<300x32xf32>
    %13 = arith.mulf %0, %12 : vector<300x32xf32>
    %14 = arith.truncf %13 : vector<300x32xf32> to vector<300x32xbf16>
    %c0_3 = arith.constant 0 : index
    %c0_4 = arith.constant 0 : index
    %15 = vector.load %arg2[%c0_3, %c0_4] : memref<32x32xbf16, #tpu.memory_space<vmem>>, vector<32x32xbf16>
    %cst_5 = arith.constant dense<0.000000e+00> : vector<300x32xf32>
    %16 = tpu.matmul %14, %15, %cst_5 {dimension_numbers = #tpu.dot_dimension_numbers<[1], [0], [0], [1], [0, 0, 1, 1], [], []>} : vector<300x32xbf16>, vector<32x32xbf16>, vector<300x32xf32> -> vector<300x32xf32>
    %c0_6 = arith.constant 0 : index
    %c0_7 = arith.constant 0 : index
    %17 = vector.load %arg3[%c0_6, %c0_7] : memref<1x32xf32, #tpu.memory_space<vmem>>, vector<1x32xf32>
    %18 = vector.broadcast %17 : vector<1x32xf32> to vector<300x32xf32>
    %19 = arith.addf %16, %18 : vector<300x32xf32>
    %20 = arith.mulf %19, %19 : vector<300x32xf32>
    %21 = arith.mulf %20, %19 : vector<300x32xf32>
    %cst_8 = arith.constant 4.471500e-02 : f32
    %22 = vector.broadcast %cst_8 : f32 to vector<300x32xf32>
    %23 = arith.mulf %22, %21 : vector<300x32xf32>
    %24 = arith.addf %19, %23 : vector<300x32xf32>
    %cst_9 = arith.constant 1.59576917 : f32
    %25 = vector.broadcast %cst_9 : f32 to vector<300x32xf32>
    %26 = arith.mulf %25, %24 : vector<300x32xf32>
    %27 = arith.negf %26 : vector<300x32xf32>
    %28 = math.exp %27 : vector<300x32xf32>
    %cst_10 = arith.constant 1.000000e+00 : f32
    %29 = vector.broadcast %cst_10 : f32 to vector<300x32xf32>
    %30 = arith.addf %29, %28 : vector<300x32xf32>
    %31 = arith.divf %29, %30 : vector<300x32xf32>
    %32 = arith.mulf %19, %31 : vector<300x32xf32>
    %33 = arith.truncf %32 : vector<300x32xf32> to vector<300x32xbf16>
    %c0_11 = arith.constant 0 : index
    %c0_12 = arith.constant 0 : index
    %34 = vector.load %arg4[%c0_11, %c0_12] : memref<32x64xbf16, #tpu.memory_space<vmem>>, vector<32x64xbf16>
    %cst_13 = arith.constant dense<0.000000e+00> : vector<300x64xf32>
    %35 = tpu.matmul %33, %34, %cst_13 {dimension_numbers = #tpu.dot_dimension_numbers<[1], [0], [0], [1], [0, 0, 1, 1], [], []>} : vector<300x32xbf16>, vector<32x64xbf16>, vector<300x64xf32> -> vector<300x64xf32>
    %36 = arith.truncf %0 : vector<300x32xf32> to vector<300x32xbf16>
    %c0_14 = arith.constant 0 : index
    %c0_15 = arith.constant 0 : index
    %37 = vector.load %arg6[%c0_14, %c0_15] : memref<32x64xbf16, #tpu.memory_space<vmem>>, vector<32x64xbf16>
    %cst_16 = arith.constant dense<0.000000e+00> : vector<300x64xf32>
    %38 = tpu.matmul %36, %37, %cst_16 {dimension_numbers = #tpu.dot_dimension_numbers<[1], [0], [0], [1], [0, 0, 1, 1], [], []>} : vector<300x32xbf16>, vector<32x64xbf16>, vector<300x64xf32> -> vector<300x64xf32>
    %39 = arith.addf %35, %38 : vector<300x64xf32>
    %c0_17 = arith.constant 0 : index
    %c0_18 = arith.constant 0 : index
    %40 = vector.load %arg5[%c0_17, %c0_18] : memref<1x64xf32, #tpu.memory_space<vmem>>, vector<1x64xf32>
    %41 = vector.broadcast %40 : vector<1x64xf32> to vector<300x64xf32>
    %42 = arith.addf %39, %41 : vector<300x64xf32>
    %c0_19 = arith.constant 0 : index
    %c0_20 = arith.constant 0 : index
    %43 = vector.load %arg7[%c0_19, %c0_20] : memref<300x64xf32, #tpu.memory_space<vmem>>, vector<300x64xf32>
    tpu.vector_store %arg7[%c0_19, %c0_20], %42 {strides = array<i32>} : memref<300x64xf32, #tpu.memory_space<vmem>>, vector<300x64xf32>,
    return
  }
  func.func @transform_0(%arg0: i32) -> (i32, i32) {
    %c0_i32 = arith.constant 0 : i32
    %c0_i32_0 = arith.constant 0 : i32
    return %arg0, %c0_i32 : i32, i32
  }
  func.func @transform_1(%arg0: i32) -> (i32, i32) {
    %c0_i32 = arith.constant 0 : i32
    %c0_i32_0 = arith.constant 0 : i32
    %c0_i32_1 = arith.constant 0 : i32
    return %c0_i32, %c0_i32_0 : i32, i32
  }
  func.func @transform_2(%arg0: i32) -> (i32, i32) {
    %c0_i32 = arith.constant 0 : i32
    %c0_i32_0 = arith.constant 0 : i32
    %c0_i32_1 = arith.constant 0 : i32
    return %c0_i32, %c0_i32_0 : i32, i32
  }
  func.func @transform_3(%arg0: i32) -> (i32, i32) {
    %c0_i32 = arith.constant 0 : i32
    %c0_i32_0 = arith.constant 0 : i32
    %c0_i32_1 = arith.constant 0 : i32
    return %c0_i32, %c0_i32_0 : i32, i32
  }
  func.func @transform_4(%arg0: i32) -> (i32, i32) {
    %c0_i32 = arith.constant 0 : i32
    %c0_i32_0 = arith.constant 0 : i32
    %c0_i32_1 = arith.constant 0 : i32
    return %c0_i32, %c0_i32_0 : i32, i32
  }
  func.func @transform_5(%arg0: i32) -> (i32, i32) {
    %c0_i32 = arith.constant 0 : i32
    %c0_i32_0 = arith.constant 0 : i32
    %c0_i32_1 = arith.constant 0 : i32
    return %c0_i32, %c0_i32_0 : i32, i32
  }
  func.func @transform_6(%arg0: i32) -> (i32, i32) {
    %c0_i32 = arith.constant 0 : i32
    %c0_i32_0 = arith.constant 0 : i32
    return %arg0, %c0_i32 : i32, i32
  }
}

module attributes {stable_mosaic.version = 11 : i64} {
  func.func @_kernel_shortcut(%arg0: i32, %arg1: memref<300x32xf32, #tpu.memory_space<vmem>>, %arg2: memref<32x32xbf16, #tpu.memory_space<vmem>>, %arg3: memref<1x32xf32, #tpu.memory_space<vmem>>, %arg4: memref<32x64xbf16, #tpu.memory_space<vmem>>, %arg5: memref<1x64xf32, #tpu.memory_space<vmem>>, %arg6: memref<32x64xbf16, #tpu.memory_space<vmem>>, %arg7: memref<300x64xf32, #tpu.memory_space<vmem>>) attributes {dimension_semantics = [#tpu.dimension_semantics<parallel>], iteration_bounds = array<i64: 1>, scalar_prefetch = 0 : i64, scratch_operands = 0 : i64, tpu.core_type = #tpu.core_type<tc>, window_params = [{transform_indices = @transform_0, window_bounds = array<i64: 300, 32>}, {pipeline_mode = #tpu.pipeline_mode<synchronous>, transform_indices = @transform_1, window_bounds = array<i64: 32, 32>}, {pipeline_mode = #tpu.pipeline_mode<synchronous>, transform_indices = @transform_2, window_bounds = array<i64: 1, 32>}, {pipeline_mode = #tpu.pipeline_mode<synchronous>, transform_indices = @transform_3, window_bounds = array<i64: 32, 64>}, {pipeline_mode = #tpu.pipeline_mode<synchronous>, transform_indices = @transform_4, window_bounds = array<i64: 1, 64>}, {pipeline_mode = #tpu.pipeline_mode<synchronous>, transform_indices = @transform_5, window_bounds = array<i64: 32, 64>}, {transform_indices = @transform_6, window_bounds = array<i64: 300, 64>}]} {
    %c0 = arith.constant 0 : index
    %c0_0 = arith.constant 0 : index
    %0 = vector.load %arg1[%c0, %c0_0] : memref<300x32xf32, #tpu.memory_space<vmem>>, vector<300x32xf32>
    %1 = arith.mulf %0, %0 : vector<300x32xf32>
    %2 = arith.mulf %1, %0 : vector<300x32xf32>
    %cst = arith.constant 4.471500e-02 : f32
    %3 = vector.broadcast %cst : f32 to vector<300x32xf32>
    %4 = arith.mulf %3, %2 : vector<300x32xf32>
    %5 = arith.addf %0, %4 : vector<300x32xf32>
    %cst_1 = arith.constant 1.59576917 : f32
    %6 = vector.broadcast %cst_1 : f32 to vector<300x32xf32>
    %7 = arith.mulf %6, %5 : vector<300x32xf32>
    %8 = arith.negf %7 : vector<300x32xf32>
    %9 = math.exp %8 : vector<300x32xf32>
    %cst_2 = arith.constant 1.000000e+00 : f32
    %10 = vector.broadcast %cst_2 : f32 to vector<300x32xf32>
    %11 = arith.addf %10, %9 : vector<300x32xf32>
    %12 = arith.divf %10, %11 : vector<300x32xf32>
    %13 = arith.mulf %0, %12 : vector<300x32xf32>
    %14 = arith.truncf %13 : vector<300x32xf32> to vector<300x32xbf16>
    %c0_3 = arith.constant 0 : index
    %c0_4 = arith.constant 0 : index
    %15 = vector.load %arg2[%c0_3, %c0_4] : memref<32x32xbf16, #tpu.memory_space<vmem>>, vector<32x32xbf16>
    %cst_5 = arith.constant dense<0.000000e+00> : vector<300x32xf32>
    %16 = tpu.matmul %14, %15, %cst_5 {dimension_numbers = #tpu.dot_dimension_numbers<[1], [0], [0], [1], [0, 0, 1, 1], [], []>} : vector<300x32xbf16>, vector<32x32xbf16>, vector<300x32xf32> -> vector<300x32xf32>
    %c0_6 = arith.constant 0 : index
    %c0_7 = arith.constant 0 : index
    %17 = vector.load %arg3[%c0_6, %c0_7] : memref<1x32xf32, #tpu.memory_space<vmem>>, vector<1x32xf32>
    %18 = vector.broadcast %17 : vector<1x32xf32> to vector<300x32xf32>
    %19 = arith.addf %16, %18 : vector<300x32xf32>
    %20 = arith.mulf %19, %19 : vector<300x32xf32>
    %21 = arith.mulf %20, %19 : vector<300x32xf32>
    %cst_8 = arith.constant 4.471500e-02 : f32
    %22 = vector.broadcast %cst_8 : f32 to vector<300x32xf32>
    %23 = arith.mulf %22, %21 : vector<300x32xf32>
    %24 = arith.addf %19, %23 : vector<300x32xf32>
    %cst_9 = arith.constant 1.59576917 : f32
    %25 = vector.broadcast %cst_9 : f32 to vector<300x32xf32>
    %26 = arith.mulf %25, %24 : vector<300x32xf32>
    %27 = arith.negf %26 : vector<300x32xf32>
    %28 = math.exp %27 : vector<300x32xf32>
    %cst_10 = arith.constant 1.000000e+00 : f32
    %29 = vector.broadcast %cst_10 : f32 to vector<300x32xf32>
    %30 = arith.addf %29, %28 : vector<300x32xf32>
    %31 = arith.divf %29, %30 : vector<300x32xf32>
    %32 = arith.mulf %19, %31 : vector<300x32xf32>
    %33 = arith.truncf %32 : vector<300x32xf32> to vector<300x32xbf16>
    %c0_11 = arith.constant 0 : index
    %c0_12 = arith.constant 0 : index
    %34 = vector.load %arg4[%c0_11, %c0_12] : memref<32x64xbf16, #tpu.memory_space<vmem>>, vector<32x64xbf16>
    %cst_13 = arith.constant dense<0.000000e+00> : vector<300x64xf32>
    %35 = tpu.matmul %33, %34, %cst_13 {dimension_numbers = #tpu.dot_dimension_numbers<[1], [0], [0], [1], [0, 0, 1, 1], [], []>} : vector<300x32xbf16>, vector<32x64xbf16>, vector<300x64xf32> -> vector<300x64xf32>
    %36 = arith.truncf %0 : vector<300x32xf32> to vector<300x32xbf16>
    %c0_14 = arith.constant 0 : index
    %c0_15 = arith.constant 0 : index
    %37 = vector.load %arg6[%c0_14, %c0_15] : memref<32x64xbf16, #tpu.memory_space<vmem>>, vector<32x64xbf16>
    %cst_16 = arith.constant dense<0.000000e+00> : vector<300x64xf32>
    %38 = tpu.matmul %36, %37, %cst_16 {dimension_numbers = #tpu.dot_dimension_numbers<[1], [0], [0], [1], [0, 0, 1, 1], [], []>} : vector<300x32xbf16>, vector<32x64xbf16>, vector<300x64xf32> -> vector<300x64xf32>
    %39 = arith.addf %35, %38 : vector<300x64xf32>
    %c0_17 = arith.constant 0 : index
    %c0_18 = arith.constant 0 : index
    %40 = vector.load %arg5[%c0_17, %c0_18] : memref<1x64xf32, #tpu.memory_space<vmem>>, vector<1x64xf32>
    %41 = vector.broadcast %40 : vector<1x64xf32> to vector<300x64xf32>
    %42 = arith.addf %39, %41 : vector<300x64xf32>
    %c0_19 = arith.constant 0 : index
    %c0_20 = arith.constant 0 : index
    %43 = vector.load %arg7[%c0_19, %c0_20] : memref<300x64xf32, #tpu.memory_space<vmem>>, vector<300x64xf32>
    tpu.vector_store %arg7[%c0_19, %c0_20], %42 {strides = array<i32>} : memref<300x64xf32, #tpu.memory_space<vmem>>, vector<300x64xf32>,
    return
  }
  func.func @transform_0(%arg0: i32) -> (i32, i32) {
    %c0_i32 = arith.constant 0 : i32
    %c0_i32_0 = arith.constant 0 : i32
    return %arg0, %c0_i32 : i32, i32
  }
  func.func @transform_1(%arg0: i32) -> (i32, i32) {
    %c0_i32 = arith.constant 0 : i32
    %c0_i32_0 = arith.constant 0 : i32
    %c0_i32_1 = arith.constant 0 : i32
    return %c0_i32, %c0_i32_0 : i32, i32
  }
  func.func @transform_2(%arg0: i32) -> (i32, i32) {
    %c0_i32 = arith.constant 0 : i32
    %c0_i32_0 = arith.constant 0 : i32
    %c0_i32_1 = arith.constant 0 : i32
    return %c0_i32, %c0_i32_0 : i32, i32
  }
  func.func @transform_3(%arg0: i32) -> (i32, i32) {
    %c0_i32 = arith.constant 0 : i32
    %c0_i32_0 = arith.constant 0 : i32
    %c0_i32_1 = arith.constant 0 : i32
    return %c0_i32, %c0_i32_0 : i32, i32
  }
  func.func @transform_4(%arg0: i32) -> (i32, i32) {
    %c0_i32 = arith.constant 0 : i32
    %c0_i32_0 = arith.constant 0 : i32
    %c0_i32_1 = arith.constant 0 : i32
    return %c0_i32, %c0_i32_0 : i32, i32
  }
  func.func @transform_5(%arg0: i32) -> (i32, i32) {
    %c0_i32 = arith.constant 0 : i32
    %c0_i32_0 = arith.constant 0 : i32
    %c0_i32_1 = arith.constant 0 : i32
    return %c0_i32, %c0_i32_0 : i32, i32
  }
  func.func @transform_6(%arg0: i32) -> (i32, i32) {
    %c0_i32 = arith.constant 0 : i32
    %c0_i32_0 = arith.constant 0 : i32
    return %arg0, %c0_i32 : i32, i32
  }
}

</mosaic_0001>

<bundles_post_ra>
// kernel: tpu_custom_call.1
= control target key start
LH: loop header
LB: loop body
LE: loop exit
PB: predicated region body
PF: predicated region fallthrough
CT: control target
= control target key end

     0   :  { %v2693_v0 = vmov 0.0   ;;  %vm2694_vm0 = vmmov 0   ;;  %vm560_vm1 = vcmask 261120   ;;  %vm1858_vm2 = vcmask 523264   ;;  %s4162_s1 = inlined_call_operand.vmem [shape: bf16[32,32], index: 1, kind: input, shape index: {}]   ;;  %s4163_s0 = inlined_call_operand.vmem [shape: f32[300,32], index: 0, kind: input, shape index: {}]   ;;  %s4164_s3 = inlined_call_operand.vmem [shape: bf16[32,64], index: 3, kind: input, shape index: {}]   ;;  %s4165_s5 = inlined_call_operand.vmem [shape: bf16[32,64], index: 5, kind: input, shape index: {}]   ;;  %s4166_s2 = inlined_call_operand.vmem [shape: f32[1,32], index: 2, kind: input, shape index: {}]   ;;  %s4167_s4 = inlined_call_operand.vmem [shape: f32[1,64], index: 4, kind: input, shape index: {}]   ;;  %s4168_s6 = inlined_call_operand.vmem [shape: f32[300,64], index: 6, kind: output, shape index: {}]  }
   0x1   :  { %2106 = vmatprep.subr.bf16.mxu0 %v2693_v0  ;;  %v2352_v1 = vld [vmem:[%s4162_s1 + $0x8] sm:$0xff]   ;;  %2110 = vmatprep.mubr.msk.bf16.mxu0 %vm2694_vm0, %v2693_v0  ;;  %v2353_v2 = vld [vmem:[%s4162_s1] sm:$0xff]   ;;  %v2755_v5 = vld [vmem:[%s4163_s0 + $0x10] sm:$0xff]  ;;  %vm1896_vm3 = vcmask 519168  }
   0x2   :  { %2346 = vmatprep.subr.bf16.mxu1 %v2693_v0  ;;  %2150 = vmatprep.mubr.msk.bf16.mxu1 %vm2694_vm0, %v2693_v0  ;;  %v2745_v3 = vld [vmem:[%s4163_s0] sm:$0xff]  ;;  %v2750_v4 = vld [vmem:[%s4163_s0 + $0x8] sm:$0xff]  ;;  %v2765_v8 = vld [vmem:[%s4163_s0 + $0x18] sm:$0xff]  ;;  %v64_v9 = vmul.f32 %v2755_v5, %v2755_v5 }
   0x3   :  { %2107 = vmatpush3.bf16.msra.mxu0 %v2352_v1  ;;  %2348 = vmatpush3.bf16.msra.mxu1 %v2352_v1  ;;  %v62_v6 = vmul.f32 %v2745_v3, %v2745_v3  ;;  %v63_v7 = vmul.f32 %v2750_v4, %v2750_v4  ;;  %v2772_v10 = vld [vmem:[%s4163_s0 + $0x20] sm:$0xff]  ;;  %v2777_v11 = vld [vmem:[%s4163_s0 + $0x28] sm:$0xff]  ;;  %v65_v12 = vmul.f32 %v2765_v8, %v2765_v8  ;;  %v2789_v15 = vld [vmem:[%s4163_s0 + $0x30] sm:$0xff] }
   0x4   :  { %2108 = vmatprep.subr.bf16.mxu0 %v2693_v0  ;;  %2347 = vmatprep.subr.bf16.mxu1 %v2693_v0  ;;  %v66_v13 = vmul.f32 %v2772_v10, %v2772_v10  ;;  %v67_v14 = vmul.f32 %v2777_v11, %v2777_v11  ;;  %v2794_v16 = vld [vmem:[%s4163_s0 + $0x38] sm:$0xff]  ;;  %v102_v19 = vmul.f32 %v64_v9, %v2755_v5  ;;  %v2819_v41 = vld [vmem:[%s4163_s0 + $0x40] sm:$0xff]  ;;  %v2824_v42 = vld [vmem:[%s4163_s0 + $0x48] sm:$0xff] }
   0x5   :  { %v100_v17 = vmul.f32 %v62_v6, %v2745_v3  ;;  %v101_v18 = vmul.f32 %v63_v7, %v2750_v4  ;;  %v68_v20 = vmul.f32 %v2789_v15, %v2789_v15  ;;  %v103_v21 = vmul.f32 %v65_v12, %v2765_v8  ;;  %v2830_v47 = vld [vmem:[%s4163_s0 + $0xa0] sm:$0xff]  ;;  %v2835_v48 = vld [vmem:[%s4163_s0 + $0xa8] sm:$0xff]  ;;  %v2851_v7 = vld [vmem:[%s4163_s0 + $0x50] sm:$0xff] }
   0x6   :  { %v104_v22 = vmul.f32 %v66_v13, %v2772_v10  ;;  %v105_v23 = vmul.f32 %v67_v14, %v2777_v11  ;;  %v69_v24 = vmul.f32 %v2794_v16, %v2794_v16  ;;  %v140_v27 = vmul.f32 0.044715, %v102_v19  ;;  %v2856_v9 = vld [vmem:[%s4163_s0 + $0x58] sm:$0xff] }
   0x7   :  { %2109 = vmatpush3.bf16.msra.mxu0 %v2353_v2  ;;  %v138_v25 = vmul.f32 0.044715, %v100_v17  ;;  %v139_v26 = vmul.f32 0.044715, %v101_v18  ;;  %v106_v28 = vmul.f32 %v68_v20, %v2789_v15  ;;  %2349 = vmatpush3.bf16.msra.mxu1 %v2353_v2  ;;  %v141_v29 = vmul.f32 0.044715, %v103_v21 }
   0x8   :  { %2266 = vmatprep.subr.bf16.mxu0 %v2693_v0  ;;  %v142_v30 = vmul.f32 0.044715, %v104_v22  ;;  %v143_v31 = vmul.f32 0.044715, %v105_v23  ;;  %v107_v32 = vmul.f32 %v69_v24, %v2794_v16  ;;  %2186 = vmatprep.subr.bf16.mxu1 %v2693_v0  ;;  %v178_v35 = vadd.f32 %v140_v27, %v2755_v5 }
   0x9   :  { %v176_v33 = vadd.f32 %v138_v25, %v2745_v3  ;;  %v177_v34 = vadd.f32 %v139_v26, %v2750_v4  ;;  %v144_v36 = vmul.f32 0.044715, %v106_v28  ;;  %v179_v37 = vadd.f32 %v141_v29, %v2765_v8  ;;  %v2869_v26 = vld [vmem:[%s4163_s0 + $0xb0] sm:$0xff] }
   0xa   :  { %v180_v38 = vadd.f32 %v142_v30, %v2772_v10  ;;  %v181_v39 = vadd.f32 %v143_v31, %v2777_v11  ;;  %v145_v40 = vmul.f32 0.044715, %v107_v32  ;;  %v1904_v45 = vmul.f32 -1.5957692, %v178_v35  ;;  %v2876_v30 = vld [vmem:[%s4163_s0 + $0xb8] sm:$0xff] }
   0xb   :  { %v1902_v43 = vmul.f32 -1.5957692, %v176_v33  ;;  %v1903_v44 = vmul.f32 -1.5957692, %v177_v34  ;;  %v182_v46 = vadd.f32 %v144_v36, %v2789_v15  ;;  %v1905_v49 = vmul.f32 -1.5957692, %v179_v37 }
   0xc   :  { %v1906_v50 = vmul.f32 -1.5957692, %v180_v38  ;;  %v1907_v51 = vmul.f32 -1.5957692, %v181_v39  ;;  %v183_v52 = vadd.f32 %v145_v40, %v2794_v16  ;;  %v294_v55 = vmul.f32 1.442695, %v1904_v45 }
   0xd   :  { %v290_v53 = vmul.f32 1.442695, %v1902_v43  ;;  %v292_v54 = vmul.f32 1.442695, %v1903_v44  ;;  %v70_v56 = vmul.f32 %v2819_v41, %v2819_v41  ;;  %v296_v57 = vmul.f32 1.442695, %v1905_v49 }
   0xe   :  { %v298_v58 = vmul.f32 1.442695, %v1906_v50  ;;  %v300_v59 = vmul.f32 1.442695, %v1907_v51  ;;  %v71_v60 = vmul.f32 %v2824_v42, %v2824_v42  ;;  %v1908_v61 = vmul.f32 -1.5957692, %v182_v46 }
   0xf   :  { %2358 = vpow2.f32 %v290_v53  ;;  %v1909_v62 = vmul.f32 -1.5957692, %v183_v52  ;;  %v108_v63 = vmul.f32 %v70_v56, %v2819_v41  ;;  %v82_v2 = vmul.f32 %v2830_v47, %v2830_v47  ;;  %v2883_v34 = vld [vmem:[%s4163_s0 + $0x60] sm:$0xff]  ;;  %v2890_v39 = vld [vmem:[%s4163_s0 + $0x68] sm:$0xff] }
  0x10   :  { %2360 = vpow2.f32 %v292_v54  ;;  %v109_v1 = vmul.f32 %v71_v60, %v2824_v42  ;;  %v83_v6 = vmul.f32 %v2835_v48, %v2835_v48  ;;  %v302_v12 = vmul.f32 1.442695, %v1908_v61  ;;  %v2900_v51 = vld [vmem:[%s4163_s0 + $0xc0] sm:$0xff] }
  0x11   :  { %2362 = vpow2.f32 %v294_v55  ;;  %v304_v13 = vmul.f32 1.442695, %v1909_v62  ;;  %v146_v14 = vmul.f32 0.044715, %v108_v63  ;;  %v120_v18 = vmul.f32 %v82_v2, %v2830_v47  ;;  %v2910_v62 = vld [vmem:[%s4163_s0 + $0xc8] sm:$0xff] }
  0x12   :  { %2364 = vpow2.f32 %v296_v57  ;;  %v147_v17 = vmul.f32 0.044715, %v109_v1  ;;  %v121_v19 = vmul.f32 %v83_v6, %v2835_v48  ;;  %v72_v21 = vmul.f32 %v2851_v7, %v2851_v7 }
  0x13   :  { %2366 = vpow2.f32 %v298_v58  ;;  %v184_v20 = vadd.f32 %v146_v14, %v2819_v41  ;;  %v73_v22 = vmul.f32 %v2856_v9, %v2856_v9  ;;  %v158_v24 = vmul.f32 0.044715, %v120_v18 }
  0x14   :  { %2368 = vpow2.f32 %v300_v59  ;;  %v185_v23 = vadd.f32 %v147_v17, %v2824_v42  ;;  %v159_v25 = vmul.f32 0.044715, %v121_v19  ;;  %v110_v28 = vmul.f32 %v72_v21, %v2851_v7 }
  0x15   :  { %2370 = vpow2.f32 %v302_v12  ;;  %v1910_v27 = vmul.f32 -1.5957692, %v184_v20  ;;  %v111_v29 = vmul.f32 %v73_v22, %v2856_v9  ;;  %v196_v32 = vadd.f32 %v158_v24, %v2830_v47 }
  0x16   :  { %2372 = vpow2.f32 %v304_v13  ;;  %v1911_v31 = vmul.f32 -1.5957692, %v185_v23  ;;  %v197_v33 = vadd.f32 %v159_v25, %v2835_v48  ;;  %v148_v36 = vmul.f32 0.044715, %v110_v28 }
  0x17   :  { %v306_v35 = vmul.f32 1.442695, %v1910_v27  ;;  %v149_v37 = vmul.f32 0.044715, %v111_v29  ;;  %v84_v38 = vmul.f32 %v2869_v26, %v2869_v26  ;;  %v1922_v43 = vmul.f32 -1.5957692, %v196_v32 }
  0x18   :  { %v308_v40 = vmul.f32 1.442695, %v1911_v31  ;;  %v1923_v44 = vmul.f32 -1.5957692, %v197_v33  ;;  %v85_v45 = vmul.f32 %v2876_v30, %v2876_v30  ;;  %v186_v46 = vadd.f32 %v148_v36, %v2851_v7 }
  0x19   :  { %2374 = vpow2.f32 %v306_v35  ;;  %v187_v49 = vadd.f32 %v149_v37, %v2856_v9  ;;  %v122_v50 = vmul.f32 %v84_v38, %v2869_v26  ;;  %v330_v52 = vmul.f32 1.442695, %v1922_v43 }
  0x1a   :  { %2376 = vpow2.f32 %v308_v40  ;;  %v332_v53 = vmul.f32 1.442695, %v1923_v44  ;;  %v123_v54 = vmul.f32 %v85_v45, %v2876_v30  ;;  %v1912_v55 = vmul.f32 -1.5957692, %v186_v46  ;;  %v2923_v40 = vld [vmem:[%s4163_s0 + $0x70] sm:$0xff] }
  0x1b   :  { %v1913_v56 = vmul.f32 -1.5957692, %v187_v49  ;;  %v160_v57 = vmul.f32 0.044715, %v122_v50  ;;  %v74_v58 = vmul.f32 %v2883_v34, %v2883_v34  ;;  %2378 = vpow2.f32 %v330_v52  ;;  %v2930_v49 = vld [vmem:[%s4163_s0 + $0x78] sm:$0xff] }
  0x1c   :  { %v2359_v59 = vpop.eup %2358  ;;  %v161_v60 = vmul.f32 0.044715, %v123_v54  ;;  %v75_v61 = vmul.f32 %v2890_v39, %v2890_v39  ;;  %v86_v63 = vmul.f32 %v2900_v51, %v2900_v51  ;;  %2380 = vpow2.f32 %v332_v53 }
  0x1d   :  { %v2361_v1 = vpop.eup %2360  ;;  %v366_v2 = vadd.f32 1.0, %v2359_v59  ;;  %v310_v6 = vmul.f32 1.442695, %v1912_v55  ;;  %v312_v12 = vmul.f32 1.442695, %v1913_v56  ;;  %v198_v17 = vadd.f32 %v160_v57, %v2869_v26 }
  0x1e   :  { %v2363_v13 = vpop.eup %2362  ;;  %v367_v14 = vadd.f32 1.0, %v2361_v1  ;;  %v199_v18 = vadd.f32 %v161_v60, %v2876_v30  ;;  %v112_v19 = vmul.f32 %v74_v58, %v2883_v34  ;;  %v113_v22 = vmul.f32 %v75_v61, %v2890_v39  ;;  %v2941_v61 = vld [vmem:[%s4163_s0 + $0xd0] sm:$0xff] }
  0x1f   :  { %v2365_v20 = vpop.eup %2364  ;;  %2382 = vrcp.f32 %v366_v2  ;;  %v368_v21 = vadd.f32 1.0, %v2363_v13  ;;  %v87_v23 = vmul.f32 %v2910_v62, %v2910_v62  ;;  %v1924_v27 = vmul.f32 -1.5957692, %v198_v17 }
  0x20   :  { %v2367_v24 = vpop.eup %2366  ;;  %2384 = vrcp.f32 %v367_v14  ;;  %v369_v25 = vadd.f32 1.0, %v2365_v20  ;;  %v1925_v28 = vmul.f32 -1.5957692, %v199_v18  ;;  %v150_v32 = vmul.f32 0.044715, %v112_v19 }
  0x21   :  { %v2369_v29 = vpop.eup %2368  ;;  %2386 = vrcp.f32 %v368_v21  ;;  %v370_v31 = vadd.f32 1.0, %v2367_v24  ;;  %v151_v33 = vmul.f32 0.044715, %v113_v22  ;;  %v334_v37 = vmul.f32 1.442695, %v1924_v27  ;;  %v2950_v22 = vld [vmem:[%s4163_s0 + $0xd8] sm:$0xff] }
  0x22   :  { %v2371_v35 = vpop.eup %2370  ;;  %2388 = vrcp.f32 %v369_v25  ;;  %v371_v36 = vadd.f32 1.0, %v2369_v29  ;;  %v336_v38 = vmul.f32 1.442695, %v1925_v28  ;;  %v188_v45 = vadd.f32 %v150_v32, %v2883_v34 }
  0x23   :  { %v2373_v43 = vpop.eup %2372  ;;  %2390 = vrcp.f32 %v370_v31  ;;  %v372_v44 = vadd.f32 1.0, %v2371_v35  ;;  %v189_v46 = vadd.f32 %v151_v33, %v2890_v39  ;;  %v124_v52 = vmul.f32 %v86_v63, %v2900_v51 }
  0x24   :  { %2392 = vrcp.f32 %v371_v36  ;;  %v373_v50 = vadd.f32 1.0, %v2373_v43  ;;  %v125_v53 = vmul.f32 %v87_v23, %v2910_v62  ;;  %v1914_v54 = vmul.f32 -1.5957692, %v188_v45 }
  0x25   :  { %2394 = vrcp.f32 %v372_v44  ;;  %v1915_v55 = vmul.f32 -1.5957692, %v189_v46  ;;  %v76_v56 = vmul.f32 %v2923_v40, %v2923_v40  ;;  %v162_v58 = vmul.f32 0.044715, %v124_v52 }
  0x26   :  { %v2375_v57 = vpop.eup %2374  ;;  %2396 = vrcp.f32 %v373_v50  ;;  %v163_v59 = vmul.f32 0.044715, %v125_v53  ;;  %v77_v60 = vmul.f32 %v2930_v49, %v2930_v49  ;;  %v314_v2 = vmul.f32 1.442695, %v1914_v54 }
  0x27   :  { %v2377_v63 = vpop.eup %2376  ;;  %v374_v1 = vadd.f32 1.0, %v2375_v57  ;;  %2398 = vpow2.f32 %v310_v6  ;;  %v316_v13 = vmul.f32 1.442695, %v1915_v55  ;;  %v200_v17 = vadd.f32 %v162_v58, %v2900_v51 }
  0x28   :  { %v375_v14 = vadd.f32 1.0, %v2377_v63  ;;  %2400 = vpow2.f32 %v312_v12  ;;  %v201_v18 = vadd.f32 %v163_v59, %v2910_v62  ;;  %v2379_v19 = vpop.eup %2378  ;;  %v114_v20 = vmul.f32 %v76_v56, %v2923_v40 }
  0x29   :  { %2402 = vrcp.f32 %v374_v1  ;;  %v115_v21 = vmul.f32 %v77_v60, %v2930_v49  ;;  %v88_v6 = vmul.f32 %v2941_v61, %v2941_v61  ;;  %v2381_v23 = vpop.eup %2380  ;;  %v386_v12 = vadd.f32 1.0, %v2379_v19 }
  0x2a   :  { %2404 = vrcp.f32 %v375_v14  ;;  %v1926_v24 = vmul.f32 -1.5957692, %v200_v17  ;;  %v1927_v25 = vmul.f32 -1.5957692, %v201_v18  ;;  %v387_v27 = vadd.f32 1.0, %v2381_v23  ;;  %v2993_v23 = vld [vmem:[%s4163_s0 + $0xe0] sm:$0xff] }
  0x2b   :  { %2406 = vpow2.f32 %v334_v37  ;;  %v152_v28 = vmul.f32 0.044715, %v114_v20  ;;  %v153_v29 = vmul.f32 0.044715, %v115_v21  ;;  %v89_v35 = vmul.f32 %v2950_v22, %v2950_v22 }
  0x2c   :  { %v2383_v31 = vpop.eup %2382  ;;  %2408 = vrcp.f32 %v386_v12  ;;  %v338_v32 = vmul.f32 1.442695, %v1926_v24  ;;  %v340_v33 = vmul.f32 1.442695, %v1927_v25  ;;  %v126_v50 = vmul.f32 %v88_v6, %v2941_v61 }
  0x2d   :  { %v2385_v36 = vpop.eup %2384  ;;  %v480_v43 = vmul.f32 %v2383_v31, %v2745_v3  ;;  %2410 = vrcp.f32 %v387_v27  ;;  %v190_v44 = vadd.f32 %v152_v28, %v2923_v40  ;;  %v191_v45 = vadd.f32 %v153_v29, %v2930_v49  ;;  %v2354_v3 = vld [vmem:[%s4164_s3 + $0x8] sm:$0xff]  }
  0x2e   :  { %v2387_v46 = vpop.eup %2386  ;;  %v481_v37 = vmul.f32 %v2385_v36, %v2750_v4  ;;  %2412 = vpow2.f32 %v336_v38  ;;  %v127_v52 = vmul.f32 %v89_v35, %v2950_v22  ;;  %v164_v4 = vmul.f32 0.044715, %v126_v50  ;;  %v2970_v38 = vld [vmem:[%s4163_s0 + $0x80] sm:$0xff] }
  0x2f   :  { %v2389_v53 = vpop.eup %2388  ;;  %v482_v54 = vmul.f32 %v2387_v46, %v2755_v5  ;;  %2414 = vpow2.f32 %v314_v2  ;;  %v1916_v55 = vmul.f32 -1.5957692, %v190_v44  ;;  %v1917_v56 = vmul.f32 -1.5957692, %v191_v45  ;;  %v2976_v2 = vld [vmem:[%s4163_s0 + $0x88] sm:$0xff] }
  0x30   :  { %v2391_v57 = vpop.eup %2390  ;;  %v518_v58 = vpack.c.bf16 %v481_v37, %v480_v43  ;;  %v483_v59 = vmul.f32 %v2389_v53, %v2765_v8  ;;  %2416 = vpow2.f32 %v316_v13  ;;  %v165_v1 = vmul.f32 0.044715, %v127_v52 }
  0x31   :  { %v2393_v60 = vpop.eup %2392  ;;  %2418 = vpow2.f32 %v338_v32  ;;  %v318_v63 = vmul.f32 1.442695, %v1916_v55  ;;  %v320_v13 = vmul.f32 1.442695, %v1917_v56  ;;  %v202_v14 = vadd.f32 %v164_v4, %v2941_v61  ;;  %v3008_v32 = vld [vmem:[%s4163_s0 + $0xe8] sm:$0xff] }
  0x32   :  { %v2395_v5 = vpop.eup %2394  ;;  %2111 = vmatmul.mubr.msk.bf16.vlgmr.msra.gmra.mxu0 %vm560_vm1, %v518_v58  ;;  %2420 = vpow2.f32 %v340_v33  ;;  %v78_v17 = vmul.f32 %v2970_v38, %v2970_v38  ;;  %v519_v19 = vpack.c.bf16 %v483_v59, %v482_v54  ;;  %v2984_v20 = vmul.f32 %v2391_v57, %v2772_v10 }
  0x33   :  { %v2397_v8 = vpop.eup %2396  ;;  %2114 = vmatprep.mubr.msk.bf16.mxu0 %vm2694_vm0, %v2693_v0  ;;  %2267 = vmatpush3.bf16.msra.mxu0 %v2354_v3  ;;  %v2987_v21 = vmul.f32 %v2393_v60, %v2777_v11  ;;  %v203_v6 = vadd.f32 %v165_v1, %v2950_v22  ;;  %v1928_v25 = vmul.f32 -1.5957692, %v202_v14  ;;  %v79_v27 = vmul.f32 %v2976_v2, %v2976_v2  ;;  %v3023_v3 = vld [vmem:[%s4163_s0 + $0x90] sm:$0xff]  ;;  %v2355_v1 = vld [vmem:[%s4165_s5 + $0x8] sm:$0xff]  }
  0x34   :  { %v2399_v18 = vpop.eup %2398  ;;  %2268 = vmatprep.subr.bf16.mxu0 %v2693_v0  ;;  %v116_v10 = vmul.f32 %v78_v17, %v2970_v38  ;;  %v3000_v11 = vmul.f32 %v2395_v5, %v2789_v15  ;;  %v3003_v29 = vmul.f32 %v2397_v8, %v2794_v16  ;;  %2422 = vpow2.f32 %v318_v63  ;;  %v3039_v17 = vld [vmem:[%s4163_s0 + $0x98] sm:$0xff] }
  0x35   :  { %v2401_v12 = vpop.eup %2400  ;;  %v376_v24 = vadd.f32 1.0, %v2399_v18  ;;  %v1929_v31 = vmul.f32 -1.5957692, %v203_v6  ;;  %2424 = vpow2.f32 %v320_v13  ;;  %v342_v35 = vmul.f32 1.442695, %v1928_v25 }
  0x36   :  { %v2403_v28 = vpop.eup %2402  ;;  %v117_v36 = vmul.f32 %v79_v27, %v2976_v2  ;;  %v90_v43 = vmul.f32 %v2993_v23, %v2993_v23  ;;  %v377_v44 = vadd.f32 1.0, %v2401_v12  ;;  %v154_v45 = vmul.f32 0.044715, %v116_v10 }
  0x37   :  { %v2405_v33 = vpop.eup %2404  ;;  %2426 = vrcp.f32 %v376_v24  ;;  %v344_v16 = vmul.f32 1.442695, %v1929_v31  ;;  %v91_v52 = vmul.f32 %v3008_v32, %v3008_v32  ;;  %v520_v54 = vpack.c.bf16 %v2987_v21, %v2984_v20 }
  0x38   :  { %v2407_v15 = vpop.eup %2406  ;;  %2428 = vpow2.f32 %v342_v35  ;;  %v155_v50 = vmul.f32 0.044715, %v117_v36  ;;  %v192_v56 = vadd.f32 %v154_v45, %v2970_v38  ;;  %v128_v4 = vmul.f32 %v90_v43, %v2993_v23 }
  0x39   :  { %v2409_v46 = vpop.eup %2408  ;;  %v388_v37 = vadd.f32 1.0, %v2407_v15  ;;  %2430 = vpow2.f32 %v344_v16  ;;  %v521_v60 = vpack.c.bf16 %v3003_v29, %v3000_v11  ;;  %v129_v63 = vmul.f32 %v91_v52, %v3008_v32  ;;  %v3065_v15 = vld [vmem:[%s4163_s0 + $0xf8] sm:$0xff] }
  0x3a   :  { %v2411_v53 = vpop.eup %2410  ;;  %2115 = vmatmul.mubr.msk.bf16.gmra.mxu0 %vm560_vm1, %v519_v19  ;;  %v500_v55 = vmul.f32 %v2409_v46, %v2830_v47  ;;  %v193_v59 = vadd.f32 %v155_v50, %v2976_v2  ;;  %v166_v14 = vmul.f32 0.044715, %v128_v4  ;;  %v80_v18 = vmul.f32 %v3023_v3, %v3023_v3 }
  0x3b   :  { %v2413_v57 = vpop.eup %2412  ;;  %2118 = vmatprep.mubr.msk.bf16.mxu0 %vm2694_vm0, %v2693_v0  ;;  %v501_v58 = vmul.f32 %v2411_v53, %v2835_v48  ;;  %2432 = vrcp.f32 %v388_v37  ;;  %v1918_v48 = vmul.f32 -1.5957692, %v192_v56  ;;  %v3044_v20 = vmul.f32 %v2403_v28, %v2819_v41 }
  0x3c   :  { %v2415_v47 = vpop.eup %2414  ;;  %2434 = vrcp.f32 %v377_v44  ;;  %v389_v5 = vadd.f32 1.0, %v2413_v57  ;;  %v1919_v21 = vmul.f32 -1.5957692, %v193_v59  ;;  %v167_v6 = vmul.f32 0.044715, %v129_v63 }
  0x3d   :  { %v2417_v8 = vpop.eup %2416  ;;  %v528_v13 = vpack.c.bf16 %v501_v58, %v500_v55  ;;  %v3047_v24 = vmul.f32 %v2405_v33, %v2824_v42  ;;  %v378_v25 = vadd.f32 1.0, %v2415_v47  ;;  %v204_v10 = vadd.f32 %v166_v14, %v2993_v23  ;;  %v3059_v42 = vld [vmem:[%s4163_s0 + $0xf0] sm:$0xff] }
  0x3e   :  { %v2419_v19 = vpop.eup %2418  ;;  %2436 = vrcp.f32 %v389_v5  ;;  %v379_v31 = vadd.f32 1.0, %v2417_v8  ;;  %v205_v41 = vadd.f32 %v167_v6, %v3008_v32  ;;  %v81_v28 = vmul.f32 %v3039_v17, %v3039_v17 }
  0x3f   :  { %v2421_v12 = vpop.eup %2420  ;;  %2151 = vmatmul.mubr.msk.bf16.vlgmr.msra.gmra.mxu1 %vm560_vm1, %v528_v13  ;;  %v390_v27 = vadd.f32 1.0, %v2419_v19  ;;  %v322_v33 = vmul.f32 1.442695, %v1918_v48  ;;  %v1930_v36 = vmul.f32 -1.5957692, %v204_v10  ;;  %v118_v43 = vmul.f32 %v80_v18, %v3023_v3  ;;  %v3085_v18 = vld [vmem:[%s4163_s0 + $0x100] sm:$0xff] }
  0x40   :  { %2154 = vmatprep.mubr.msk.bf16.mxu1 %vm2694_vm0, %v2693_v0  ;;  %v391_v35 = vadd.f32 1.0, %v2421_v12  ;;  %2187 = vmatpush3.bf16.msra.mxu1 %v2355_v1  ;;  %v324_v44 = vmul.f32 1.442695, %v1919_v21  ;;  %v1931_v16 = vmul.f32 -1.5957692, %v205_v41  ;;  %v119_v45 = vmul.f32 %v81_v28, %v3039_v17 }
  0x41   :  { %2438 = vrcp.f32 %v390_v27  ;;  %2188 = vmatprep.subr.bf16.mxu1 %v2693_v0  ;;  %v2423_v46 = vpop.eup %2422  ;;  %v346_v37 = vmul.f32 1.442695, %v1930_v36  ;;  %v156_v50 = vmul.f32 0.044715, %v118_v43  ;;  %v92_v52 = vmul.f32 %v3059_v42, %v3059_v42  ;;  %v3095_v27 = vld [vmem:[%s4163_s0 + $0x110] sm:$0xff]  ;;  %v3108_v43 = vld [vmem:[%s4163_s0 + $0x118] sm:$0xff] }
  0x42   :  { %2119 = vmatmul.mubr.msk.bf16.gmra.mxu0 %vm560_vm1, %v520_v54  ;;  %2440 = vrcp.f32 %v391_v35  ;;  %v2425_v53 = vpop.eup %2424  ;;  %v348_v55 = vmul.f32 1.442695, %v1931_v16  ;;  %v157_v56 = vmul.f32 0.044715, %v119_v45  ;;  %v93_v54 = vmul.f32 %v3065_v15, %v3065_v15 }
  0x43   :  { %2122 = vmatprep.mubr.msk.bf16.mxu0 %vm2694_vm0, %v2693_v0  ;;  %2442 = vrcp.f32 %v378_v25  ;;  %v522_v58 = vpack.c.bf16 %v3047_v24, %v3044_v20  ;;  %v194_v59 = vadd.f32 %v156_v50, %v3023_v3  ;;  %v130_v4 = vmul.f32 %v92_v52, %v3059_v42  ;;  %v3090_v25 = vld [vmem:[%s4163_s0 + $0x108] sm:$0xff] }
  0x44   :  { %2444 = vrcp.f32 %v379_v31  ;;  %v2427_v57 = vpop.eup %2426  ;;  %v380_v5 = vadd.f32 1.0, %v2423_v46  ;;  %v195_v63 = vadd.f32 %v157_v56, %v3039_v17  ;;  %v131_v1 = vmul.f32 %v93_v54, %v3065_v15 }
  0x45   :  { %2446 = vpow2.f32 %v322_v33  ;;  %v2429_v47 = vpop.eup %2428  ;;  %v1920_v48 = vmul.f32 -1.5957692, %v194_v59  ;;  %v168_v14 = vmul.f32 0.044715, %v130_v4  ;;  %v381_v21 = vadd.f32 1.0, %v2425_v53 }
  0x46   :  { %2448 = vpow2.f32 %v324_v44  ;;  %v2431_v8 = vpop.eup %2430  ;;  %v392_v13 = vadd.f32 1.0, %v2429_v47  ;;  %v1921_v12 = vmul.f32 -1.5957692, %v195_v63  ;;  %v169_v41 = vmul.f32 0.044715, %v131_v1 }
  0x47   :  { %2450 = vpow2.f32 %v346_v37  ;;  %v393_v6 = vadd.f32 1.0, %v2431_v8  ;;  %v326_v35 = vmul.f32 1.442695, %v1920_v48  ;;  %v206_v33 = vadd.f32 %v168_v14, %v3059_v42  ;;  %v3136_v8 = vld [vmem:[%s4163_s0 + $0x120] sm:$0xff] }
  0x48   :  { %v2433_v19 = vpop.eup %2432  ;;  %2452 = vpow2.f32 %v348_v55  ;;  %v328_v28 = vmul.f32 1.442695, %v1921_v12  ;;  %v94_v36 = vmul.f32 %v3085_v18, %v3085_v18  ;;  %v207_v11 = vadd.f32 %v169_v41, %v3065_v15 }
  0x49   :  { %v2435_v10 = vpop.eup %2434  ;;  %v502_v31 = vmul.f32 %v2433_v19, %v2869_v26  ;;  %2454 = vrcp.f32 %v392_v13  ;;  %v95_v29 = vmul.f32 %v3090_v25, %v3090_v25  ;;  %v1932_v16 = vmul.f32 -1.5957692, %v206_v33 }
  0x4a   :  { %2123 = vmatmul.mubr.msk.bf16.gmra.mxu0 %vm560_vm1, %v521_v60  ;;  %2456 = vrcp.f32 %v393_v6  ;;  %v96_v60 = vmul.f32 %v3095_v27, %v3095_v27  ;;  %v132_v45 = vmul.f32 %v94_v36, %v3085_v18  ;;  %v3120_v46 = vmul.f32 %v2427_v57, %v2851_v7  ;;  %v3151_v6 = vld [vmem:[%s4163_s0 + $0x128] sm:$0xf] }
  0x4b   :  { %v2437_v26 = vpop.eup %2436  ;;  %2126 = vmatprep.mubr.msk.bf16.mxu0 %vm2694_vm0, %v2693_v0  ;;  %2458 = vpow2.f32 %v326_v35  ;;  %v1933_v37 = vmul.f32 -1.5957692, %v207_v11  ;;  %v133_v50 = vmul.f32 %v95_v29, %v3090_v25  ;;  %v97_v52 = vmul.f32 %v3108_v43, %v3108_v43 }
  0x4c   :  { %v503_v44 = vmul.f32 %v2437_v26, %v2876_v30  ;;  %2460 = vpow2.f32 %v328_v28  ;;  %v3126_v55 = vmul.f32 %v2435_v10, %v2856_v9  ;;  %v350_v54 = vmul.f32 1.442695, %v1932_v16 }
  0x4d   :  { %v170_v30 = vmul.f32 0.044715, %v132_v45  ;;  %2462 = vrcp.f32 %v380_v5  ;;  %v352_v4 = vmul.f32 1.442695, %v1933_v37  ;;  %v171_v47 = vmul.f32 0.044715, %v133_v50 }
  0x4e   :  { %v2439_v53 = vpop.eup %2438  ;;  %v529_v56 = vpack.c.bf16 %v503_v44, %v502_v31  ;;  %v134_v7 = vmul.f32 %v96_v60, %v3095_v27  ;;  %2464 = vpow2.f32 %v350_v54  ;;  %v135_v48 = vmul.f32 %v97_v52, %v3108_v43 }
  0x4f   :  { %v2441_v59 = vpop.eup %2440  ;;  %v504_v63 = vmul.f32 %v2439_v53, %v2900_v51  ;;  %v208_v9 = vadd.f32 %v170_v30, %v3085_v18  ;;  %2466 = vpow2.f32 %v352_v4  ;;  %v209_v13 = vadd.f32 %v171_v47, %v3090_v25 }
  0x50   :  { %v2443_v57 = vpop.eup %2442  ;;  %2155 = vmatmul.mubr.msk.bf16.gmra.mxu1 %vm560_vm1, %v529_v56  ;;  %v505_v1 = vmul.f32 %v2441_v59, %v2910_v62  ;;  %v523_v62 = vpack.c.bf16 %v3126_v55, %v3120_v46  ;;  %2468 = vrcp.f32 %v381_v21  ;;  %v172_v19 = vmul.f32 0.044715, %v134_v7 }
  0x51   :  { %v2445_v5 = vpop.eup %2444  ;;  %2158 = vmatprep.mubr.msk.bf16.mxu1 %vm2694_vm0, %v2693_v0  ;;  %v1934_v14 = vmul.f32 -1.5957692, %v208_v9  ;;  %v1935_v31 = vmul.f32 -1.5957692, %v209_v13  ;;  %v173_v20 = vmul.f32 0.044715, %v135_v48  ;;  %v98_v24 = vmul.f32 %v3136_v8, %v3136_v8 }
  0x52   :  { %v2447_v51 = vpop.eup %2446  ;;  %2127 = vmatmul.mubr.msk.bf16.gmra.mxu0 %vm560_vm1, %v522_v58  ;;  %v530_v35 = vpack.c.bf16 %v505_v1, %v504_v63  ;;  %v210_v28 = vadd.f32 %v172_v19, %v3095_v27  ;;  %v99_v16 = vmul.f32 %v3151_v6, %v3151_v6  ;;  %v492_v46 = vmul.f32 %v2443_v57, %v2883_v34 }
  0x53   :  { %v2449_v12 = vpop.eup %2448  ;;  %2130 = vmatprep.mubr.msk.bf16.mxu0 %vm2694_vm0, %v2693_v0  ;;  %v382_v10 = vadd.f32 1.0, %v2447_v51  ;;  %v354_v41 = vmul.f32 1.442695, %v1934_v14  ;;  %v356_v26 = vmul.f32 1.442695, %v1935_v31  ;;  %v211_v11 = vadd.f32 %v173_v20, %v3108_v43 }
  0x54   :  { %v2451_v58 = vpop.eup %2450  ;;  %v383_v21 = vadd.f32 1.0, %v2449_v12  ;;  %v1936_v44 = vmul.f32 -1.5957692, %v210_v28  ;;  %v136_v50 = vmul.f32 %v98_v24, %v3136_v8  ;;  %v137_v56 = vmul.f32 %v99_v16, %v3151_v6 }
  0x55   :  { %v2453_v33 = vpop.eup %2452  ;;  %2470 = vrcp.f32 %v382_v10  ;;  %v394_v36 = vadd.f32 1.0, %v2451_v58  ;;  %v1937_v37 = vmul.f32 -1.5957692, %v211_v11  ;;  %v493_v47 = vmul.f32 %v2445_v5, %v2890_v39 }
  0x56   :  { %v2455_v29 = vpop.eup %2454  ;;  %2472 = vrcp.f32 %v383_v21  ;;  %v395_v60 = vadd.f32 1.0, %v2453_v33  ;;  %v358_v59 = vmul.f32 1.442695, %v1936_v44  ;;  %v174_v4 = vmul.f32 0.044715, %v136_v50 }
  0x57   :  { %v2457_v45 = vpop.eup %2456  ;;  %2474 = vrcp.f32 %v394_v36  ;;  %v506_v53 = vmul.f32 %v2455_v29, %v2941_v61  ;;  %v360_v7 = vmul.f32 1.442695, %v1937_v37  ;;  %v175_v61 = vmul.f32 0.044715, %v137_v56 }
  0x58   :  { %v2459_v52 = vpop.eup %2458  ;;  %2159 = vmatmul.mubr.msk.bf16.gmra.mxu1 %vm560_vm1, %v530_v35  ;;  %v507_v55 = vmul.f32 %v2457_v45, %v2950_v22  ;;  %2476 = vrcp.f32 %v395_v60  ;;  %v212_v57 = vadd.f32 %v174_v4, %v3136_v8 }
  0x59   :  { %v2461_v54 = vpop.eup %2460  ;;  %2162 = vmatprep.mubr.msk.bf16.mxu1 %vm2694_vm0, %v2693_v0  ;;  %v384_v30 = vadd.f32 1.0, %v2459_v52  ;;  %2478 = vpow2.f32 %v354_v41  ;;  %v213_v9 = vadd.f32 %v175_v61, %v3151_v6 }
  0x5a   :  { %2131 = vmatmul.mubr.msk.bf16.gmra.mxu0 %vm560_vm1, %v523_v62  ;;  %2480 = vpow2.f32 %v356_v26  ;;  %v385_v22 = vadd.f32 1.0, %v2461_v54  ;;  %v2463_v63 = vpop.eup %2462  ;;  %v531_v1 = vpack.c.bf16 %v507_v55, %v506_v53  ;;  %v1938_v48 = vmul.f32 -1.5957692, %v212_v57 }
  0x5b   :  { %2134 = vmatprep.mubr.msk.bf16.mxu0 %vm2694_vm0, %v2693_v0  ;;  %2482 = vrcp.f32 %v384_v30  ;;  %v2465_v13 = vpop.eup %2464  ;;  %v524_v62 = vpack.c.bf16 %v493_v47, %v492_v46  ;;  %v1939_v14 = vmul.f32 -1.5957692, %v213_v9  ;;  %v494_v24 = vmul.f32 %v2463_v63, %v2923_v40 }
  0x5c   :  { %2484 = vpow2.f32 %v358_v59  ;;  %v2467_v51 = vpop.eup %2466  ;;  %v396_v5 = vadd.f32 1.0, %v2465_v13  ;;  %v362_v10 = vmul.f32 1.442695, %v1938_v48 }
  0x5d   :  { %2486 = vpow2.f32 %v360_v7  ;;  %v2469_v19 = vpop.eup %2468  ;;  %v397_v12 = vadd.f32 1.0, %v2467_v51  ;;  %v364_v31 = vmul.f32 1.442695, %v1939_v14 }
  0x5e   :  { %2488 = vrcp.f32 %v385_v22  ;;  %v495_v58 = vmul.f32 %v2469_v19, %v2930_v49 }
  0x5f   :  { %2490 = vrcp.f32 %v396_v5 }
  0x60   :  { %2163 = vmatmul.mubr.msk.bf16.gmra.mxu1 %vm560_vm1, %v531_v1  ;;  %2492 = vrcp.f32 %v397_v12  ;;  %v525_v36 = vpack.c.bf16 %v495_v58, %v494_v24  ;;  %v2665_v24 = vld [vmem:[%s4163_s0 + $0x18] sm:$0xff] }
  0x61   :  { %2166 = vmatprep.mubr.msk.bf16.mxu1 %vm2694_vm0, %v2693_v0  ;;  %2494 = vpow2.f32 %v362_v10 }
  0x62   :  { %v2471_v20 = vpop.eup %2470  ;;  %2135 = vmatmul.mubr.msk.bf16.gmra.mxu0 %vm560_vm1, %v524_v62  ;;  %2496 = vpow2.f32 %v364_v31  ;;  %v2356_v31 = vld [vmem:[%s4164_s3] sm:$0xff]  }
  0x63   :  { %v2473_v35 = vpop.eup %2472  ;;  %2138 = vmatprep.mubr.msk.bf16.mxu0 %vm2694_vm0, %v2693_v0  ;;  %v496_v46 = vmul.f32 %v2471_v20, %v2970_v38  ;;  %2269 = vmatpush3.bf16.msra.mxu0 %v2356_v31  ;;  %v2664_v20 = vld [vmem:[%s4163_s0 + $0x10] sm:$0xff] }
  0x64   :  { %v2475_v21 = vpop.eup %2474  ;;  %v497_v37 = vmul.f32 %v2473_v35, %v2976_v2  ;;  %v1283_v58 = vpack.c.bf16 %v2665_v24, %v2664_v20  ;;  %v2666_v35 = vld [vmem:[%s4163_s0 + $0x20] sm:$0xff] }
  0x65   :  { %v2477_v41 = vpop.eup %2476  ;;  %v508_v28 = vmul.f32 %v2475_v21, %v2993_v23  ;;  %v2667_v21 = vld [vmem:[%s4163_s0 + $0x28] sm:$0xff] }
  0x66   :  { %v2479_v33 = vpop.eup %2478  ;;  %v509_v26 = vmul.f32 %v2477_v41, %v3008_v32  ;;  %v526_v56 = vpack.c.bf16 %v497_v37, %v496_v46  ;;  %v1284_v41 = vpack.c.bf16 %v2667_v21, %v2666_v35  ;;  %v1289_v46 = vpack.c.bf16 %v2930_v49, %v2923_v40 }
  0x67   :  { %v2481_v11 = vpop.eup %2480  ;;  %v398_v29 = vadd.f32 1.0, %v2479_v33  ;;  %v2669_v33 = vld [vmem:[%s4163_s0 + $0x38] sm:$0xff]  ;;  %v1290_v37 = vpack.c.bf16 %v2976_v2, %v2970_v38  ;;  %v1291_v49 = vpack.c.bf16 %v3039_v17, %v3023_v3 }
  0x68   :  { %v532_v60 = vpack.c.bf16 %v509_v26, %v508_v28  ;;  %v399_v44 = vadd.f32 1.0, %v2481_v11  ;;  %v2483_v16 = vpop.eup %2482  ;;  %v2668_v28 = vld [vmem:[%s4163_s0 + $0x30] sm:$0xff]  ;;  %v2670_v26 = vld [vmem:[%s4163_s0 + $0x40] sm:$0xff]  ;;  %v2671_v11 = vld [vmem:[%s4163_s0 + $0x48] sm:$0xff] }
  0x69   :  { %2498 = vrcp.f32 %v398_v29  ;;  %v2485_v45 = vpop.eup %2484  ;;  %v498_v22 = vmul.f32 %v2483_v16, %v3023_v3  ;;  %v1286_v29 = vpack.c.bf16 %v2671_v11, %v2670_v26 }
  0x6a   :  { %2139 = vmatmul.mubr.msk.bf16.gmra.mxu0 %vm560_vm1, %v525_v36  ;;  %2167 = vmatmul.mubr.msk.bf16.gmra.mxu1 %vm560_vm1, %v532_v60  ;;  %2500 = vrcp.f32 %v399_v44  ;;  %v2487_v23 = vpop.eup %2486  ;;  %v400_v32 = vadd.f32 1.0, %v2485_v45  ;;  %v1285_v36 = vpack.c.bf16 %v2669_v33, %v2668_v28  ;;  %v2672_v60 = vld [vmem:[%s4163_s0 + $0x50] sm:$0xff]  ;;  %v2673_v44 = vld [vmem:[%s4163_s0 + $0x58] sm:$0xff]  ;;  %v1288_v45 = vpack.c.bf16 %v2890_v39, %v2883_v34  ;;  %v3299_v34 = vld [vmem:[%s4166_s2] ss:$0 sm:$0xff] }
  0x6b   :  { %2142 = vmatprep.mubr.msk.bf16.mxu0 %vm2694_vm0, %v2693_v0  ;;  %2170 = vmatprep.mubr.msk.bf16.mxu1 %vm2694_vm0, %v2693_v0  ;;  %v2489_v50 = vpop.eup %2488  ;;  %v401_v52 = vadd.f32 1.0, %v2487_v23  ;;  %v1287_v16 = vpack.c.bf16 %v2673_v44, %v2672_v60 }
  0x6c   :  { %v2491_v53 = vpop.eup %2490  ;;  %2502 = vrcp.f32 %v400_v32  ;;  %v499_v57 = vmul.f32 %v2489_v50, %v3039_v17 }
  0x6d   :  { %v2493_v55 = vpop.eup %2492  ;;  %v510_v54 = vmul.f32 %v2491_v53, %v3059_v42  ;;  %2504 = vrcp.f32 %v401_v52 }
  0x6e   :  { %v2495_v30 = vpop.eup %2494  ;;  %v511_v59 = vmul.f32 %v2493_v55, %v3065_v15  ;;  %v527_v15 = vpack.c.bf16 %v499_v57, %v498_v22 }
  0x6f   :  { %v2497_v4 = vpop.eup %2496  ;;  %v402_v47 = vadd.f32 1.0, %v2495_v30  ;;  %v2674_v30 = vld [vmem:[%s4163_s0 + $0xa0] sm:$0xff] }
  0x70   :  { %v533_v7 = vpack.c.bf16 %v511_v59, %v510_v54  ;;  %v403_v61 = vadd.f32 1.0, %v2497_v4  ;;  %v2675_v59 = vld [vmem:[%s4163_s0 + $0xa8] sm:$0xff] }
  0x71   :  { %2506 = vrcp.f32 %v402_v47  ;;  %v1292_v4 = vpack.c.bf16 %v2675_v59, %v2674_v30 }
  0x72   :  { %2143 = vmatmul.mubr.msk.bf16.gmra.mxu0 %vm560_vm1, %v526_v56  ;;  %2171 = vmatmul.mubr.msk.bf16.gmra.mxu1 %vm560_vm1, %v533_v7  ;;  %2508 = vrcp.f32 %v403_v61 }
  0x73   :  { %2146 = vmatprep.mubr.msk.bf16.mxu0 %vm2694_vm0, %v2693_v0  ;;  %2174 = vmatprep.mubr.msk.bf16.mxu1 %vm2694_vm0, %v2693_v0 }
  0x76   :  { %v2499_v42 = vpop.eup %2498 }
  0x77   :  { %v2501_v63 = vpop.eup %2500  ;;  %v512_v1 = vmul.f32 %v2499_v42, %v3085_v18 }
  0x78   :  { %v513_v9 = vmul.f32 %v2501_v63, %v3090_v25 }
  0x79   :  { %v2503_v13 = vpop.eup %2502 }
  0x7a   :  { %2147 = vmatmul.mubr.msk.bf16.gmra.mxu0 %vm560_vm1, %v527_v15  ;;  %v534_v48 = vpack.c.bf16 %v513_v9, %v512_v1  ;;  %v2505_v51 = vpop.eup %2504  ;;  %v514_v62 = vmul.f32 %v2503_v13, %v3095_v27  ;;  %v2357_v27 = vld [vmem:[%s4165_s5] sm:$0xff]  }
  0x7b   :  { %2270 = vmatprep.mubr.msk.bf16.mxu0 %vm2694_vm0, %v2693_v0  ;;  %v515_v5 = vmul.f32 %v2505_v51, %v3108_v43  ;;  %2189 = vmatpush3.bf16.msra.mxu1 %v2357_v27  ;;  %v2662_v43 = vld [vmem:[%s4163_s0] sm:$0xff] }
  0x7c   :  { %2175 = vmatmul.mubr.msk.bf16.gmra.mxu1 %vm560_vm1, %v534_v48 }
  0x7d   :  { %2178 = vmatprep.mubr.msk.bf16.mxu1 %vm2694_vm0, %v2693_v0  ;;  %v535_v14 = vpack.c.bf16 %v515_v5, %v514_v62 }
  0x7e   :  { %v2507_v18 = vpop.eup %2506 }
  0x7f   :  { %v2509_v25 = vpop.eup %2508  ;;  %v516_v19 = vmul.f32 %v2507_v18, %v3136_v8  ;;  %v2663_v8 = vld [vmem:[%s4163_s0 + $0x8] sm:$0xff] }
  0x80   :  { %v517_v12 = vmul.f32 %v2509_v25, %v3151_v6  ;;  %v1282_v6 = vpack.c.bf16 %v2663_v8, %v2662_v43 }
  0x82   :  { %v536_v10 = vpack.c.bf16 %v517_v12, %v516_v19 }
  0x84   :  { %2179 = vmatmul.mubr.msk.bf16.gmra.mxu1 %vm560_vm1, %v535_v14 }
  0x85   :  { %2182 = vmatprep.mubr.msk.bf16.mxu1 %vm2694_vm0, %v2693_v0 }
  0x8c   :  { %2183 = vmatmul.mubr.msk.bf16.gmra.mxu1 %vm560_vm1, %v536_v10 }
  0x8d   :  { %2190 = vmatprep.mubr.msk.bf16.mxu1 %vm2694_vm0, %v2693_v0 }
  0x94   :  { %2191 = vmatmul.mubr.msk.bf16.vlgmr.msra.gmra.mxu1 %vm560_vm1, %v1282_v6 }
  0x95   :  { %2194 = vmatprep.mubr.msk.bf16.mxu1 %vm2694_vm0, %v2693_v0 }
  0x9c   :  { %2195 = vmatmul.mubr.msk.bf16.gmra.mxu1 %vm560_vm1, %v1283_v58 }
  0x9d   :  { %2198 = vmatprep.mubr.msk.bf16.mxu1 %vm2694_vm0, %v2693_v0 }
  0xa4   :  { %2199 = vmatmul.mubr.msk.bf16.gmra.mxu1 %vm560_vm1, %v1284_v41 }
  0xa5   :  { %2202 = vmatprep.mubr.msk.bf16.mxu1 %vm2694_vm0, %v2693_v0 }
  0xac   :  { %2203 = vmatmul.mubr.msk.bf16.gmra.mxu1 %vm560_vm1, %v1285_v36 }
  0xad   :  { %2206 = vmatprep.mubr.msk.bf16.mxu1 %vm2694_vm0, %v2693_v0 }
  0xb4   :  { %2207 = vmatmul.mubr.msk.bf16.gmra.mxu1 %vm560_vm1, %v1286_v29 }
  0xb5   :  { %2210 = vmatprep.mubr.msk.bf16.mxu1 %vm2694_vm0, %v2693_v0 }
  0xbc   :  { %2211 = vmatmul.mubr.msk.bf16.gmra.mxu1 %vm560_vm1, %v1287_v16 }
  0xbd   :  { %2214 = vmatprep.mubr.msk.bf16.mxu1 %vm2694_vm0, %v2693_v0 }
  0xc4   :  { %2215 = vmatmul.mubr.msk.bf16.gmra.mxu1 %vm560_vm1, %v1288_v45 }
  0xc5   :  { %2218 = vmatprep.mubr.msk.bf16.mxu1 %vm2694_vm0, %v2693_v0 }
  0xcc   :  { %2219 = vmatmul.mubr.msk.bf16.gmra.mxu1 %vm560_vm1, %v1289_v46 }
  0xcd   :  { %2222 = vmatprep.mubr.msk.bf16.mxu1 %vm2694_vm0, %v2693_v0 }
  0xd4   :  { %2223 = vmatmul.mubr.msk.bf16.gmra.mxu1 %vm560_vm1, %v1290_v37 }
  0xd5   :  { %2226 = vmatprep.mubr.msk.bf16.mxu1 %vm2694_vm0, %v2693_v0 }
  0xdc   :  { %2227 = vmatmul.mubr.msk.bf16.gmra.mxu1 %vm560_vm1, %v1291_v49 }
  0xdd   :  { %2230 = vmatprep.mubr.msk.bf16.mxu1 %vm2694_vm0, %v2693_v0 }
  0xe4   :  { %2231 = vmatmul.mubr.msk.bf16.gmra.mxu1 %vm560_vm1, %v1292_v4 }
  0xe5   :  { %2234 = vmatprep.mubr.msk.bf16.mxu1 %vm2694_vm0, %v2693_v0 }
  0xf2   :  { %v652_v39 = vpop.f32.mrf.mxu0 }
  0xf3   :  { %v3302_v40 = vadd.f32 %v3299_v34, %v652_v39 }
  0xf4   :  { %v2112_v23 = vpop.f32.mrf.mxu0 }
  0xf5   :  { %v803_v38 = vmul.f32 %v3302_v40, %v3302_v40 }
  0xf6   :  { %v655_v2 = vpop.f32.mrf.mxu0 }
  0xf7   :  { %v841_v32 = vmul.f32 %v803_v38, %v3302_v40  ;;  %v3313_v50 = vadd.f32 %v3299_v34, %v655_v2 }
  0xf8   :  { %v2113_v52 = vpop.f32.mrf.mxu0 }
  0xf9   :  { %v879_v53 = vmul.f32 0.044715, %v841_v32  ;;  %v804_v3 = vmul.f32 %v3313_v50, %v3313_v50 }
  0xfa   :  { %v660_v17 = vpop.f32.mrf.mxu0 }
  0xfb   :  { %v917_v55 = vadd.f32 %v879_v53, %v3302_v40  ;;  %v842_v56 = vmul.f32 %v804_v3, %v3313_v50  ;;  %v3320_v54 = vadd.f32 %v3299_v34, %v660_v17  ;;  %v2676_v17 = vld [vmem:[%s4163_s0 + $0xb0] sm:$0xff] }
  0xfc   :  { %v2116_v47 = vpop.f32.mrf.mxu0 }
  0xfd   :  { %v1962_v7 = vmul.f32 -1.5957692, %v917_v55  ;;  %v880_v61 = vmul.f32 0.044715, %v842_v56  ;;  %v805_v22 = vmul.f32 %v3320_v54, %v3320_v54  ;;  %v2677_v55 = vld [vmem:[%s4163_s0 + $0xb8] sm:$0xff] }
  0xfe   :  { %v663_v57 = vpop.f32.mrf.mxu0  ;;  %v1293_v56 = vpack.c.bf16 %v2677_v55, %v2676_v17  ;;  %v2681_v17 = vld [vmem:[%s4163_s0 + $0xd8] sm:$0xff] }
  0xff   :  { %v1031_v42 = vmul.f32 1.442695, %v1962_v7  ;;  %v918_v15 = vadd.f32 %v880_v61, %v3313_v50  ;;  %v843_v63 = vmul.f32 %v805_v22, %v3320_v54  ;;  %v3336_v1 = vadd.f32 %v3299_v34, %v663_v57  ;;  %v732_v9 = vpop.f32.mrf.mxu1 }
 0x100   :  { %v2117_v13 = vpop.f32.mrf.mxu0  ;;  %v3339_v48 = vadd.f32 %v3299_v34, %v732_v9  ;;  %2235 = vmatmul.mubr.msk.bf16.gmra.mxu1 %vm560_vm1, %v1293_v56 }
 0x101   :  { %2510 = vpow2.f32 %v1031_v42  ;;  %v1963_v51 = vmul.f32 -1.5957692, %v918_v15  ;;  %v881_v62 = vmul.f32 0.044715, %v843_v63  ;;  %v806_v5 = vmul.f32 %v3336_v1, %v3336_v1  ;;  %v2152_v18 = vpop.f32.mrf.mxu1  ;;  %2238 = vmatprep.mubr.msk.bf16.mxu1 %vm2694_vm0, %v2693_v0 }
 0x102   :  { %v668_v14 = vpop.f32.mrf.mxu0  ;;  %v823_v25 = vmul.f32 %v3339_v48, %v3339_v48 }
 0x103   :  { %v1033_v19 = vmul.f32 1.442695, %v1963_v51  ;;  %v919_v12 = vadd.f32 %v881_v62, %v3320_v54  ;;  %v844_v10 = vmul.f32 %v806_v5, %v3336_v1  ;;  %v3348_v27 = vadd.f32 %v3299_v34, %v668_v14  ;;  %v735_v43 = vpop.f32.mrf.mxu1 }
 0x104   :  { %v2120_v8 = vpop.f32.mrf.mxu0  ;;  %v861_v6 = vmul.f32 %v823_v25, %v3339_v48  ;;  %v3352_v31 = vadd.f32 %v3299_v34, %v735_v43  ;;  %v2679_v43 = vld [vmem:[%s4163_s0 + $0xc8] sm:$0xff] }
 0x105   :  { %2512 = vpow2.f32 %v1033_v19  ;;  %v1964_v20 = vmul.f32 -1.5957692, %v919_v12  ;;  %v882_v24 = vmul.f32 0.044715, %v844_v10  ;;  %v807_v58 = vmul.f32 %v3348_v27, %v3348_v27  ;;  %v2153_v35 = vpop.f32.mrf.mxu1  ;;  %v2678_v10 = vld [vmem:[%s4163_s0 + $0xc0] sm:$0xff] }
 0x106   :  { %v671_v21 = vpop.f32.mrf.mxu0  ;;  %v899_v41 = vmul.f32 0.044715, %v861_v6  ;;  %v824_v28 = vmul.f32 %v3352_v31, %v3352_v31  ;;  %v1294_v8 = vpack.c.bf16 %v2679_v43, %v2678_v10 }
 0x107   :  { %v1035_v33 = vmul.f32 1.442695, %v1964_v20  ;;  %v920_v36 = vadd.f32 %v882_v24, %v3336_v1  ;;  %v845_v26 = vmul.f32 %v807_v58, %v3348_v27  ;;  %v3361_v11 = vadd.f32 %v3299_v34, %v671_v21 }
 0x108   :  { %v2121_v29 = vpop.f32.mrf.mxu0  ;;  %v937_v60 = vadd.f32 %v899_v41, %v3339_v48  ;;  %v862_v44 = vmul.f32 %v824_v28, %v3352_v31  ;;  %2239 = vmatmul.mubr.msk.bf16.gmra.mxu1 %vm560_vm1, %v1294_v8 }
 0x109   :  { %2514 = vpow2.f32 %v1035_v33  ;;  %v1965_v16 = vmul.f32 -1.5957692, %v920_v36  ;;  %v883_v45 = vmul.f32 0.044715, %v845_v26  ;;  %v808_v46 = vmul.f32 %v3361_v11, %v3361_v11  ;;  %2242 = vmatprep.mubr.msk.bf16.mxu1 %vm2694_vm0, %v2693_v0 }
 0x10a   :  { %v676_v37 = vpop.f32.mrf.mxu0  ;;  %v1982_v39 = vmul.f32 -1.5957692, %v937_v60  ;;  %v900_v49 = vmul.f32 0.044715, %v862_v44 }
 0x10b   :  { %v1037_v23 = vmul.f32 1.442695, %v1965_v16  ;;  %v921_v38 = vadd.f32 %v883_v45, %v3348_v27  ;;  %v846_v2 = vmul.f32 %v808_v46, %v3361_v11  ;;  %v3370_v32 = vadd.f32 %v3299_v34, %v676_v37 }
 0x10c   :  { %v2124_v52 = vpop.f32.mrf.mxu0  ;;  %v1071_v53 = vmul.f32 1.442695, %v1982_v39  ;;  %v938_v3 = vadd.f32 %v900_v49, %v3352_v31 }
 0x10d   :  { %2516 = vpow2.f32 %v1037_v23  ;;  %v1966_v30 = vmul.f32 -1.5957692, %v921_v38  ;;  %v884_v59 = vmul.f32 0.044715, %v846_v2  ;;  %v809_v4 = vmul.f32 %v3370_v32, %v3370_v32 }
 0x10e   :  { %v2511_v47 = vpop.eup %2510  ;;  %v679_v7 = vpop.f32.mrf.mxu0  ;;  %2518 = vpow2.f32 %v1071_v53  ;;  %v1983_v61 = vmul.f32 -1.5957692, %v938_v3  ;;  %v2680_v3 = vld [vmem:[%s4163_s0 + $0xd0] sm:$0xff] }
 0x10f   :  { %v1107_v22 = vadd.f32 1.0, %v2511_v47  ;;  %v1039_v57 = vmul.f32 1.442695, %v1966_v30  ;;  %v922_v42 = vadd.f32 %v884_v59, %v3361_v11  ;;  %v847_v15 = vmul.f32 %v809_v4, %v3370_v32 }
 0x110   :  { %v3387_v63 = vadd.f32 %v3299_v34, %v679_v7  ;;  %v2125_v9 = vpop.f32.mrf.mxu0  ;;  %v1073_v13 = vmul.f32 1.442695, %v1983_v61  ;;  %v740_v51 = vpop.f32.mrf.mxu1  ;;  %v1295_v55 = vpack.c.bf16 %v2681_v17, %v2680_v3 }
 0x111   :  { %2520 = vrcp.f32 %v1107_v22  ;;  %v1967_v62 = vmul.f32 -1.5957692, %v922_v42  ;;  %v885_v5 = vmul.f32 0.044715, %v847_v15  ;;  %v3390_v18 = vadd.f32 %v3299_v34, %v740_v51 }
 0x112   :  { %v2513_v14 = vpop.eup %2512  ;;  %2522 = vpow2.f32 %v1039_v57  ;;  %v810_v25 = vmul.f32 %v3387_v63, %v3387_v63  ;;  %v684_v19 = vpop.f32.mrf.mxu0  ;;  %2243 = vmatmul.mubr.msk.bf16.gmra.mxu1 %vm560_vm1, %v1295_v55 }
 0x113   :  { %v2156_v12 = vpop.f32.mrf.mxu1  ;;  %v1108_v6 = vadd.f32 1.0, %v2513_v14  ;;  %v1041_v20 = vmul.f32 1.442695, %v1967_v62  ;;  %v923_v24 = vadd.f32 %v885_v5, %v3370_v32  ;;  %v3402_v58 = vadd.f32 %v3299_v34, %v684_v19  ;;  %2246 = vmatprep.mubr.msk.bf16.mxu1 %vm2694_vm0, %v2693_v0 }
 0x114   :  { %v848_v35 = vmul.f32 %v810_v25, %v3387_v63  ;;  %v2128_v21 = vpop.f32.mrf.mxu0  ;;  %2524 = vpow2.f32 %v1073_v13  ;;  %v825_v41 = vmul.f32 %v3390_v18, %v3390_v18 }
 0x115   :  { %v743_v28 = vpop.f32.mrf.mxu1  ;;  %2526 = vrcp.f32 %v1108_v6  ;;  %v1968_v33 = vmul.f32 -1.5957692, %v923_v24  ;;  %v811_v36 = vmul.f32 %v3402_v58, %v3402_v58 }
 0x116   :  { %v3410_v26 = vadd.f32 %v3299_v34, %v743_v28  ;;  %v2515_v29 = vpop.eup %2514  ;;  %2528 = vpow2.f32 %v1041_v20  ;;  %v886_v60 = vmul.f32 0.044715, %v848_v35  ;;  %v687_v44 = vpop.f32.mrf.mxu0  ;;  %v863_v16 = vmul.f32 %v825_v41, %v3390_v18 }
 0x117   :  { %v2157_v45 = vpop.f32.mrf.mxu1  ;;  %v1109_v46 = vadd.f32 1.0, %v2515_v29  ;;  %v1043_v37 = vmul.f32 1.442695, %v1968_v33  ;;  %v849_v39 = vmul.f32 %v811_v36, %v3402_v58  ;;  %v3416_v49 = vadd.f32 %v3299_v34, %v687_v44 }
 0x118   :  { %v924_v23 = vadd.f32 %v886_v60, %v3387_v63  ;;  %v2129_v38 = vpop.f32.mrf.mxu0  ;;  %v901_v2 = vmul.f32 0.044715, %v863_v16  ;;  %v826_v52 = vmul.f32 %v3410_v26, %v3410_v26 }
 0x119   :  { %v748_v53 = vpop.f32.mrf.mxu1  ;;  %2530 = vrcp.f32 %v1109_v46  ;;  %v887_v56 = vmul.f32 0.044715, %v849_v39  ;;  %v812_v30 = vmul.f32 %v3416_v49, %v3416_v49 }
 0x11a   :  { %v3432_v59 = vadd.f32 %v3299_v34, %v748_v53  ;;  %v2517_v4 = vpop.eup %2516  ;;  %2532 = vpow2.f32 %v1043_v37  ;;  %v1969_v47 = vmul.f32 -1.5957692, %v924_v23  ;;  %v692_v7 = vpop.f32.mrf.mxu0  ;;  %v939_v61 = vadd.f32 %v901_v2, %v3390_v18 }
 0x11b   :  { %v864_v22 = vmul.f32 %v826_v52, %v3410_v26  ;;  %v2160_v57 = vpop.f32.mrf.mxu1  ;;  %v2519_v42 = vpop.eup %2518  ;;  %v1110_v15 = vadd.f32 1.0, %v2517_v4  ;;  %v925_v9 = vadd.f32 %v887_v56, %v3402_v58  ;;  %v850_v13 = vmul.f32 %v812_v30, %v3416_v49 }
 0x11c   :  { %v3439_v51 = vadd.f32 %v3299_v34, %v692_v7  ;;  %v1045_v62 = vmul.f32 1.442695, %v1969_v47  ;;  %v1127_v5 = vadd.f32 1.0, %v2519_v42  ;;  %v2132_v14 = vpop.f32.mrf.mxu0  ;;  %v1984_v25 = vmul.f32 -1.5957692, %v939_v61 }
 0x11d   :  { %v827_v19 = vmul.f32 %v3432_v59, %v3432_v59  ;;  %v3443_v12 = vpop.f32.mrf.mxu1  ;;  %2534 = vrcp.f32 %v1110_v15  ;;  %v1970_v10 = vmul.f32 -1.5957692, %v925_v9  ;;  %v888_v43 = vmul.f32 0.044715, %v850_v13 }
 0x11e   :  { %v813_v8 = vmul.f32 %v3439_v51, %v3439_v51  ;;  %v2521_v6 = vpop.eup %2520  ;;  %2536 = vpow2.f32 %v1045_v62  ;;  %v1075_v20 = vmul.f32 1.442695, %v1984_v25  ;;  %v695_v24 = vpop.f32.mrf.mxu0  ;;  %v902_v35 = vmul.f32 0.044715, %v864_v22 }
 0x11f   :  { %v865_v21 = vmul.f32 %v827_v19, %v3432_v59  ;;  %v2161_v41 = vpop.f32.mrf.mxu1  ;;  %v2523_v28 = vpop.eup %2522  ;;  %v1221_v33 = vmul.f32 %v2521_v6, %v3302_v40  ;;  %v1047_v36 = vmul.f32 1.442695, %v1970_v10  ;;  %2538 = vrcp.f32 %v1127_v5 }
 0x120   :  { %v926_v29 = vadd.f32 %v888_v43, %v3416_v49  ;;  %v1111_v60 = vadd.f32 1.0, %v2523_v28  ;;  %v851_v44 = vmul.f32 %v813_v8, %v3439_v51  ;;  %2540 = vpow2.f32 %v1075_v20  ;;  %v2133_v45 = vpop.f32.mrf.mxu0 }
 0x121   :  { %v3455_v16 = vadd.f32 %v3299_v34, %v695_v24  ;;  %v756_v46 = vpop.f32.mrf.mxu1  ;;  %v2525_v37 = vpop.eup %2524  ;;  %2542 = vpow2.f32 %v1047_v36  ;;  %v940_v40 = vadd.f32 %v902_v35, %v3410_v26  ;;  %v903_v23 = vmul.f32 0.044715, %v865_v21 }
 0x122   :  { %v1971_v39 = vmul.f32 -1.5957692, %v926_v29  ;;  %v2527_v38 = vpop.eup %2526  ;;  %2544 = vrcp.f32 %v1111_v60  ;;  %v1128_v2 = vadd.f32 1.0, %v2525_v37  ;;  %v889_v52 = vmul.f32 0.044715, %v851_v44  ;;  %v700_v3 = vpop.f32.mrf.mxu0 }
 0x123   :  { %v814_v53 = vmul.f32 %v3455_v16, %v3455_v16  ;;  %v2164_v17 = vpop.f32.mrf.mxu1  ;;  %v2529_v55 = vpop.eup %2528  ;;  %v1222_v56 = vmul.f32 %v2527_v38, %v3313_v50  ;;  %v1985_v4 = vmul.f32 -1.5957692, %v940_v40  ;;  %v3462_v47 = vadd.f32 %v3299_v34, %v700_v3 }
 0x124   :  { %v1049_v30 = vmul.f32 1.442695, %v1971_v39  ;;  %v1112_v7 = vadd.f32 1.0, %v2529_v55  ;;  %v927_v61 = vadd.f32 %v889_v52, %v3439_v51  ;;  %v2136_v57 = vpop.f32.mrf.mxu0  ;;  %v941_v14 = vadd.f32 %v903_v23, %v3432_v59 }
 0x125   :  { %v852_v22 = vmul.f32 %v814_v53, %v3455_v16  ;;  %v759_v42 = vpop.f32.mrf.mxu1  ;;  %v1259_v15 = vpack.c.bf16 %v1222_v56, %v1221_v33  ;;  %v1077_v9 = vmul.f32 1.442695, %v1985_v4  ;;  %v815_v13 = vmul.f32 %v3462_v47, %v3462_v47 }
 0x126   :  { %2546 = vpow2.f32 %v1049_v30  ;;  %v2531_v62 = vpop.eup %2530  ;;  %v1972_v50 = vmul.f32 -1.5957692, %v927_v61  ;;  %v703_v25 = vpop.f32.mrf.mxu0  ;;  %v1986_v35 = vmul.f32 -1.5957692, %v941_v14  ;;  %v3481_v33 = vadd.f32 %v3299_v34, %v3443_v12 }
 0x127   :  { %2548 = vrcp.f32 %v1128_v2  ;;  %v890_v5 = vmul.f32 0.044715, %v852_v22  ;;  %v2165_v19 = vpop.f32.mrf.mxu1  ;;  %v2533_v10 = vpop.eup %2532  ;;  %v853_v43 = vmul.f32 %v815_v13, %v3462_v47  ;;  %v3471_v8 = vadd.f32 %v3299_v34, %v703_v25  ;;  %2271 = vmatmul.mubr.msk.bf16.vlgmr.msra.gmra.mxu0 %vm560_vm1, %v1259_v15 }
 0x128   :  { %2550 = vpow2.f32 %v1077_v9  ;;  %v1113_v6 = vadd.f32 1.0, %v2533_v10  ;;  %v1051_v20 = vmul.f32 1.442695, %v1972_v50  ;;  %v2137_v21 = vpop.f32.mrf.mxu0  ;;  %2274 = vmatprep.mubr.msk.bf16.mxu0 %vm2694_vm0, %v2693_v0  ;;  %v1079_v60 = vmul.f32 1.442695, %v1986_v35 }
 0x129   :  { %v928_v24 = vadd.f32 %v890_v5, %v3455_v16  ;;  %2552 = vrcp.f32 %v1112_v7  ;;  %v891_v41 = vmul.f32 0.044715, %v853_v43  ;;  %v816_v28 = vmul.f32 %v3471_v8, %v3471_v8 }
 0x12a   :  { %v2535_v36 = vpop.eup %2534  ;;  %2554 = vrcp.f32 %v1113_v6  ;;  %v708_v44 = vpop.f32.mrf.mxu0  ;;  %v3484_v45 = vadd.f32 %v3299_v34, %v756_v46  ;;  %v3489_v40 = vmul.f32 %v2531_v62, %v3320_v54  ;;  %v828_v53 = vmul.f32 %v3481_v33, %v3481_v33 }
 0x12b   :  { %v1973_v29 = vmul.f32 -1.5957692, %v928_v24  ;;  %v3486_v37 = vpop.f32.mrf.mxu1  ;;  %v2537_v39 = vpop.eup %2536  ;;  %2556 = vpow2.f32 %v1051_v20  ;;  %v929_v23 = vadd.f32 %v891_v41, %v3462_v47  ;;  %v854_v12 = vmul.f32 %v816_v28, %v3471_v8 }
 0x12c   :  { %v2539_v38 = vpop.eup %2538  ;;  %v1114_v2 = vadd.f32 1.0, %v2537_v39  ;;  %2558 = vpow2.f32 %v1079_v60  ;;  %v2140_v46 = vpop.f32.mrf.mxu0  ;;  %v3496_v54 = vadd.f32 %v3299_v34, %v708_v44  ;;  %v3499_v30 = vadd.f32 %v3299_v34, %v759_v42 }
 0x12d   :  { %v1053_v52 = vmul.f32 1.442695, %v1973_v29  ;;  %v2168_v3 = vpop.f32.mrf.mxu1  ;;  %v2541_v17 = vpop.eup %2540  ;;  %v1974_v55 = vmul.f32 -1.5957692, %v929_v23  ;;  %v892_v56 = vmul.f32 0.044715, %v854_v12  ;;  %v866_v61 = vmul.f32 %v828_v53, %v3481_v33 }
 0x12e   :  { %v2543_v4 = vpop.eup %2542  ;;  %2560 = vrcp.f32 %v1114_v2  ;;  %v1129_v7 = vadd.f32 1.0, %v2541_v17  ;;  %v829_v22 = vmul.f32 %v3484_v45, %v3484_v45  ;;  %v711_v57 = vpop.f32.mrf.mxu0  ;;  %v1224_v13 = vmul.f32 %v2535_v36, %v3336_v1 }
 0x12f   :  { %v3504_v15 = vpop.f32.mrf.mxu1  ;;  %v2545_v9 = vpop.eup %2544  ;;  %2562 = vpow2.f32 %v1053_v52  ;;  %v1055_v62 = vmul.f32 1.442695, %v1974_v55  ;;  %v930_v50 = vadd.f32 %v892_v56, %v3471_v8  ;;  %v1115_v42 = vadd.f32 1.0, %v2543_v4 }
 0x130   :  { %v3509_v5 = vmul.f32 %v2539_v38, %v3339_v48  ;;  %v904_v14 = vmul.f32 0.044715, %v866_v61  ;;  %v817_v25 = vmul.f32 %v3496_v54, %v3496_v54  ;;  %v2141_v19 = vpop.f32.mrf.mxu0  ;;  %2564 = vrcp.f32 %v1129_v7 }
 0x131   :  { %v2169_v10 = vpop.f32.mrf.mxu1  ;;  %v1975_v43 = vmul.f32 -1.5957692, %v930_v50  ;;  %v867_v6 = vmul.f32 %v829_v22, %v3484_v45  ;;  %v3515_v1 = vadd.f32 %v3299_v34, %v711_v57  ;;  %v3518_v24 = vmul.f32 %v2545_v9, %v3348_v27 }
 0x132   :  { %2566 = vpow2.f32 %v1055_v62  ;;  %v942_v48 = vadd.f32 %v904_v14, %v3481_v33  ;;  %v855_v35 = vmul.f32 %v817_v25, %v3496_v54  ;;  %v716_v21 = vpop.f32.mrf.mxu0  ;;  %v1260_v12 = vpack.c.bf16 %v1224_v13, %v3489_v40 }
 0x133   :  { %v2547_v20 = vpop.eup %2546  ;;  %v1057_v36 = vmul.f32 1.442695, %v1975_v43  ;;  %v905_v29 = vmul.f32 0.044715, %v867_v6  ;;  %v818_v60 = vmul.f32 %v3515_v1, %v3515_v1  ;;  %v3524_v44 = vpop.f32.mrf.mxu1  ;;  %2568 = vrcp.f32 %v1115_v42 }
 0x134   :  { %v2549_v41 = vpop.eup %2548  ;;  %v1116_v28 = vadd.f32 1.0, %v2547_v20  ;;  %v1987_v23 = vmul.f32 -1.5957692, %v942_v48  ;;  %v893_v27 = vmul.f32 0.044715, %v855_v35  ;;  %v2144_v38 = vpop.f32.mrf.mxu0  ;;  %2275 = vmatmul.mubr.msk.bf16.gmra.mxu0 %vm560_vm1, %v1260_v12  ;;  %v830_v56 = vmul.f32 %v3499_v30, %v3499_v30 }
 0x135   :  { %v2551_v39 = vpop.eup %2550  ;;  %v943_v52 = vadd.f32 %v905_v29, %v3484_v45  ;;  %v856_v53 = vmul.f32 %v818_v60, %v3515_v1  ;;  %v2172_v46 = vpop.f32.mrf.mxu1  ;;  %v3534_v22 = vadd.f32 %v3299_v34, %v716_v21  ;;  %2278 = vmatprep.mubr.msk.bf16.mxu0 %vm2694_vm0, %v2693_v0  ;;  %v3541_v13 = vmul.f32 %v2549_v41, %v3352_v31 }
 0x136   :  { %2570 = vrcp.f32 %v1116_v28  ;;  %v1130_v2 = vadd.f32 1.0, %v2551_v39  ;;  %v2553_v3 = vpop.eup %2552  ;;  %v1081_v17 = vmul.f32 1.442695, %v1987_v23  ;;  %v931_v55 = vadd.f32 %v893_v27, %v3496_v54  ;;  %v719_v4 = vpop.f32.mrf.mxu0 }
 0x137   :  { %2572 = vpow2.f32 %v1057_v36  ;;  %v2555_v40 = vpop.eup %2554  ;;  %v1988_v7 = vmul.f32 -1.5957692, %v943_v52  ;;  %v894_v61 = vmul.f32 0.044715, %v856_v53  ;;  %v3538_v57 = vpop.f32.mrf.mxu1  ;;  %v868_v50 = vmul.f32 %v830_v56, %v3499_v30 }
 0x138   :  { %2574 = vrcp.f32 %v1130_v2  ;;  %v2557_v9 = vpop.eup %2556  ;;  %v1976_v62 = vmul.f32 -1.5957692, %v931_v55  ;;  %v2145_v42 = vpop.f32.mrf.mxu0  ;;  %v819_v43 = vmul.f32 %v3534_v22, %v3534_v22  ;;  %v3549_v31 = vadd.f32 %v3299_v34, %v3486_v37 }
 0x139   :  { %2576 = vpow2.f32 %v1081_v17  ;;  %v2559_v14 = vpop.eup %2558  ;;  %v1117_v25 = vadd.f32 1.0, %v2557_v9  ;;  %v1083_v19 = vmul.f32 1.442695, %v1988_v7  ;;  %v932_v10 = vadd.f32 %v894_v61, %v3515_v1  ;;  %v2173_v6 = vpop.f32.mrf.mxu1 }
 0x13a   :  { %v1131_v20 = vadd.f32 1.0, %v2559_v14  ;;  %v1059_v48 = vmul.f32 1.442695, %v1976_v62  ;;  %v906_v35 = vmul.f32 0.044715, %v868_v50  ;;  %v724_v21 = vpop.f32.mrf.mxu0  ;;  %v857_v36 = vmul.f32 %v819_v43, %v3534_v22 }
 0x13b   :  { %v2561_v41 = vpop.eup %2560  ;;  %2578 = vrcp.f32 %v1117_v25  ;;  %v1977_v28 = vmul.f32 -1.5957692, %v932_v10  ;;  %v3553_v29 = vadd.f32 %v3299_v34, %v719_v4  ;;  %v1226_v39 = vmul.f32 %v2553_v3, %v3361_v11 }
 0x13c   :  { %v2563_v60 = vpop.eup %2562  ;;  %2580 = vrcp.f32 %v1131_v20  ;;  %v944_v23 = vadd.f32 %v906_v35, %v3499_v30  ;;  %v831_v27 = vmul.f32 %v3549_v31, %v3549_v31  ;;  %v2148_v37 = vpop.f32.mrf.mxu0  ;;  %v895_v52 = vmul.f32 0.044715, %v857_v36 }
 0x13d   :  { %v3559_v12 = vpop.f32.mrf.mxu1  ;;  %v1118_v38 = vadd.f32 1.0, %v2563_v60  ;;  %2582 = vpow2.f32 %v1059_v48  ;;  %v1061_v2 = vmul.f32 1.442695, %v1977_v28  ;;  %v2565_v53 = vpop.eup %2564  ;;  %v3562_v46 = vmul.f32 %v2555_v40, %v3370_v32 }
 0x13e   :  { %2584 = vpow2.f32 %v1083_v19  ;;  %v1989_v17 = vmul.f32 -1.5957692, %v944_v23  ;;  %v869_v11 = vmul.f32 %v831_v27, %v3549_v31  ;;  %v727_v3 = vpop.f32.mrf.mxu0  ;;  %v3566_v4 = vmul.f32 %v2561_v41, %v3387_v63 }
 0x13f   :  { %v2176_v55 = vpop.f32.mrf.mxu1  ;;  %v2567_v56 = vpop.eup %2566  ;;  %2586 = vrcp.f32 %v1118_v38  ;;  %v933_v7 = vadd.f32 %v895_v52, %v3534_v22  ;;  %v820_v61 = vmul.f32 %v3553_v29, %v3553_v29  ;;  %v1261_v63 = vpack.c.bf16 %v1226_v39, %v3518_v24 }
 0x140   :  { %v1119_v9 = vadd.f32 1.0, %v2567_v56  ;;  %2588 = vpow2.f32 %v1061_v2  ;;  %v1085_v32 = vmul.f32 1.442695, %v1989_v17  ;;  %v907_v40 = vmul.f32 0.044715, %v869_v11  ;;  %v2149_v62 = vpop.f32.mrf.mxu0  ;;  %v2569_v42 = vpop.eup %2568 }
 0x141   :  { %v3571_v50 = vpop.f32.mrf.mxu1  ;;  %v1978_v14 = vmul.f32 -1.5957692, %v933_v7  ;;  %v858_v25 = vmul.f32 %v820_v61, %v3553_v29  ;;  %v3577_v19 = vadd.f32 %v3299_v34, %v3504_v15  ;;  %v3581_v6 = vadd.f32 %v3299_v34, %v724_v21  ;;  %2279 = vmatmul.mubr.msk.bf16.gmra.mxu0 %vm560_vm1, %v1261_v63 }
 0x142   :  { %2590 = vrcp.f32 %v1119_v9  ;;  %v945_v43 = vadd.f32 %v907_v40, %v3549_v31  ;;  %v3585_v20 = vadd.f32 %v3299_v34, %v3524_v44  ;;  %v3588_v41 = vmul.f32 %v2565_v53, %v3390_v18  ;;  %2282 = vmatprep.mubr.msk.bf16.mxu0 %vm2694_vm0, %v2693_v0 }
 0x143   :  { %v2571_v10 = vpop.eup %2570  ;;  %v2177_v48 = vpop.f32.mrf.mxu1  ;;  %2592 = vpow2.f32 %v1085_v32  ;;  %v1063_v24 = vmul.f32 1.442695, %v1978_v14  ;;  %v896_v15 = vmul.f32 0.044715, %v858_v25  ;;  %v832_v21 = vmul.f32 %v3577_v19, %v3577_v19 }
 0x144   :  { %v2573_v35 = vpop.eup %2572  ;;  %v1990_v60 = vmul.f32 -1.5957692, %v945_v43  ;;  %v821_v44 = vmul.f32 %v3581_v6, %v3581_v6  ;;  %v3600_v23 = vmul.f32 %v2569_v42, %v3402_v58  ;;  %v833_v37 = vmul.f32 %v3585_v20, %v3585_v20 }
 0x145   :  { %v2575_v28 = vpop.eup %2574  ;;  %v1120_v36 = vadd.f32 1.0, %v2573_v35  ;;  %v3597_v39 = vpop.f32.mrf.mxu1  ;;  %2594 = vpow2.f32 %v1063_v24  ;;  %v934_v27 = vadd.f32 %v896_v15, %v3553_v29  ;;  %v870_v52 = vmul.f32 %v832_v21, %v3577_v19 }
 0x146   :  { %v2577_v18 = vpop.eup %2576  ;;  %v1087_v2 = vmul.f32 1.442695, %v1990_v60  ;;  %v859_v11 = vmul.f32 %v821_v44, %v3581_v6  ;;  %v871_v55 = vmul.f32 %v833_v37, %v3585_v20  ;;  %v3609_v58 = vadd.f32 %v3299_v34, %v727_v3 }
 0x147   :  { %2596 = vrcp.f32 %v1120_v36  ;;  %v1132_v38 = vadd.f32 1.0, %v2577_v18  ;;  %v2180_v53 = vpop.f32.mrf.mxu1  ;;  %v1979_v17 = vmul.f32 -1.5957692, %v934_v27  ;;  %v3612_v7 = vmul.f32 %v2571_v10, %v3416_v49 }
 0x148   :  { %v2579_v56 = vpop.eup %2578  ;;  %v908_v61 = vmul.f32 0.044715, %v870_v52  ;;  %v1262_v9 = vpack.c.bf16 %v3566_v4, %v3562_v46  ;;  %v3618_v32 = vadd.f32 %v3299_v34, %v3538_v57  ;;  %v3623_v42 = vmul.f32 %v2575_v28, %v3410_v26 }
 0x149   :  { %v3620_v40 = vpop.f32.mrf.mxu1  ;;  %v2581_v62 = vpop.eup %2580  ;;  %2598 = vpow2.f32 %v1087_v2  ;;  %v1065_v3 = vmul.f32 1.442695, %v1979_v17  ;;  %v897_v14 = vmul.f32 0.044715, %v859_v11  ;;  %v909_v63 = vmul.f32 0.044715, %v871_v55 }
 0x14a   :  { %v2583_v25 = vpop.eup %2582  ;;  %2600 = vrcp.f32 %v1132_v38  ;;  %v946_v49 = vadd.f32 %v908_v61, %v3577_v19  ;;  %v822_v46 = vmul.f32 %v3609_v58, %v3609_v58  ;;  %2283 = vmatmul.mubr.msk.bf16.gmra.mxu0 %vm560_vm1, %v1262_v9  ;;  %v834_v26 = vmul.f32 %v3618_v32, %v3618_v32 }
 0x14b   :  { %v2181_v4 = vpop.f32.mrf.mxu1  ;;  %v2585_v57 = vpop.eup %2584  ;;  %v1121_v10 = vadd.f32 1.0, %v2583_v25  ;;  %2602 = vpow2.f32 %v1065_v3  ;;  %v935_v43 = vadd.f32 %v897_v14, %v3581_v6  ;;  %v947_v15 = vadd.f32 %v909_v63, %v3585_v20  ;;  %2286 = vmatprep.mubr.msk.bf16.mxu0 %vm2694_vm0, %v2693_v0 }
 0x14c   :  { %v2587_v48 = vpop.eup %2586  ;;  %v1133_v35 = vadd.f32 1.0, %v2585_v57  ;;  %v1991_v24 = vmul.f32 -1.5957692, %v946_v49  ;;  %v860_v28 = vmul.f32 %v822_v46, %v3609_v58  ;;  %v3637_v21 = vmul.f32 %v2579_v56, %v3439_v51 }
 0x14d   :  { %v796_v36 = vpop.f32.mrf.mxu1  ;;  %v2589_v60 = vpop.eup %2588  ;;  %2604 = vrcp.f32 %v1121_v10  ;;  %v1980_v44 = vmul.f32 -1.5957692, %v935_v43  ;;  %v872_v18 = vmul.f32 %v834_v26, %v3618_v32  ;;  %v1992_v38 = vmul.f32 -1.5957692, %v947_v15 }
 0x14e   :  { %2606 = vrcp.f32 %v1133_v35  ;;  %v1122_v27 = vadd.f32 1.0, %v2589_v60  ;;  %v1089_v37 = vmul.f32 1.442695, %v1991_v24  ;;  %v898_v17 = vmul.f32 0.044715, %v860_v28 }
 0x14f   :  { %v2184_v2 = vpop.f32.mrf.mxu1  ;;  %v2591_v52 = vpop.eup %2590  ;;  %v1067_v53 = vmul.f32 1.442695, %v1980_v44  ;;  %v910_v11 = vmul.f32 0.044715, %v872_v18  ;;  %v3642_v55 = vadd.f32 %v3299_v34, %v3559_v12  ;;  %v1232_v51 = vmul.f32 %v2587_v48, %v3455_v16 }
 0x150   :  { %v2593_v61 = vpop.eup %2592  ;;  %2608 = vrcp.f32 %v1122_v27  ;;  %v1091_v56 = vmul.f32 1.442695, %v1992_v38  ;;  %v1263_v9 = vpack.c.bf16 %v3612_v7, %v3600_v23  ;;  %v936_v25 = vadd.f32 %v898_v17, %v3609_v58 }
 0x151   :  { %v3647_v3 = vpop.f32.mrf.mxu1  ;;  %v1134_v14 = vadd.f32 1.0, %v2593_v61  ;;  %2610 = vpow2.f32 %v1089_v37  ;;  %v948_v49 = vadd.f32 %v910_v11, %v3618_v32  ;;  %v835_v12 = vmul.f32 %v3642_v55, %v3642_v55 }
 0x152   :  { %v2595_v63 = vpop.eup %2594  ;;  %2612 = vpow2.f32 %v1067_v53  ;;  %v3655_v16 = vadd.f32 %v3299_v34, %v3571_v50  ;;  %v3659_v23 = vadd.f32 %v3299_v34, %v3597_v39  ;;  %v3662_v4 = vmul.f32 %v2581_v62, %v3432_v59  ;;  %2287 = vmatmul.mubr.msk.bf16.gmra.mxu0 %vm560_vm1, %v1263_v9 }
 0x153   :  { %v2185_v7 = vpop.f32.mrf.mxu1  ;;  %2614 = vrcp.f32 %v1134_v14  ;;  %v1981_v57 = vmul.f32 -1.5957692, %v936_v25  ;;  %v1993_v10 = vmul.f32 -1.5957692, %v948_v49  ;;  %v3666_v43 = vmul.f32 %v2591_v52, %v3462_v47  ;;  %2290 = vmatprep.mubr.msk.bf16.mxu0 %vm2694_vm0, %v2693_v0 }
 0x154   :  { %v2597_v46 = vpop.eup %2596  ;;  %2616 = vpow2.f32 %v1091_v56  ;;  %v873_v50 = vmul.f32 %v835_v12, %v3642_v55  ;;  %v836_v39 = vmul.f32 %v3655_v16, %v3655_v16  ;;  %v1123_v26 = vadd.f32 1.0, %v2595_v63  ;;  %v2682_v7 = vld [vmem:[%s4166_s2] ss:$0 sm:$0xff] }
 0x155   :  { %v1069_v59 = vmul.f32 1.442695, %v1981_v57  ;;  %v1093_v62 = vmul.f32 1.442695, %v1993_v10  ;;  %v837_v48 = vmul.f32 %v3659_v23, %v3659_v23  ;;  %v3676_v24 = vmul.f32 %v2597_v46, %v3471_v8 }
 0x156   :  { %v2599_v35 = vpop.eup %2598  ;;  %v911_v47 = vmul.f32 0.044715, %v873_v50  ;;  %v874_v15 = vmul.f32 %v836_v39, %v3655_v16  ;;  %v1264_v28 = vpack.c.bf16 %v1232_v51, %v3637_v21  ;;  %v3683_v27 = vadd.f32 %v3299_v34, %v3620_v40 }
 0x157   :  { %v2601_v60 = vpop.eup %2600  ;;  %v1135_v44 = vadd.f32 1.0, %v2599_v35  ;;  %2618 = vpow2.f32 %v1069_v59  ;;  %v875_v18 = vmul.f32 %v837_v48, %v3659_v23  ;;  %v3687_v2 = vadd.f32 %v3299_v34, %v796_v36 }
 0x158   :  { %v2603_v37 = vpop.eup %2602  ;;  %2620 = vpow2.f32 %v1093_v62  ;;  %v949_v38 = vadd.f32 %v911_v47, %v3642_v55  ;;  %v912_v8 = vmul.f32 0.044715, %v874_v15  ;;  %v838_v53 = vmul.f32 %v3683_v27, %v3683_v27 }
 0x159   :  { %2622 = vrcp.f32 %v1123_v26  ;;  %v1124_v52 = vadd.f32 1.0, %v2603_v37  ;;  %v913_v21 = vmul.f32 0.044715, %v875_v18  ;;  %v839_v61 = vmul.f32 %v3687_v2, %v3687_v2 }
 0x15a   :  { %v2605_v17 = vpop.eup %2604  ;;  %2624 = vrcp.f32 %v1135_v44  ;;  %v1994_v11 = vmul.f32 -1.5957692, %v949_v38  ;;  %v950_v40 = vadd.f32 %v912_v8, %v3655_v16  ;;  %v3695_v56 = vmul.f32 %v2601_v60, %v3481_v33  ;;  %2291 = vmatmul.mubr.msk.bf16.gmra.mxu0 %vm560_vm1, %v1264_v28 }
 0x15b   :  { %v2607_v51 = vpop.eup %2606  ;;  %2626 = vrcp.f32 %v1124_v52  ;;  %v951_v34 = vadd.f32 %v913_v21, %v3659_v23  ;;  %v876_v36 = vmul.f32 %v838_v53, %v3683_v27  ;;  %v877_v25 = vmul.f32 %v839_v61, %v3687_v2  ;;  %2294 = vmatprep.mubr.msk.bf16.mxu0 %vm2694_vm0, %v2693_v0  ;;  %v3729_v21 = vpop.f32.mrf.mxu1 }
 0x15c   :  { %v1095_v9 = vmul.f32 1.442695, %v1994_v11  ;;  %v1995_v14 = vmul.f32 -1.5957692, %v950_v40  ;;  %v1265_v49 = vpack.c.bf16 %v3676_v24, %v3666_v43  ;;  %v3709_v46 = vadd.f32 %v2682_v7, %v3647_v3 }
 0x15d   :  { %v2609_v63 = vpop.eup %2608  ;;  %v1996_v33 = vmul.f32 -1.5957692, %v951_v34  ;;  %v914_v12 = vmul.f32 0.044715, %v876_v36  ;;  %v1269_v57 = vpack.c.bf16 %v3541_v13, %v3509_v5  ;;  %v1235_v50 = vmul.f32 %v2605_v17, %v3496_v54  ;;  %v2684_v34 = vld [vmem:[%s4163_s0 + $0xe8] sm:$0xff] }
 0x15e   :  { %v2611_v10 = vpop.eup %2610  ;;  %2628 = vpow2.f32 %v1095_v9  ;;  %v1097_v39 = vmul.f32 1.442695, %v1995_v14  ;;  %v915_v26 = vmul.f32 0.044715, %v877_v25  ;;  %v840_v35 = vmul.f32 %v3709_v46, %v3709_v46  ;;  %v2192_v9 = vpop.f32.mrf.mxu1 }
 0x15f   :  { %v2613_v43 = vpop.eup %2612  ;;  %v1136_v59 = vadd.f32 1.0, %v2611_v10  ;;  %v1099_v62 = vmul.f32 1.442695, %v1996_v33  ;;  %v952_v48 = vadd.f32 %v914_v12, %v3683_v27  ;;  %v3718_v3 = vmul.f32 %v2607_v51, %v3484_v45  ;;  %v2683_v51 = vld [vmem:[%s4163_s0 + $0xe0] sm:$0xff] }
 0x160   :  { %v2615_v24 = vpop.eup %2614  ;;  %v1125_v47 = vadd.f32 1.0, %v2613_v43  ;;  %2630 = vpow2.f32 %v1097_v39  ;;  %v953_v15 = vadd.f32 %v915_v26, %v3687_v2  ;;  %v878_v44 = vmul.f32 %v840_v35, %v3709_v46  ;;  %v3745_v12 = vpop.f32.mrf.mxu1 }
 0x161   :  { %v2617_v54 = vpop.eup %2616  ;;  %v3722_v28 = vmul.f32 %v2615_v24, %v3499_v30  ;;  %2632 = vrcp.f32 %v1136_v59  ;;  %v1997_v60 = vmul.f32 -1.5957692, %v952_v48  ;;  %v1270_v38 = vpack.c.bf16 %v3623_v42, %v3588_v41  ;;  %v2686_v59 = vld [vmem:[%s4163_s0 + $0xf8] sm:$0xff] }
 0x162   :  { %2634 = vrcp.f32 %v1125_v47  ;;  %v1137_v18 = vadd.f32 1.0, %v2617_v54  ;;  %v1998_v37 = vmul.f32 -1.5957692, %v953_v15  ;;  %v1236_v45 = vmul.f32 %v2609_v63, %v3515_v1  ;;  %2295 = vmatmul.mubr.msk.bf16.gmra.mxu0 %vm560_vm1, %v1265_v49  ;;  %v2193_v39 = vpop.f32.mrf.mxu1 }
 0x163   :  { %2636 = vpow2.f32 %v1099_v62  ;;  %v1101_v8 = vmul.f32 1.442695, %v1997_v60  ;;  %v916_v52 = vmul.f32 0.044715, %v878_v44  ;;  %2298 = vmatprep.mubr.msk.bf16.mxu0 %vm2694_vm0, %v2693_v0  ;;  %v1271_v17 = vpack.c.bf16 %v3695_v56, %v3662_v4 }
 0x164   :  { %v2619_v30 = vpop.eup %2618  ;;  %2638 = vrcp.f32 %v1137_v18  ;;  %v1103_v53 = vmul.f32 1.442695, %v1998_v37  ;;  %v1272_v11 = vpack.c.bf16 %v3722_v28, %v3718_v3  ;;  %v1296_v36 = vpack.c.bf16 %v2684_v34, %v2683_v51  ;;  %v3759_v35 = vpop.f32.mrf.mxu1 }
 0x165   :  { %v2621_v1 = vpop.eup %2620  ;;  %v1126_v40 = vadd.f32 1.0, %v2619_v30  ;;  %2640 = vpow2.f32 %v1101_v8  ;;  %v954_v61 = vadd.f32 %v916_v52, %v3709_v46  ;;  %v1266_v33 = vpack.c.bf16 %v1236_v45, %v1235_v50  ;;  %v2685_v50 = vld [vmem:[%s4163_s0 + $0xf0] sm:$0xff] }
 0x166   :  { %v2623_v14 = vpop.eup %2622  ;;  %v1138_v25 = vadd.f32 1.0, %v2621_v1  ;;  %2642 = vpow2.f32 %v1103_v53  ;;  %2247 = vmatmul.mubr.msk.bf16.gmra.mxu1 %vm560_vm1, %v1296_v36  ;;  %v1297_v62 = vpack.c.bf16 %v2686_v59, %v2685_v50  ;;  %v2196_v60 = vpop.f32.mrf.mxu1 }
 0x167   :  { %v2625_v49 = vpop.eup %2624  ;;  %2644 = vrcp.f32 %v1126_v40  ;;  %v1999_v63 = vmul.f32 -1.5957692, %v954_v61  ;;  %2250 = vmatprep.mubr.msk.bf16.mxu1 %vm2694_vm0, %v2693_v0  ;;  %v2687_v40 = vld [vmem:[%s4163_s0 + $0x100] sm:$0xff]  ;;  %v2688_v61 = vld [vmem:[%s4163_s0 + $0x108] sm:$0xff] }
 0x168   :  { %v2627_v7 = vpop.eup %2626  ;;  %2646 = vrcp.f32 %v1138_v25  ;;  %v3763_v47 = vmul.f32 %v2625_v49, %v3549_v31  ;;  %v1298_v51 = vpack.c.bf16 %v2688_v61, %v2687_v40 }
 0x169   :  { %v1105_v10 = vmul.f32 1.442695, %v1999_v63  ;;  %v1238_v43 = vmul.f32 %v2627_v7, %v3553_v29  ;;  %v1237_v29 = vmul.f32 %v2623_v14, %v3534_v22  ;;  %v3771_v22 = vpop.f32.mrf.mxu1 }
 0x16a   :  { %2299 = vmatmul.mubr.msk.bf16.gmra.mxu0 %vm560_vm1, %v1266_v33 }
 0x16b   :  { %v2629_v26 = vpop.eup %2628  ;;  %2648 = vpow2.f32 %v1105_v10  ;;  %2302 = vmatprep.mubr.msk.bf16.mxu0 %vm2694_vm0, %v2693_v0  ;;  %v1267_v37 = vpack.c.bf16 %v1238_v43, %v1237_v29  ;;  %v2197_v53 = vpop.f32.mrf.mxu1 }
 0x16c   :  { %v1139_v48 = vadd.f32 1.0, %v2629_v26 }
 0x16d   :  { %v2631_v24 = vpop.eup %2630  ;;  %v3804_v26 = vpop.f32.mrf.mxu1 }
 0x16e   :  { %v2633_v15 = vpop.eup %2632  ;;  %2650 = vrcp.f32 %v1139_v48  ;;  %v1140_v54 = vadd.f32 1.0, %v2631_v24  ;;  %2251 = vmatmul.mubr.msk.bf16.gmra.mxu1 %vm560_vm1, %v1297_v62 }
 0x16f   :  { %v2635_v44 = vpop.eup %2634  ;;  %v3766_v18 = vmul.f32 %v2633_v15, %v3577_v19  ;;  %2254 = vmatprep.mubr.msk.bf16.mxu1 %vm2694_vm0, %v2693_v0  ;;  %v2200_v59 = vpop.f32.mrf.mxu1 }
 0x170   :  { %v2637_v45 = vpop.eup %2636  ;;  %2652 = vrcp.f32 %v1140_v54  ;;  %v1239_v25 = vmul.f32 %v2635_v44, %v3581_v6  ;;  %v2689_v6 = vld [vmem:[%s4163_s0 + $0x110] sm:$0xff]  ;;  %v2692_v44 = vld [vmem:[%s4163_s0 + $0x128] sm:$0xf] }
 0x171   :  { %v2639_v31 = vpop.eup %2638  ;;  %v1141_v8 = vadd.f32 1.0, %v2637_v45  ;;  %v1273_v52 = vpack.c.bf16 %v3766_v18, %v3763_v47  ;;  %v3811_v48 = vpop.f32.mrf.mxu1 }
 0x172   :  { %v2641_v30 = vpop.eup %2640  ;;  %2303 = vmatmul.mubr.msk.bf16.gmra.mxu0 %vm560_vm1, %v1267_v37  ;;  %v3783_v36 = vmul.f32 %v2639_v31, %v3585_v20 }
 0x173   :  { %v2643_v1 = vpop.eup %2642  ;;  %2654 = vrcp.f32 %v1141_v8  ;;  %v1142_v19 = vadd.f32 1.0, %v2641_v30  ;;  %2306 = vmatprep.mubr.msk.bf16.mxu0 %vm2694_vm0, %v2693_v0  ;;  %v2201_v54 = vpop.f32.mrf.mxu1 }
 0x174   :  { %v2645_v34 = vpop.eup %2644  ;;  %v1143_v9 = vadd.f32 1.0, %v2643_v1 }
 0x175   :  { %v2647_v14 = vpop.eup %2646  ;;  %v1240_v49 = vmul.f32 %v2645_v34, %v3609_v58  ;;  %2656 = vrcp.f32 %v1142_v19  ;;  %v2690_v58 = vld [vmem:[%s4163_s0 + $0x118] sm:$0xff]  ;;  %v3831_v13 = vpop.f32.mrf.mxu1 }
 0x176   :  { %v3790_v63 = vmul.f32 %v2647_v14, %v3618_v32  ;;  %2658 = vrcp.f32 %v1143_v9  ;;  %2255 = vmatmul.mubr.msk.bf16.gmra.mxu1 %vm560_vm1, %v1298_v51  ;;  %v1299_v32 = vpack.c.bf16 %v2690_v58, %v2689_v6 }
 0x177   :  { %v1268_v33 = vpack.c.bf16 %v1240_v49, %v1239_v25  ;;  %2258 = vmatprep.mubr.msk.bf16.mxu1 %vm2694_vm0, %v2693_v0  ;;  %v2204_v31 = vpop.f32.mrf.mxu1 }
 0x178   :  { %v2649_v7 = vpop.eup %2648  ;;  %v1274_v20 = vpack.c.bf16 %v3790_v63, %v3783_v36 }
 0x179   :  { %v1144_v10 = vadd.f32 1.0, %v2649_v7  ;;  %v3840_v30 = vpop.f32.mrf.mxu1 }
 0x17a   :  { %2307 = vmatmul.mubr.msk.bf16.gmra.mxu0 %vm560_vm1, %v1268_v33 }
 0x17b   :  { %v2651_v39 = vpop.eup %2650  ;;  %2660 = vrcp.f32 %v1144_v10  ;;  %2310 = vmatprep.mubr.msk.bf16.mxu0 %vm2694_vm0, %v2693_v0 }
 0x17c   :  { %v1253_v43 = vmul.f32 %v2651_v39, %v3642_v55 }
 0x17d   :  { %v2653_v50 = vpop.eup %2652 }
 0x17e   :  { %v1254_v62 = vmul.f32 %v2653_v50, %v3655_v16  ;;  %2259 = vmatmul.mubr.msk.bf16.gmra.mxu1 %vm560_vm1, %v1299_v32  ;;  %v2691_v16 = vld [vmem:[%s4163_s0 + $0x120] sm:$0xff] }
 0x17f   :  { %2262 = vmatprep.mubr.msk.bf16.mxu1 %vm2694_vm0, %v2693_v0  ;;  %v1300_v37 = vpack.c.bf16 %v2692_v44, %v2691_v16 }
 0x180   :  { %v2655_v24 = vpop.eup %2654  ;;  %v1275_v29 = vpack.c.bf16 %v1254_v62, %v1253_v43 }
 0x181   :  { %v1255_v15 = vmul.f32 %v2655_v24, %v3659_v23 }
 0x182   :  { %v2657_v55 = vpop.eup %2656  ;;  %2311 = vmatmul.mubr.msk.bf16.gmra.mxu0 %vm560_vm1, %v1269_v57 }
 0x183   :  { %v1256_v60 = vmul.f32 %v2657_v55, %v3683_v27  ;;  %v2659_v45 = vpop.eup %2658  ;;  %2314 = vmatprep.mubr.msk.bf16.mxu0 %vm2694_vm0, %v2693_v0 }
 0x184   :  { %v1257_v27 = vmul.f32 %v2659_v45, %v3687_v2  ;;  %v2205_v2 = vpop.f32.mrf.mxu1 }
 0x185   :  { %v1276_v23 = vpack.c.bf16 %v1256_v60, %v1255_v15  ;;  %v3913_v15 = vld [vmem:[%s4167_s4] ss:$0 sm:$0xff] }
 0x186   :  { %2263 = vmatmul.mubr.msk.bf16.gmra.mxu1 %vm560_vm1, %v1300_v37  ;;  %v3842_v53 = vpop.f32.mrf.mxu1 }
 0x188   :  { %v2661_v5 = vpop.eup %2660  ;;  %v2208_v1 = vpop.f32.mrf.mxu1 }
 0x189   :  { %v1258_v57 = vmul.f32 %v2661_v5, %v3709_v46 }
 0x18a   :  { %2315 = vmatmul.mubr.msk.bf16.gmra.mxu0 %vm560_vm1, %v1270_v38  ;;  %v3850_v41 = vpop.f32.mrf.mxu1 }
 0x18b   :  { %v1277_v8 = vpack.c.bf16 %v1258_v57, %v1257_v27  ;;  %2318 = vmatprep.mubr.msk.bf16.mxu0 %vm2694_vm0, %v2693_v0 }
 0x18c   :  { %v2209_v42 = vpop.f32.mrf.mxu1 }
 0x18e   :  { %v3852_v46 = vpop.f32.mrf.mxu1 }
 0x190   :  { %v2212_v38 = vpop.f32.mrf.mxu1 }
 0x192   :  { %2319 = vmatmul.mubr.msk.bf16.gmra.mxu0 %vm560_vm1, %v1271_v17  ;;  %v3860_v4 = vpop.f32.mrf.mxu1 }
 0x193   :  { %2322 = vmatprep.mubr.msk.bf16.mxu0 %vm2694_vm0, %v2693_v0 }
 0x194   :  { %v2213_v56 = vpop.f32.mrf.mxu1 }
 0x196   :  { %v3862_v17 = vpop.f32.mrf.mxu1 }
 0x198   :  { %v2216_v19 = vpop.f32.mrf.mxu1 }
 0x19a   :  { %2323 = vmatmul.mubr.msk.bf16.gmra.mxu0 %vm560_vm1, %v1272_v11  ;;  %v3870_v3 = vpop.f32.mrf.mxu1 }
 0x19b   :  { %2326 = vmatprep.mubr.msk.bf16.mxu0 %vm2694_vm0, %v2693_v0 }
 0x19c   :  { %v2217_v28 = vpop.f32.mrf.mxu1 }
 0x19e   :  { %v3872_v11 = vpop.f32.mrf.mxu1 }
 0x1a0   :  { %v2220_v40 = vpop.f32.mrf.mxu1 }
 0x1a2   :  { %2327 = vmatmul.mubr.msk.bf16.gmra.mxu0 %vm560_vm1, %v1273_v52  ;;  %v3877_v61 = vpop.f32.mrf.mxu1 }
 0x1a3   :  { %2330 = vmatprep.mubr.msk.bf16.mxu0 %vm2694_vm0, %v2693_v0 }
 0x1a4   :  { %v2221_v51 = vpop.f32.mrf.mxu1 }
 0x1a6   :  { %v3879_v47 = vpop.f32.mrf.mxu1 }
 0x1a8   :  { %v2224_v18 = vpop.f32.mrf.mxu1 }
 0x1aa   :  { %2331 = vmatmul.mubr.msk.bf16.gmra.mxu0 %vm560_vm1, %v1274_v20  ;;  %v3884_v52 = vpop.f32.mrf.mxu1 }
 0x1ab   :  { %2334 = vmatprep.mubr.msk.bf16.mxu0 %vm2694_vm0, %v2693_v0 }
 0x1ac   :  { %v2225_v34 = vpop.f32.mrf.mxu1 }
 0x1ae   :  { %v3886_v36 = vpop.f32.mrf.mxu1 }
 0x1b0   :  { %v2228_v9 = vpop.f32.mrf.mxu1 }
 0x1b2   :  { %2335 = vmatmul.mubr.msk.bf16.gmra.mxu0 %vm560_vm1, %v1275_v29  ;;  %v3891_v14 = vpop.f32.mrf.mxu1 }
 0x1b3   :  { %2338 = vmatprep.mubr.msk.bf16.mxu0 %vm2694_vm0, %v2693_v0 }
 0x1b4   :  { %v2229_v25 = vpop.f32.mrf.mxu1 }
 0x1b6   :  { %v3893_v49 = vpop.f32.mrf.mxu1 }
 0x1b8   :  { %v2232_v63 = vpop.f32.mrf.mxu1 }
 0x1ba   :  { %2339 = vmatmul.mubr.msk.bf16.gmra.mxu0 %vm560_vm1, %v1276_v23  ;;  %v3896_v33 = vpop.f32.mrf.mxu1 }
 0x1bb   :  { %2342 = vmatprep.mubr.msk.bf16.mxu0 %vm2694_vm0, %v2693_v0 }
 0x1bc   :  { %v2233_v7 = vpop.f32.mrf.mxu1 }
 0x1c0   :  { %v3898_v20 = vpop.f32.mrf.mxu1 }
 0x1c2   :  { %2343 = vmatmul.mubr.msk.bf16.gmra.mxu0 %vm560_vm1, %v1277_v8  ;;  %v2236_v10 = vpop.f32.mrf.mxu1 }
 0x1c4   :  { %v3900_v39 = vpop.f32.mrf.mxu1 }
 0x1c6   :  { %v2237_v6 = vpop.f32.mrf.mxu1 }
 0x1c8   :  { %v3902_v58 = vpop.f32.mrf.mxu1 }
 0x1ca   :  { %v2240_v0 = vpop.f32.mrf.mxu1 }
 0x1cc   :  { %v3904_v32 = vpop.f32.mrf.mxu1 }
 0x1ce   :  { %v2241_v43 = vpop.f32.mrf.mxu1 }
 0x1d2   :  { %v3906_v50 = vpop.f32.mrf.mxu1 }
 0x1d4   :  { %v2244_v59 = vpop.f32.mrf.mxu1 }
 0x1d6   :  { %v3908_v62 = vpop.f32.mrf.mxu1 }
 0x1d8   :  { %v2245_v24 = vpop.f32.mrf.mxu1 }
 0x1e7   :  { %v1662_v29 = vpop.f32.mrf.mxu0 }
 0x1e8   :  { %v1663_v54 = vadd.f32 %v1662_v29, %v3729_v21 }
 0x1e9   :  { %v2272_v55 = vpop.f32.mrf.mxu0 }
 0x1ea   :  { %v1820_v60 = vadd.f32 %v3913_v15, %v1663_v54 }
 0x1eb   :  { %v1665_v16 = vpop.f32.mrf.mxu0 }
 0x1ec   :  { %1859 = vst.msk [vmem:[%s4168_s6] sm:$0xff] %vm1858_vm2, %v1820_v60  ;;  %v1666_v44 = vadd.f32 %v1665_v16, %v3745_v12 }
 0x1ed   :  { %v2273_v37 = vpop.f32.mrf.mxu0 }
 0x1ee   :  { %v1821_v45 = vadd.f32 %v3913_v15, %v1666_v44 }
 0x1f0   :  { %1860 = vst.msk [vmem:[%s4168_s6 + $0x8] sm:$0xff] %vm1858_vm2, %v1821_v45 }
 0x1f4   :  { %v1670_v21 = vpop.f32.mrf.mxu0 }
 0x1f5   :  { %v1671_v23 = vadd.f32 %v1670_v21, %v3759_v35 }
 0x1f6   :  { %v2276_v27 = vpop.f32.mrf.mxu0 }
 0x1f7   :  { %v1822_v5 = vadd.f32 %v3913_v15, %v1671_v23 }
 0x1f8   :  { %v1673_v57 = vpop.f32.mrf.mxu0 }
 0x1f9   :  { %1861 = vst.msk [vmem:[%s4168_s6 + $0x10] sm:$0xff] %vm1858_vm2, %v1822_v5  ;;  %v1674_v12 = vadd.f32 %v1673_v57, %v3771_v22 }
 0x1fa   :  { %v2277_v31 = vpop.f32.mrf.mxu0 }
 0x1fb   :  { %v1823_v8 = vadd.f32 %v3913_v15, %v1674_v12 }
 0x1fd   :  { %1862 = vst.msk [vmem:[%s4168_s6 + $0x18] sm:$0xff] %vm1858_vm2, %v1823_v8 }
 0x201   :  { %v1678_v35 = vpop.f32.mrf.mxu0 }
 0x202   :  { %v1679_v2 = vadd.f32 %v1678_v35, %v3804_v26 }
 0x203   :  { %v2280_v1 = vpop.f32.mrf.mxu0 }
 0x204   :  { %v1824_v42 = vadd.f32 %v3913_v15, %v1679_v2 }
 0x205   :  { %v1681_v38 = vpop.f32.mrf.mxu0 }
 0x206   :  { %1863 = vst.msk [vmem:[%s4168_s6 + $0x20] sm:$0xff] %vm1858_vm2, %v1824_v42  ;;  %v1682_v22 = vadd.f32 %v1681_v38, %v3811_v48 }
 0x207   :  { %v2281_v56 = vpop.f32.mrf.mxu0 }
 0x208   :  { %v1825_v19 = vadd.f32 %v3913_v15, %v1682_v22 }
 0x20a   :  { %v1686_v28 = vpop.f32.mrf.mxu0  ;;  %1864 = vst.msk [vmem:[%s4168_s6 + $0x28] sm:$0xff] %vm1858_vm2, %v1825_v19 }
 0x20b   :  { %v1687_v26 = vadd.f32 %v1686_v28, %v3831_v13 }
 0x20c   :  { %v2284_v40 = vpop.f32.mrf.mxu0 }
 0x20d   :  { %v1826_v51 = vadd.f32 %v3913_v15, %v1687_v26 }
 0x20e   :  { %v1689_v18 = vpop.f32.mrf.mxu0 }
 0x20f   :  { %1865 = vst.msk [vmem:[%s4168_s6 + $0x30] sm:$0xff] %vm1858_vm2, %v1826_v51  ;;  %v1690_v48 = vadd.f32 %v1689_v18, %v3840_v30 }
 0x210   :  { %v2285_v34 = vpop.f32.mrf.mxu0 }
 0x211   :  { %v1827_v9 = vadd.f32 %v3913_v15, %v1690_v48 }
 0x212   :  { %v1694_v25 = vpop.f32.mrf.mxu0 }
 0x213   :  { %1866 = vst.msk [vmem:[%s4168_s6 + $0x38] sm:$0xff] %vm1858_vm2, %v1827_v9  ;;  %v1695_v13 = vadd.f32 %v1694_v25, %v3842_v53 }
 0x214   :  { %v2288_v63 = vpop.f32.mrf.mxu0 }
 0x215   :  { %v1828_v7 = vadd.f32 %v3913_v15, %v1695_v13 }
 0x216   :  { %v1697_v10 = vpop.f32.mrf.mxu0 }
 0x217   :  { %1867 = vst.msk [vmem:[%s4168_s6 + $0x40] sm:$0xff] %vm1858_vm2, %v1828_v7  ;;  %v1698_v30 = vadd.f32 %v1697_v10, %v3850_v41 }
 0x218   :  { %v2289_v6 = vpop.f32.mrf.mxu0 }
 0x219   :  { %v1829_v0 = vadd.f32 %v3913_v15, %v1698_v30 }
 0x21a   :  { %v1702_v43 = vpop.f32.mrf.mxu0 }
 0x21b   :  { %1868 = vst.msk [vmem:[%s4168_s6 + $0x48] sm:$0xff] %vm1858_vm2, %v1829_v0  ;;  %v1703_v53 = vadd.f32 %v1702_v43, %v3852_v46 }
 0x21c   :  { %v2292_v59 = vpop.f32.mrf.mxu0 }
 0x21d   :  { %v1830_v24 = vadd.f32 %v3913_v15, %v1703_v53 }
 0x21e   :  { %v1705_v29 = vpop.f32.mrf.mxu0 }
 0x21f   :  { %1869 = vst.msk [vmem:[%s4168_s6 + $0x50] sm:$0xff] %vm1858_vm2, %v1830_v24  ;;  %v1706_v41 = vadd.f32 %v1705_v29, %v3860_v4 }
 0x220   :  { %v2293_v54 = vpop.f32.mrf.mxu0 }
 0x221   :  { %v1831_v55 = vadd.f32 %v3913_v15, %v1706_v41 }
 0x222   :  { %v1710_v60 = vpop.f32.mrf.mxu0 }
 0x223   :  { %1870 = vst.msk [vmem:[%s4168_s6 + $0x58] sm:$0xff] %vm1858_vm2, %v1831_v55  ;;  %v1711_v46 = vadd.f32 %v1710_v60, %v3862_v17 }
 0x224   :  { %v2296_v16 = vpop.f32.mrf.mxu0 }
 0x225   :  { %v1832_v44 = vadd.f32 %v3913_v15, %v1711_v46 }
 0x226   :  { %v1713_v37 = vpop.f32.mrf.mxu0  ;;  %v3989_v45 = vpop.f32.mrf.mxu1 }
 0x227   :  { %1871 = vst.msk [vmem:[%s4168_s6 + $0x60] sm:$0xff] %vm1858_vm2, %v1832_v44  ;;  %v1714_v4 = vadd.f32 %v1713_v37, %v3870_v3 }
 0x228   :  { %v2297_v21 = vpop.f32.mrf.mxu0  ;;  %v2248_v23 = vpop.f32.mrf.mxu1 }
 0x229   :  { %v1833_v27 = vadd.f32 %v3913_v15, %v1714_v4 }
 0x22a   :  { %v1718_v5 = vpop.f32.mrf.mxu0  ;;  %v3997_v57 = vpop.f32.mrf.mxu1 }
 0x22b   :  { %1872 = vst.msk [vmem:[%s4168_s6 + $0x68] sm:$0xff] %vm1858_vm2, %v1833_v27  ;;  %v1719_v17 = vadd.f32 %v1718_v5, %v3872_v11 }
 0x22c   :  { %v2300_v12 = vpop.f32.mrf.mxu0  ;;  %v2249_v31 = vpop.f32.mrf.mxu1 }
 0x22d   :  { %v1834_v8 = vadd.f32 %v3913_v15, %v1719_v17 }
 0x22e   :  { %v1721_v35 = vpop.f32.mrf.mxu0  ;;  %v4005_v3 = vpop.f32.mrf.mxu1 }
 0x22f   :  { %1873 = vst.msk [vmem:[%s4168_s6 + $0x70] sm:$0xff] %vm1858_vm2, %v1834_v8  ;;  %v1722_v2 = vadd.f32 %v1721_v35, %v3877_v61 }
 0x230   :  { %v2301_v1 = vpop.f32.mrf.mxu0  ;;  %v2252_v42 = vpop.f32.mrf.mxu1 }
 0x231   :  { %v1835_v38 = vadd.f32 %v3913_v15, %v1722_v2 }
 0x232   :  { %v1726_v22 = vpop.f32.mrf.mxu0  ;;  %v4013_v11 = vpop.f32.mrf.mxu1 }
 0x233   :  { %1874 = vst.msk [vmem:[%s4168_s6 + $0x78] sm:$0xff] %vm1858_vm2, %v1835_v38  ;;  %v1727_v56 = vadd.f32 %v1726_v22, %v3879_v47 }
 0x234   :  { %v2304_v19 = vpop.f32.mrf.mxu0  ;;  %v2253_v28 = vpop.f32.mrf.mxu1 }
 0x235   :  { %v1836_v26 = vadd.f32 %v3913_v15, %v1727_v56 }
 0x236   :  { %v1729_v40 = vpop.f32.mrf.mxu0  ;;  %v4021_v61 = vpop.f32.mrf.mxu1 }
 0x237   :  { %1875 = vst.msk [vmem:[%s4168_s6 + $0x80] sm:$0xff] %vm1858_vm2, %v1836_v26  ;;  %v1730_v51 = vadd.f32 %v1729_v40, %v3884_v52 }
 0x238   :  { %v2305_v18 = vpop.f32.mrf.mxu0  ;;  %v2256_v48 = vpop.f32.mrf.mxu1 }
 0x239   :  { %v1837_v34 = vadd.f32 %v3913_v15, %v1730_v51 }
 0x23a   :  { %v1734_v9 = vpop.f32.mrf.mxu0  ;;  %v4029_v47 = vpop.f32.mrf.mxu1 }
 0x23b   :  { %1876 = vst.msk [vmem:[%s4168_s6 + $0x88] sm:$0xff] %vm1858_vm2, %v1837_v34  ;;  %v1735_v25 = vadd.f32 %v1734_v9, %v3886_v36 }
 0x23c   :  { %v2308_v13 = vpop.f32.mrf.mxu0  ;;  %v2257_v63 = vpop.f32.mrf.mxu1 }
 0x23d   :  { %v1838_v7 = vadd.f32 %v3913_v15, %v1735_v25 }
 0x23e   :  { %v1737_v10 = vpop.f32.mrf.mxu0  ;;  %v4037_v52 = vpop.f32.mrf.mxu1 }
 0x23f   :  { %1877 = vst.msk [vmem:[%s4168_s6 + $0x90] sm:$0xff] %vm1858_vm2, %v1838_v7  ;;  %v1738_v30 = vadd.f32 %v1737_v10, %v3891_v14 }
 0x240   :  { %v2309_v6 = vpop.f32.mrf.mxu0  ;;  %v2260_v0 = vpop.f32.mrf.mxu1 }
 0x241   :  { %v1839_v43 = vadd.f32 %v3913_v15, %v1738_v30 }
 0x242   :  { %v1742_v53 = vpop.f32.mrf.mxu0  ;;  %v4045_v36 = vpop.f32.mrf.mxu1 }
 0x243   :  { %1878 = vst.msk [vmem:[%s4168_s6 + $0x98] sm:$0xff] %vm1858_vm2, %v1839_v43  ;;  %v1743_v59 = vadd.f32 %v1742_v53, %v3893_v49 }
 0x244   :  { %v2312_v24 = vpop.f32.mrf.mxu0  ;;  %v2261_v29 = vpop.f32.mrf.mxu1 }
 0x245   :  { %v1840_v41 = vadd.f32 %v3913_v15, %v1743_v59 }
 0x246   :  { %v1745_v54 = vpop.f32.mrf.mxu0  ;;  %v4053_v14 = vpop.f32.mrf.mxu1 }
 0x247   :  { %1879 = vst.msk [vmem:[%s4168_s6 + $0xa0] sm:$0xff] %vm1858_vm2, %v1840_v41  ;;  %v1746_v55 = vadd.f32 %v1745_v54, %v3896_v33 }
 0x248   :  { %v2313_v60 = vpop.f32.mrf.mxu0  ;;  %v2264_v46 = vpop.f32.mrf.mxu1 }
 0x249   :  { %v1841_v16 = vadd.f32 %v3913_v15, %v1746_v55 }
 0x24a   :  { %v1750_v44 = vpop.f32.mrf.mxu0  ;;  %v4061_v49 = vpop.f32.mrf.mxu1 }
 0x24b   :  { %1880 = vst.msk [vmem:[%s4168_s6 + $0xa8] sm:$0xff] %vm1858_vm2, %v1841_v16  ;;  %v1751_v37 = vadd.f32 %v1750_v44, %v3898_v20 }
 0x24c   :  { %v2316_v4 = vpop.f32.mrf.mxu0  ;;  %v2265_v21 = vpop.f32.mrf.mxu1 }
 0x24d   :  { %v1842_v23 = vadd.f32 %v3913_v15, %v1751_v37 }
 0x24e   :  { %v1753_v27 = vpop.f32.mrf.mxu0 }
 0x24f   :  { %1881 = vst.msk [vmem:[%s4168_s6 + $0xb0] sm:$0xff] %vm1858_vm2, %v1842_v23  ;;  %v1754_v33 = vadd.f32 %v1753_v27, %v3900_v39 }
 0x250   :  { %v2317_v5 = vpop.f32.mrf.mxu0 }
 0x251   :  { %v1843_v17 = vadd.f32 %v3913_v15, %v1754_v33 }
 0x252   :  { %v1758_v12 = vpop.f32.mrf.mxu0 }
 0x253   :  { %1882 = vst.msk [vmem:[%s4168_s6 + $0xb8] sm:$0xff] %vm1858_vm2, %v1843_v17  ;;  %v1759_v20 = vadd.f32 %v1758_v12, %v3902_v58 }
 0x254   :  { %v2320_v31 = vpop.f32.mrf.mxu0 }
 0x255   :  { %v1844_v8 = vadd.f32 %v3913_v15, %v1759_v20 }
 0x256   :  { %v1761_v35 = vpop.f32.mrf.mxu0 }
 0x257   :  { %1883 = vst.msk [vmem:[%s4168_s6 + $0xc0] sm:$0xff] %vm1858_vm2, %v1844_v8  ;;  %v1762_v39 = vadd.f32 %v1761_v35, %v3904_v32 }
 0x258   :  { %v2321_v2 = vpop.f32.mrf.mxu0 }
 0x259   :  { %v1845_v1 = vadd.f32 %v3913_v15, %v1762_v39 }
 0x25a   :  { %v1766_v42 = vpop.f32.mrf.mxu0 }
 0x25b   :  { %1884 = vst.msk [vmem:[%s4168_s6 + $0xc8] sm:$0xff] %vm1858_vm2, %v1845_v1  ;;  %v1767_v58 = vadd.f32 %v1766_v42, %v3906_v50 }
 0x25c   :  { %v2324_v38 = vpop.f32.mrf.mxu0 }
 0x25d   :  { %v1846_v22 = vadd.f32 %v3913_v15, %v1767_v58 }
 0x25e   :  { %v1769_v56 = vpop.f32.mrf.mxu0 }
 0x25f   :  { %1885 = vst.msk [vmem:[%s4168_s6 + $0xd0] sm:$0xff] %vm1858_vm2, %v1846_v22  ;;  %v1770_v32 = vadd.f32 %v1769_v56, %v3908_v62 }
 0x260   :  { %v2325_v19 = vpop.f32.mrf.mxu0 }
 0x261   :  { %v1847_v28 = vadd.f32 %v3913_v15, %v1770_v32 }
 0x262   :  { %v1774_v26 = vpop.f32.mrf.mxu0 }
 0x263   :  { %1886 = vst.msk [vmem:[%s4168_s6 + $0xd8] sm:$0xff] %vm1858_vm2, %v1847_v28  ;;  %v1775_v50 = vadd.f32 %v1774_v26, %v3989_v45 }
 0x264   :  { %v2328_v40 = vpop.f32.mrf.mxu0 }
 0x265   :  { %v1848_v51 = vadd.f32 %v3913_v15, %v1775_v50 }
 0x266   :  { %v1777_v18 = vpop.f32.mrf.mxu0 }
 0x267   :  { %1887 = vst.msk [vmem:[%s4168_s6 + $0xe0] sm:$0xff] %vm1858_vm2, %v1848_v51  ;;  %v1778_v62 = vadd.f32 %v1777_v18, %v3997_v57 }
 0x268   :  { %v2329_v48 = vpop.f32.mrf.mxu0 }
 0x269   :  { %v1849_v34 = vadd.f32 %v3913_v15, %v1778_v62 }
 0x26a   :  { %v1782_v9 = vpop.f32.mrf.mxu0 }
 0x26b   :  { %1888 = vst.msk [vmem:[%s4168_s6 + $0xe8] sm:$0xff] %vm1858_vm2, %v1849_v34  ;;  %v1783_v45 = vadd.f32 %v1782_v9, %v4005_v3 }
 0x26c   :  { %v2332_v25 = vpop.f32.mrf.mxu0 }
 0x26d   :  { %v1850_v13 = vadd.f32 %v3913_v15, %v1783_v45 }
 0x26e   :  { %v1785_v63 = vpop.f32.mrf.mxu0 }
 0x26f   :  { %1889 = vst.msk [vmem:[%s4168_s6 + $0xf0] sm:$0xff] %vm1858_vm2, %v1850_v13  ;;  %v1786_v57 = vadd.f32 %v1785_v63, %v4013_v11 }
 0x270   :  { %v2333_v7 = vpop.f32.mrf.mxu0 }
 0x271   :  { %v1851_v10 = vadd.f32 %v3913_v15, %v1786_v57 }
 0x272   :  { %v1790_v30 = vpop.f32.mrf.mxu0 }
 0x273   :  { %1890 = vst.msk [vmem:[%s4168_s6 + $0xf8] sm:$0xff] %vm1858_vm2, %v1851_v10  ;;  %v1791_v3 = vadd.f32 %v1790_v30, %v4021_v61 }
 0x274   :  { %v2336_v6 = vpop.f32.mrf.mxu0 }
 0x275   :  { %v1852_v0 = vadd.f32 %v3913_v15, %v1791_v3 }
 0x276   :  { %v1793_v43 = vpop.f32.mrf.mxu0 }
 0x277   :  { %1891 = vst.msk [vmem:[%s4168_s6 + $0x100] sm:$0xff] %vm1858_vm2, %v1852_v0  ;;  %v1794_v11 = vadd.f32 %v1793_v43, %v4029_v47 }
 0x278   :  { %v2337_v53 = vpop.f32.mrf.mxu0 }
 0x279   :  { %v1853_v59 = vadd.f32 %v3913_v15, %v1794_v11 }
 0x27a   :  { %v1798_v24 = vpop.f32.mrf.mxu0 }
 0x27b   :  { %1892 = vst.msk [vmem:[%s4168_s6 + $0x108] sm:$0xff] %vm1858_vm2, %v1853_v59  ;;  %v1799_v61 = vadd.f32 %v1798_v24, %v4037_v52 }
 0x27c   :  { %v2340_v29 = vpop.f32.mrf.mxu0 }
 0x27d   :  { %v1854_v41 = vadd.f32 %v3913_v15, %v1799_v61 }
 0x27e   :  { %v1801_v54 = vpop.f32.mrf.mxu0 }
 0x27f   :  { %1893 = vst.msk [vmem:[%s4168_s6 + $0x110] sm:$0xff] %vm1858_vm2, %v1854_v41  ;;  %v1802_v47 = vadd.f32 %v1801_v54, %v4045_v36 }
 0x280   :  { %v2341_v55 = vpop.f32.mrf.mxu0 }
 0x281   :  { %v1855_v60 = vadd.f32 %v3913_v15, %v1802_v47 }
 0x282   :  { %v1806_v46 = vpop.f32.mrf.mxu0 }
 0x283   :  { %1894 = vst.msk [vmem:[%s4168_s6 + $0x118] sm:$0xff] %vm1858_vm2, %v1855_v60  ;;  %v1807_v52 = vadd.f32 %v1806_v46, %v4053_v14 }
 0x284   :  { %v2344_v16 = vpop.f32.mrf.mxu0 }
 0x285   :  { %v1856_v44 = vadd.f32 %v3913_v15, %v1807_v52 }
 0x286   :  { %v1809_v37 = vpop.f32.mrf.mxu0 }
 0x287   :  { %1895 = vst.msk [vmem:[%s4168_s6 + $0x120] sm:$0xff] %vm1858_vm2, %v1856_v44  ;;  %v1810_v36 = vadd.f32 %v1809_v37, %v4061_v49 }
 0x288   :  { %v2345_v4 = vpop.f32.mrf.mxu0 }
 0x289   :  { %v1857_v21 = vadd.f32 %v3913_v15, %v1810_v36 }
 0x28b   :  { %1897 = vst.msk [vmem:[%s4168_s6 + $0x128] sm:$0xf] %vm1896_vm3, %v1857_v21 }

// kernel: tpu_custom_call.1
= control target key start
LH: loop header
LB: loop body
LE: loop exit
PB: predicated region body
PF: predicated region fallthrough
CT: control target
= control target key end

     0   :  { %v2693_v0 = vmov 0.0   ;;  %vm2694_vm0 = vmmov 0   ;;  %vm560_vm1 = vcmask 261120   ;;  %vm1858_vm2 = vcmask 523264   ;;  %s4162_s1 = inlined_call_operand.vmem [shape: bf16[32,32], index: 1, kind: input, shape index: {}]   ;;  %s4163_s0 = inlined_call_operand.vmem [shape: f32[300,32], index: 0, kind: input, shape index: {}]   ;;  %s4164_s3 = inlined_call_operand.vmem [shape: bf16[32,64], index: 3, kind: input, shape index: {}]   ;;  %s4165_s5 = inlined_call_operand.vmem [shape: bf16[32,64], index: 5, kind: input, shape index: {}]   ;;  %s4166_s2 = inlined_call_operand.vmem [shape: f32[1,32], index: 2, kind: input, shape index: {}]   ;;  %s4167_s4 = inlined_call_operand.vmem [shape: f32[1,64], index: 4, kind: input, shape index: {}]   ;;  %s4168_s6 = inlined_call_operand.vmem [shape: f32[300,64], index: 6, kind: output, shape index: {}]  }
   0x1   :  { %2106 = vmatprep.subr.bf16.mxu0 %v2693_v0  ;;  %v2352_v1 = vld [vmem:[%s4162_s1 + $0x8] sm:$0xff]   ;;  %2110 = vmatprep.mubr.msk.bf16.mxu0 %vm2694_vm0, %v2693_v0  ;;  %v2353_v2 = vld [vmem:[%s4162_s1] sm:$0xff]   ;;  %v2755_v5 = vld [vmem:[%s4163_s0 + $0x10] sm:$0xff]  ;;  %vm1896_vm3 = vcmask 519168  }
   0x2   :  { %2346 = vmatprep.subr.bf16.mxu1 %v2693_v0  ;;  %2150 = vmatprep.mubr.msk.bf16.mxu1 %vm2694_vm0, %v2693_v0  ;;  %v2745_v3 = vld [vmem:[%s4163_s0] sm:$0xff]  ;;  %v2750_v4 = vld [vmem:[%s4163_s0 + $0x8] sm:$0xff]  ;;  %v2765_v8 = vld [vmem:[%s4163_s0 + $0x18] sm:$0xff]  ;;  %v64_v9 = vmul.f32 %v2755_v5, %v2755_v5 }
   0x3   :  { %2107 = vmatpush3.bf16.msra.mxu0 %v2352_v1  ;;  %2348 = vmatpush3.bf16.msra.mxu1 %v2352_v1  ;;  %v62_v6 = vmul.f32 %v2745_v3, %v2745_v3  ;;  %v63_v7 = vmul.f32 %v2750_v4, %v2750_v4  ;;  %v2772_v10 = vld [vmem:[%s4163_s0 + $0x20] sm:$0xff]  ;;  %v2777_v11 = vld [vmem:[%s4163_s0 + $0x28] sm:$0xff]  ;;  %v65_v12 = vmul.f32 %v2765_v8, %v2765_v8  ;;  %v2789_v15 = vld [vmem:[%s4163_s0 + $0x30] sm:$0xff] }
   0x4   :  { %2108 = vmatprep.subr.bf16.mxu0 %v2693_v0  ;;  %2347 = vmatprep.subr.bf16.mxu1 %v2693_v0  ;;  %v66_v13 = vmul.f32 %v2772_v10, %v2772_v10  ;;  %v67_v14 = vmul.f32 %v2777_v11, %v2777_v11  ;;  %v2794_v16 = vld [vmem:[%s4163_s0 + $0x38] sm:$0xff]  ;;  %v102_v19 = vmul.f32 %v64_v9, %v2755_v5  ;;  %v2819_v41 = vld [vmem:[%s4163_s0 + $0x40] sm:$0xff]  ;;  %v2824_v42 = vld [vmem:[%s4163_s0 + $0x48] sm:$0xff] }
   0x5   :  { %v100_v17 = vmul.f32 %v62_v6, %v2745_v3  ;;  %v101_v18 = vmul.f32 %v63_v7, %v2750_v4  ;;  %v68_v20 = vmul.f32 %v2789_v15, %v2789_v15  ;;  %v103_v21 = vmul.f32 %v65_v12, %v2765_v8  ;;  %v2830_v47 = vld [vmem:[%s4163_s0 + $0xa0] sm:$0xff]  ;;  %v2835_v48 = vld [vmem:[%s4163_s0 + $0xa8] sm:$0xff]  ;;  %v2851_v7 = vld [vmem:[%s4163_s0 + $0x50] sm:$0xff] }
   0x6   :  { %v104_v22 = vmul.f32 %v66_v13, %v2772_v10  ;;  %v105_v23 = vmul.f32 %v67_v14, %v2777_v11  ;;  %v69_v24 = vmul.f32 %v2794_v16, %v2794_v16  ;;  %v140_v27 = vmul.f32 0.044715, %v102_v19  ;;  %v2856_v9 = vld [vmem:[%s4163_s0 + $0x58] sm:$0xff] }
   0x7   :  { %2109 = vmatpush3.bf16.msra.mxu0 %v2353_v2  ;;  %v138_v25 = vmul.f32 0.044715, %v100_v17  ;;  %v139_v26 = vmul.f32 0.044715, %v101_v18  ;;  %v106_v28 = vmul.f32 %v68_v20, %v2789_v15  ;;  %2349 = vmatpush3.bf16.msra.mxu1 %v2353_v2  ;;  %v141_v29 = vmul.f32 0.044715, %v103_v21 }
   0x8   :  { %2266 = vmatprep.subr.bf16.mxu0 %v2693_v0  ;;  %v142_v30 = vmul.f32 0.044715, %v104_v22  ;;  %v143_v31 = vmul.f32 0.044715, %v105_v23  ;;  %v107_v32 = vmul.f32 %v69_v24, %v2794_v16  ;;  %2186 = vmatprep.subr.bf16.mxu1 %v2693_v0  ;;  %v178_v35 = vadd.f32 %v140_v27, %v2755_v5 }
   0x9   :  { %v176_v33 = vadd.f32 %v138_v25, %v2745_v3  ;;  %v177_v34 = vadd.f32 %v139_v26, %v2750_v4  ;;  %v144_v36 = vmul.f32 0.044715, %v106_v28  ;;  %v179_v37 = vadd.f32 %v141_v29, %v2765_v8  ;;  %v2869_v26 = vld [vmem:[%s4163_s0 + $0xb0] sm:$0xff] }
   0xa   :  { %v180_v38 = vadd.f32 %v142_v30, %v2772_v10  ;;  %v181_v39 = vadd.f32 %v143_v31, %v2777_v11  ;;  %v145_v40 = vmul.f32 0.044715, %v107_v32  ;;  %v1904_v45 = vmul.f32 -1.5957692, %v178_v35  ;;  %v2876_v30 = vld [vmem:[%s4163_s0 + $0xb8] sm:$0xff] }
   0xb   :  { %v1902_v43 = vmul.f32 -1.5957692, %v176_v33  ;;  %v1903_v44 = vmul.f32 -1.5957692, %v177_v34  ;;  %v182_v46 = vadd.f32 %v144_v36, %v2789_v15  ;;  %v1905_v49 = vmul.f32 -1.5957692, %v179_v37 }
   0xc   :  { %v1906_v50 = vmul.f32 -1.5957692, %v180_v38  ;;  %v1907_v51 = vmul.f32 -1.5957692, %v181_v39  ;;  %v183_v52 = vadd.f32 %v145_v40, %v2794_v16  ;;  %v294_v55 = vmul.f32 1.442695, %v1904_v45 }
   0xd   :  { %v290_v53 = vmul.f32 1.442695, %v1902_v43  ;;  %v292_v54 = vmul.f32 1.442695, %v1903_v44  ;;  %v70_v56 = vmul.f32 %v2819_v41, %v2819_v41  ;;  %v296_v57 = vmul.f32 1.442695, %v1905_v49 }
   0xe   :  { %v298_v58 = vmul.f32 1.442695, %v1906_v50  ;;  %v300_v59 = vmul.f32 1.442695, %v1907_v51  ;;  %v71_v60 = vmul.f32 %v2824_v42, %v2824_v42  ;;  %v1908_v61 = vmul.f32 -1.5957692, %v182_v46 }
   0xf   :  { %2358 = vpow2.f32 %v290_v53  ;;  %v1909_v62 = vmul.f32 -1.5957692, %v183_v52  ;;  %v108_v63 = vmul.f32 %v70_v56, %v2819_v41  ;;  %v82_v2 = vmul.f32 %v2830_v47, %v2830_v47  ;;  %v2883_v34 = vld [vmem:[%s4163_s0 + $0x60] sm:$0xff]  ;;  %v2890_v39 = vld [vmem:[%s4163_s0 + $0x68] sm:$0xff] }
  0x10   :  { %2360 = vpow2.f32 %v292_v54  ;;  %v109_v1 = vmul.f32 %v71_v60, %v2824_v42  ;;  %v83_v6 = vmul.f32 %v2835_v48, %v2835_v48  ;;  %v302_v12 = vmul.f32 1.442695, %v1908_v61  ;;  %v2900_v51 = vld [vmem:[%s4163_s0 + $0xc0] sm:$0xff] }
  0x11   :  { %2362 = vpow2.f32 %v294_v55  ;;  %v304_v13 = vmul.f32 1.442695, %v1909_v62  ;;  %v146_v14 = vmul.f32 0.044715, %v108_v63  ;;  %v120_v18 = vmul.f32 %v82_v2, %v2830_v47  ;;  %v2910_v62 = vld [vmem:[%s4163_s0 + $0xc8] sm:$0xff] }
  0x12   :  { %2364 = vpow2.f32 %v296_v57  ;;  %v147_v17 = vmul.f32 0.044715, %v109_v1  ;;  %v121_v19 = vmul.f32 %v83_v6, %v2835_v48  ;;  %v72_v21 = vmul.f32 %v2851_v7, %v2851_v7 }
  0x13   :  { %2366 = vpow2.f32 %v298_v58  ;;  %v184_v20 = vadd.f32 %v146_v14, %v2819_v41  ;;  %v73_v22 = vmul.f32 %v2856_v9, %v2856_v9  ;;  %v158_v24 = vmul.f32 0.044715, %v120_v18 }
  0x14   :  { %2368 = vpow2.f32 %v300_v59  ;;  %v185_v23 = vadd.f32 %v147_v17, %v2824_v42  ;;  %v159_v25 = vmul.f32 0.044715, %v121_v19  ;;  %v110_v28 = vmul.f32 %v72_v21, %v2851_v7 }
  0x15   :  { %2370 = vpow2.f32 %v302_v12  ;;  %v1910_v27 = vmul.f32 -1.5957692, %v184_v20  ;;  %v111_v29 = vmul.f32 %v73_v22, %v2856_v9  ;;  %v196_v32 = vadd.f32 %v158_v24, %v2830_v47 }
  0x16   :  { %2372 = vpow2.f32 %v304_v13  ;;  %v1911_v31 = vmul.f32 -1.5957692, %v185_v23  ;;  %v197_v33 = vadd.f32 %v159_v25, %v2835_v48  ;;  %v148_v36 = vmul.f32 0.044715, %v110_v28 }
  0x17   :  { %v306_v35 = vmul.f32 1.442695, %v1910_v27  ;;  %v149_v37 = vmul.f32 0.044715, %v111_v29  ;;  %v84_v38 = vmul.f32 %v2869_v26, %v2869_v26  ;;  %v1922_v43 = vmul.f32 -1.5957692, %v196_v32 }
  0x18   :  { %v308_v40 = vmul.f32 1.442695, %v1911_v31  ;;  %v1923_v44 = vmul.f32 -1.5957692, %v197_v33  ;;  %v85_v45 = vmul.f32 %v2876_v30, %v2876_v30  ;;  %v186_v46 = vadd.f32 %v148_v36, %v2851_v7 }
  0x19   :  { %2374 = vpow2.f32 %v306_v35  ;;  %v187_v49 = vadd.f32 %v149_v37, %v2856_v9  ;;  %v122_v50 = vmul.f32 %v84_v38, %v2869_v26  ;;  %v330_v52 = vmul.f32 1.442695, %v1922_v43 }
  0x1a   :  { %2376 = vpow2.f32 %v308_v40  ;;  %v332_v53 = vmul.f32 1.442695, %v1923_v44  ;;  %v123_v54 = vmul.f32 %v85_v45, %v2876_v30  ;;  %v1912_v55 = vmul.f32 -1.5957692, %v186_v46  ;;  %v2923_v40 = vld [vmem:[%s4163_s0 + $0x70] sm:$0xff] }
  0x1b   :  { %v1913_v56 = vmul.f32 -1.5957692, %v187_v49  ;;  %v160_v57 = vmul.f32 0.044715, %v122_v50  ;;  %v74_v58 = vmul.f32 %v2883_v34, %v2883_v34  ;;  %2378 = vpow2.f32 %v330_v52  ;;  %v2930_v49 = vld [vmem:[%s4163_s0 + $0x78] sm:$0xff] }
  0x1c   :  { %v2359_v59 = vpop.eup %2358  ;;  %v161_v60 = vmul.f32 0.044715, %v123_v54  ;;  %v75_v61 = vmul.f32 %v2890_v39, %v2890_v39  ;;  %v86_v63 = vmul.f32 %v2900_v51, %v2900_v51  ;;  %2380 = vpow2.f32 %v332_v53 }
  0x1d   :  { %v2361_v1 = vpop.eup %2360  ;;  %v366_v2 = vadd.f32 1.0, %v2359_v59  ;;  %v310_v6 = vmul.f32 1.442695, %v1912_v55  ;;  %v312_v12 = vmul.f32 1.442695, %v1913_v56  ;;  %v198_v17 = vadd.f32 %v160_v57, %v2869_v26 }
  0x1e   :  { %v2363_v13 = vpop.eup %2362  ;;  %v367_v14 = vadd.f32 1.0, %v2361_v1  ;;  %v199_v18 = vadd.f32 %v161_v60, %v2876_v30  ;;  %v112_v19 = vmul.f32 %v74_v58, %v2883_v34  ;;  %v113_v22 = vmul.f32 %v75_v61, %v2890_v39  ;;  %v2941_v61 = vld [vmem:[%s4163_s0 + $0xd0] sm:$0xff] }
  0x1f   :  { %v2365_v20 = vpop.eup %2364  ;;  %2382 = vrcp.f32 %v366_v2  ;;  %v368_v21 = vadd.f32 1.0, %v2363_v13  ;;  %v87_v23 = vmul.f32 %v2910_v62, %v2910_v62  ;;  %v1924_v27 = vmul.f32 -1.5957692, %v198_v17 }
  0x20   :  { %v2367_v24 = vpop.eup %2366  ;;  %2384 = vrcp.f32 %v367_v14  ;;  %v369_v25 = vadd.f32 1.0, %v2365_v20  ;;  %v1925_v28 = vmul.f32 -1.5957692, %v199_v18  ;;  %v150_v32 = vmul.f32 0.044715, %v112_v19 }
  0x21   :  { %v2369_v29 = vpop.eup %2368  ;;  %2386 = vrcp.f32 %v368_v21  ;;  %v370_v31 = vadd.f32 1.0, %v2367_v24  ;;  %v151_v33 = vmul.f32 0.044715, %v113_v22  ;;  %v334_v37 = vmul.f32 1.442695, %v1924_v27  ;;  %v2950_v22 = vld [vmem:[%s4163_s0 + $0xd8] sm:$0xff] }
  0x22   :  { %v2371_v35 = vpop.eup %2370  ;;  %2388 = vrcp.f32 %v369_v25  ;;  %v371_v36 = vadd.f32 1.0, %v2369_v29  ;;  %v336_v38 = vmul.f32 1.442695, %v1925_v28  ;;  %v188_v45 = vadd.f32 %v150_v32, %v2883_v34 }
  0x23   :  { %v2373_v43 = vpop.eup %2372  ;;  %2390 = vrcp.f32 %v370_v31  ;;  %v372_v44 = vadd.f32 1.0, %v2371_v35  ;;  %v189_v46 = vadd.f32 %v151_v33, %v2890_v39  ;;  %v124_v52 = vmul.f32 %v86_v63, %v2900_v51 }
  0x24   :  { %2392 = vrcp.f32 %v371_v36  ;;  %v373_v50 = vadd.f32 1.0, %v2373_v43  ;;  %v125_v53 = vmul.f32 %v87_v23, %v2910_v62  ;;  %v1914_v54 = vmul.f32 -1.5957692, %v188_v45 }
  0x25   :  { %2394 = vrcp.f32 %v372_v44  ;;  %v1915_v55 = vmul.f32 -1.5957692, %v189_v46  ;;  %v76_v56 = vmul.f32 %v2923_v40, %v2923_v40  ;;  %v162_v58 = vmul.f32 0.044715, %v124_v52 }
  0x26   :  { %v2375_v57 = vpop.eup %2374  ;;  %2396 = vrcp.f32 %v373_v50  ;;  %v163_v59 = vmul.f32 0.044715, %v125_v53  ;;  %v77_v60 = vmul.f32 %v2930_v49, %v2930_v49  ;;  %v314_v2 = vmul.f32 1.442695, %v1914_v54 }
  0x27   :  { %v2377_v63 = vpop.eup %2376  ;;  %v374_v1 = vadd.f32 1.0, %v2375_v57  ;;  %2398 = vpow2.f32 %v310_v6  ;;  %v316_v13 = vmul.f32 1.442695, %v1915_v55  ;;  %v200_v17 = vadd.f32 %v162_v58, %v2900_v51 }
  0x28   :  { %v375_v14 = vadd.f32 1.0, %v2377_v63  ;;  %2400 = vpow2.f32 %v312_v12  ;;  %v201_v18 = vadd.f32 %v163_v59, %v2910_v62  ;;  %v2379_v19 = vpop.eup %2378  ;;  %v114_v20 = vmul.f32 %v76_v56, %v2923_v40 }
  0x29   :  { %2402 = vrcp.f32 %v374_v1  ;;  %v115_v21 = vmul.f32 %v77_v60, %v2930_v49  ;;  %v88_v6 = vmul.f32 %v2941_v61, %v2941_v61  ;;  %v2381_v23 = vpop.eup %2380  ;;  %v386_v12 = vadd.f32 1.0, %v2379_v19 }
  0x2a   :  { %2404 = vrcp.f32 %v375_v14  ;;  %v1926_v24 = vmul.f32 -1.5957692, %v200_v17  ;;  %v1927_v25 = vmul.f32 -1.5957692, %v201_v18  ;;  %v387_v27 = vadd.f32 1.0, %v2381_v23  ;;  %v2993_v23 = vld [vmem:[%s4163_s0 + $0xe0] sm:$0xff] }
  0x2b   :  { %2406 = vpow2.f32 %v334_v37  ;;  %v152_v28 = vmul.f32 0.044715, %v114_v20  ;;  %v153_v29 = vmul.f32 0.044715, %v115_v21  ;;  %v89_v35 = vmul.f32 %v2950_v22, %v2950_v22 }
  0x2c   :  { %v2383_v31 = vpop.eup %2382  ;;  %2408 = vrcp.f32 %v386_v12  ;;  %v338_v32 = vmul.f32 1.442695, %v1926_v24  ;;  %v340_v33 = vmul.f32 1.442695, %v1927_v25  ;;  %v126_v50 = vmul.f32 %v88_v6, %v2941_v61 }
  0x2d   :  { %v2385_v36 = vpop.eup %2384  ;;  %v480_v43 = vmul.f32 %v2383_v31, %v2745_v3  ;;  %2410 = vrcp.f32 %v387_v27  ;;  %v190_v44 = vadd.f32 %v152_v28, %v2923_v40  ;;  %v191_v45 = vadd.f32 %v153_v29, %v2930_v49  ;;  %v2354_v3 = vld [vmem:[%s4164_s3 + $0x8] sm:$0xff]  }
  0x2e   :  { %v2387_v46 = vpop.eup %2386  ;;  %v481_v37 = vmul.f32 %v2385_v36, %v2750_v4  ;;  %2412 = vpow2.f32 %v336_v38  ;;  %v127_v52 = vmul.f32 %v89_v35, %v2950_v22  ;;  %v164_v4 = vmul.f32 0.044715, %v126_v50  ;;  %v2970_v38 = vld [vmem:[%s4163_s0 + $0x80] sm:$0xff] }
  0x2f   :  { %v2389_v53 = vpop.eup %2388  ;;  %v482_v54 = vmul.f32 %v2387_v46, %v2755_v5  ;;  %2414 = vpow2.f32 %v314_v2  ;;  %v1916_v55 = vmul.f32 -1.5957692, %v190_v44  ;;  %v1917_v56 = vmul.f32 -1.5957692, %v191_v45  ;;  %v2976_v2 = vld [vmem:[%s4163_s0 + $0x88] sm:$0xff] }
  0x30   :  { %v2391_v57 = vpop.eup %2390  ;;  %v518_v58 = vpack.c.bf16 %v481_v37, %v480_v43  ;;  %v483_v59 = vmul.f32 %v2389_v53, %v2765_v8  ;;  %2416 = vpow2.f32 %v316_v13  ;;  %v165_v1 = vmul.f32 0.044715, %v127_v52 }
  0x31   :  { %v2393_v60 = vpop.eup %2392  ;;  %2418 = vpow2.f32 %v338_v32  ;;  %v318_v63 = vmul.f32 1.442695, %v1916_v55  ;;  %v320_v13 = vmul.f32 1.442695, %v1917_v56  ;;  %v202_v14 = vadd.f32 %v164_v4, %v2941_v61  ;;  %v3008_v32 = vld [vmem:[%s4163_s0 + $0xe8] sm:$0xff] }
  0x32   :  { %v2395_v5 = vpop.eup %2394  ;;  %2111 = vmatmul.mubr.msk.bf16.vlgmr.msra.gmra.mxu0 %vm560_vm1, %v518_v58  ;;  %2420 = vpow2.f32 %v340_v33  ;;  %v78_v17 = vmul.f32 %v2970_v38, %v2970_v38  ;;  %v519_v19 = vpack.c.bf16 %v483_v59, %v482_v54  ;;  %v2984_v20 = vmul.f32 %v2391_v57, %v2772_v10 }
  0x33   :  { %v2397_v8 = vpop.eup %2396  ;;  %2114 = vmatprep.mubr.msk.bf16.mxu0 %vm2694_vm0, %v2693_v0  ;;  %2267 = vmatpush3.bf16.msra.mxu0 %v2354_v3  ;;  %v2987_v21 = vmul.f32 %v2393_v60, %v2777_v11  ;;  %v203_v6 = vadd.f32 %v165_v1, %v2950_v22  ;;  %v1928_v25 = vmul.f32 -1.5957692, %v202_v14  ;;  %v79_v27 = vmul.f32 %v2976_v2, %v2976_v2  ;;  %v3023_v3 = vld [vmem:[%s4163_s0 + $0x90] sm:$0xff]  ;;  %v2355_v1 = vld [vmem:[%s4165_s5 + $0x8] sm:$0xff]  }
  0x34   :  { %v2399_v18 = vpop.eup %2398  ;;  %2268 = vmatprep.subr.bf16.mxu0 %v2693_v0  ;;  %v116_v10 = vmul.f32 %v78_v17, %v2970_v38  ;;  %v3000_v11 = vmul.f32 %v2395_v5, %v2789_v15  ;;  %v3003_v29 = vmul.f32 %v2397_v8, %v2794_v16  ;;  %2422 = vpow2.f32 %v318_v63  ;;  %v3039_v17 = vld [vmem:[%s4163_s0 + $0x98] sm:$0xff] }
  0x35   :  { %v2401_v12 = vpop.eup %2400  ;;  %v376_v24 = vadd.f32 1.0, %v2399_v18  ;;  %v1929_v31 = vmul.f32 -1.5957692, %v203_v6  ;;  %2424 = vpow2.f32 %v320_v13  ;;  %v342_v35 = vmul.f32 1.442695, %v1928_v25 }
  0x36   :  { %v2403_v28 = vpop.eup %2402  ;;  %v117_v36 = vmul.f32 %v79_v27, %v2976_v2  ;;  %v90_v43 = vmul.f32 %v2993_v23, %v2993_v23  ;;  %v377_v44 = vadd.f32 1.0, %v2401_v12  ;;  %v154_v45 = vmul.f32 0.044715, %v116_v10 }
  0x37   :  { %v2405_v33 = vpop.eup %2404  ;;  %2426 = vrcp.f32 %v376_v24  ;;  %v344_v16 = vmul.f32 1.442695, %v1929_v31  ;;  %v91_v52 = vmul.f32 %v3008_v32, %v3008_v32  ;;  %v520_v54 = vpack.c.bf16 %v2987_v21, %v2984_v20 }
  0x38   :  { %v2407_v15 = vpop.eup %2406  ;;  %2428 = vpow2.f32 %v342_v35  ;;  %v155_v50 = vmul.f32 0.044715, %v117_v36  ;;  %v192_v56 = vadd.f32 %v154_v45, %v2970_v38  ;;  %v128_v4 = vmul.f32 %v90_v43, %v2993_v23 }
  0x39   :  { %v2409_v46 = vpop.eup %2408  ;;  %v388_v37 = vadd.f32 1.0, %v2407_v15  ;;  %2430 = vpow2.f32 %v344_v16  ;;  %v521_v60 = vpack.c.bf16 %v3003_v29, %v3000_v11  ;;  %v129_v63 = vmul.f32 %v91_v52, %v3008_v32  ;;  %v3065_v15 = vld [vmem:[%s4163_s0 + $0xf8] sm:$0xff] }
  0x3a   :  { %v2411_v53 = vpop.eup %2410  ;;  %2115 = vmatmul.mubr.msk.bf16.gmra.mxu0 %vm560_vm1, %v519_v19  ;;  %v500_v55 = vmul.f32 %v2409_v46, %v2830_v47  ;;  %v193_v59 = vadd.f32 %v155_v50, %v2976_v2  ;;  %v166_v14 = vmul.f32 0.044715, %v128_v4  ;;  %v80_v18 = vmul.f32 %v3023_v3, %v3023_v3 }
  0x3b   :  { %v2413_v57 = vpop.eup %2412  ;;  %2118 = vmatprep.mubr.msk.bf16.mxu0 %vm2694_vm0, %v2693_v0  ;;  %v501_v58 = vmul.f32 %v2411_v53, %v2835_v48  ;;  %2432 = vrcp.f32 %v388_v37  ;;  %v1918_v48 = vmul.f32 -1.5957692, %v192_v56  ;;  %v3044_v20 = vmul.f32 %v2403_v28, %v2819_v41 }
  0x3c   :  { %v2415_v47 = vpop.eup %2414  ;;  %2434 = vrcp.f32 %v377_v44  ;;  %v389_v5 = vadd.f32 1.0, %v2413_v57  ;;  %v1919_v21 = vmul.f32 -1.5957692, %v193_v59  ;;  %v167_v6 = vmul.f32 0.044715, %v129_v63 }
  0x3d   :  { %v2417_v8 = vpop.eup %2416  ;;  %v528_v13 = vpack.c.bf16 %v501_v58, %v500_v55  ;;  %v3047_v24 = vmul.f32 %v2405_v33, %v2824_v42  ;;  %v378_v25 = vadd.f32 1.0, %v2415_v47  ;;  %v204_v10 = vadd.f32 %v166_v14, %v2993_v23  ;;  %v3059_v42 = vld [vmem:[%s4163_s0 + $0xf0] sm:$0xff] }
  0x3e   :  { %v2419_v19 = vpop.eup %2418  ;;  %2436 = vrcp.f32 %v389_v5  ;;  %v379_v31 = vadd.f32 1.0, %v2417_v8  ;;  %v205_v41 = vadd.f32 %v167_v6, %v3008_v32  ;;  %v81_v28 = vmul.f32 %v3039_v17, %v3039_v17 }
  0x3f   :  { %v2421_v12 = vpop.eup %2420  ;;  %2151 = vmatmul.mubr.msk.bf16.vlgmr.msra.gmra.mxu1 %vm560_vm1, %v528_v13  ;;  %v390_v27 = vadd.f32 1.0, %v2419_v19  ;;  %v322_v33 = vmul.f32 1.442695, %v1918_v48  ;;  %v1930_v36 = vmul.f32 -1.5957692, %v204_v10  ;;  %v118_v43 = vmul.f32 %v80_v18, %v3023_v3  ;;  %v3085_v18 = vld [vmem:[%s4163_s0 + $0x100] sm:$0xff] }
  0x40   :  { %2154 = vmatprep.mubr.msk.bf16.mxu1 %vm2694_vm0, %v2693_v0  ;;  %v391_v35 = vadd.f32 1.0, %v2421_v12  ;;  %2187 = vmatpush3.bf16.msra.mxu1 %v2355_v1  ;;  %v324_v44 = vmul.f32 1.442695, %v1919_v21  ;;  %v1931_v16 = vmul.f32 -1.5957692, %v205_v41  ;;  %v119_v45 = vmul.f32 %v81_v28, %v3039_v17 }
  0x41   :  { %2438 = vrcp.f32 %v390_v27  ;;  %2188 = vmatprep.subr.bf16.mxu1 %v2693_v0  ;;  %v2423_v46 = vpop.eup %2422  ;;  %v346_v37 = vmul.f32 1.442695, %v1930_v36  ;;  %v156_v50 = vmul.f32 0.044715, %v118_v43  ;;  %v92_v52 = vmul.f32 %v3059_v42, %v3059_v42  ;;  %v3095_v27 = vld [vmem:[%s4163_s0 + $0x110] sm:$0xff]  ;;  %v3108_v43 = vld [vmem:[%s4163_s0 + $0x118] sm:$0xff] }
  0x42   :  { %2119 = vmatmul.mubr.msk.bf16.gmra.mxu0 %vm560_vm1, %v520_v54  ;;  %2440 = vrcp.f32 %v391_v35  ;;  %v2425_v53 = vpop.eup %2424  ;;  %v348_v55 = vmul.f32 1.442695, %v1931_v16  ;;  %v157_v56 = vmul.f32 0.044715, %v119_v45  ;;  %v93_v54 = vmul.f32 %v3065_v15, %v3065_v15 }
  0x43   :  { %2122 = vmatprep.mubr.msk.bf16.mxu0 %vm2694_vm0, %v2693_v0  ;;  %2442 = vrcp.f32 %v378_v25  ;;  %v522_v58 = vpack.c.bf16 %v3047_v24, %v3044_v20  ;;  %v194_v59 = vadd.f32 %v156_v50, %v3023_v3  ;;  %v130_v4 = vmul.f32 %v92_v52, %v3059_v42  ;;  %v3090_v25 = vld [vmem:[%s4163_s0 + $0x108] sm:$0xff] }
  0x44   :  { %2444 = vrcp.f32 %v379_v31  ;;  %v2427_v57 = vpop.eup %2426  ;;  %v380_v5 = vadd.f32 1.0, %v2423_v46  ;;  %v195_v63 = vadd.f32 %v157_v56, %v3039_v17  ;;  %v131_v1 = vmul.f32 %v93_v54, %v3065_v15 }
  0x45   :  { %2446 = vpow2.f32 %v322_v33  ;;  %v2429_v47 = vpop.eup %2428  ;;  %v1920_v48 = vmul.f32 -1.5957692, %v194_v59  ;;  %v168_v14 = vmul.f32 0.044715, %v130_v4  ;;  %v381_v21 = vadd.f32 1.0, %v2425_v53 }
  0x46   :  { %2448 = vpow2.f32 %v324_v44  ;;  %v2431_v8 = vpop.eup %2430  ;;  %v392_v13 = vadd.f32 1.0, %v2429_v47  ;;  %v1921_v12 = vmul.f32 -1.5957692, %v195_v63  ;;  %v169_v41 = vmul.f32 0.044715, %v131_v1 }
  0x47   :  { %2450 = vpow2.f32 %v346_v37  ;;  %v393_v6 = vadd.f32 1.0, %v2431_v8  ;;  %v326_v35 = vmul.f32 1.442695, %v1920_v48  ;;  %v206_v33 = vadd.f32 %v168_v14, %v3059_v42  ;;  %v3136_v8 = vld [vmem:[%s4163_s0 + $0x120] sm:$0xff] }
  0x48   :  { %v2433_v19 = vpop.eup %2432  ;;  %2452 = vpow2.f32 %v348_v55  ;;  %v328_v28 = vmul.f32 1.442695, %v1921_v12  ;;  %v94_v36 = vmul.f32 %v3085_v18, %v3085_v18  ;;  %v207_v11 = vadd.f32 %v169_v41, %v3065_v15 }
  0x49   :  { %v2435_v10 = vpop.eup %2434  ;;  %v502_v31 = vmul.f32 %v2433_v19, %v2869_v26  ;;  %2454 = vrcp.f32 %v392_v13  ;;  %v95_v29 = vmul.f32 %v3090_v25, %v3090_v25  ;;  %v1932_v16 = vmul.f32 -1.5957692, %v206_v33 }
  0x4a   :  { %2123 = vmatmul.mubr.msk.bf16.gmra.mxu0 %vm560_vm1, %v521_v60  ;;  %2456 = vrcp.f32 %v393_v6  ;;  %v96_v60 = vmul.f32 %v3095_v27, %v3095_v27  ;;  %v132_v45 = vmul.f32 %v94_v36, %v3085_v18  ;;  %v3120_v46 = vmul.f32 %v2427_v57, %v2851_v7  ;;  %v3151_v6 = vld [vmem:[%s4163_s0 + $0x128] sm:$0xf] }
  0x4b   :  { %v2437_v26 = vpop.eup %2436  ;;  %2126 = vmatprep.mubr.msk.bf16.mxu0 %vm2694_vm0, %v2693_v0  ;;  %2458 = vpow2.f32 %v326_v35  ;;  %v1933_v37 = vmul.f32 -1.5957692, %v207_v11  ;;  %v133_v50 = vmul.f32 %v95_v29, %v3090_v25  ;;  %v97_v52 = vmul.f32 %v3108_v43, %v3108_v43 }
  0x4c   :  { %v503_v44 = vmul.f32 %v2437_v26, %v2876_v30  ;;  %2460 = vpow2.f32 %v328_v28  ;;  %v3126_v55 = vmul.f32 %v2435_v10, %v2856_v9  ;;  %v350_v54 = vmul.f32 1.442695, %v1932_v16 }
  0x4d   :  { %v170_v30 = vmul.f32 0.044715, %v132_v45  ;;  %2462 = vrcp.f32 %v380_v5  ;;  %v352_v4 = vmul.f32 1.442695, %v1933_v37  ;;  %v171_v47 = vmul.f32 0.044715, %v133_v50 }
  0x4e   :  { %v2439_v53 = vpop.eup %2438  ;;  %v529_v56 = vpack.c.bf16 %v503_v44, %v502_v31  ;;  %v134_v7 = vmul.f32 %v96_v60, %v3095_v27  ;;  %2464 = vpow2.f32 %v350_v54  ;;  %v135_v48 = vmul.f32 %v97_v52, %v3108_v43 }
  0x4f   :  { %v2441_v59 = vpop.eup %2440  ;;  %v504_v63 = vmul.f32 %v2439_v53, %v2900_v51  ;;  %v208_v9 = vadd.f32 %v170_v30, %v3085_v18  ;;  %2466 = vpow2.f32 %v352_v4  ;;  %v209_v13 = vadd.f32 %v171_v47, %v3090_v25 }
  0x50   :  { %v2443_v57 = vpop.eup %2442  ;;  %2155 = vmatmul.mubr.msk.bf16.gmra.mxu1 %vm560_vm1, %v529_v56  ;;  %v505_v1 = vmul.f32 %v2441_v59, %v2910_v62  ;;  %v523_v62 = vpack.c.bf16 %v3126_v55, %v3120_v46  ;;  %2468 = vrcp.f32 %v381_v21  ;;  %v172_v19 = vmul.f32 0.044715, %v134_v7 }
  0x51   :  { %v2445_v5 = vpop.eup %2444  ;;  %2158 = vmatprep.mubr.msk.bf16.mxu1 %vm2694_vm0, %v2693_v0  ;;  %v1934_v14 = vmul.f32 -1.5957692, %v208_v9  ;;  %v1935_v31 = vmul.f32 -1.5957692, %v209_v13  ;;  %v173_v20 = vmul.f32 0.044715, %v135_v48  ;;  %v98_v24 = vmul.f32 %v3136_v8, %v3136_v8 }
  0x52   :  { %v2447_v51 = vpop.eup %2446  ;;  %2127 = vmatmul.mubr.msk.bf16.gmra.mxu0 %vm560_vm1, %v522_v58  ;;  %v530_v35 = vpack.c.bf16 %v505_v1, %v504_v63  ;;  %v210_v28 = vadd.f32 %v172_v19, %v3095_v27  ;;  %v99_v16 = vmul.f32 %v3151_v6, %v3151_v6  ;;  %v492_v46 = vmul.f32 %v2443_v57, %v2883_v34 }
  0x53   :  { %v2449_v12 = vpop.eup %2448  ;;  %2130 = vmatprep.mubr.msk.bf16.mxu0 %vm2694_vm0, %v2693_v0  ;;  %v382_v10 = vadd.f32 1.0, %v2447_v51  ;;  %v354_v41 = vmul.f32 1.442695, %v1934_v14  ;;  %v356_v26 = vmul.f32 1.442695, %v1935_v31  ;;  %v211_v11 = vadd.f32 %v173_v20, %v3108_v43 }
  0x54   :  { %v2451_v58 = vpop.eup %2450  ;;  %v383_v21 = vadd.f32 1.0, %v2449_v12  ;;  %v1936_v44 = vmul.f32 -1.5957692, %v210_v28  ;;  %v136_v50 = vmul.f32 %v98_v24, %v3136_v8  ;;  %v137_v56 = vmul.f32 %v99_v16, %v3151_v6 }
  0x55   :  { %v2453_v33 = vpop.eup %2452  ;;  %2470 = vrcp.f32 %v382_v10  ;;  %v394_v36 = vadd.f32 1.0, %v2451_v58  ;;  %v1937_v37 = vmul.f32 -1.5957692, %v211_v11  ;;  %v493_v47 = vmul.f32 %v2445_v5, %v2890_v39 }
  0x56   :  { %v2455_v29 = vpop.eup %2454  ;;  %2472 = vrcp.f32 %v383_v21  ;;  %v395_v60 = vadd.f32 1.0, %v2453_v33  ;;  %v358_v59 = vmul.f32 1.442695, %v1936_v44  ;;  %v174_v4 = vmul.f32 0.044715, %v136_v50 }
  0x57   :  { %v2457_v45 = vpop.eup %2456  ;;  %2474 = vrcp.f32 %v394_v36  ;;  %v506_v53 = vmul.f32 %v2455_v29, %v2941_v61  ;;  %v360_v7 = vmul.f32 1.442695, %v1937_v37  ;;  %v175_v61 = vmul.f32 0.044715, %v137_v56 }
  0x58   :  { %v2459_v52 = vpop.eup %2458  ;;  %2159 = vmatmul.mubr.msk.bf16.gmra.mxu1 %vm560_vm1, %v530_v35  ;;  %v507_v55 = vmul.f32 %v2457_v45, %v2950_v22  ;;  %2476 = vrcp.f32 %v395_v60  ;;  %v212_v57 = vadd.f32 %v174_v4, %v3136_v8 }
  0x59   :  { %v2461_v54 = vpop.eup %2460  ;;  %2162 = vmatprep.mubr.msk.bf16.mxu1 %vm2694_vm0, %v2693_v0  ;;  %v384_v30 = vadd.f32 1.0, %v2459_v52  ;;  %2478 = vpow2.f32 %v354_v41  ;;  %v213_v9 = vadd.f32 %v175_v61, %v3151_v6 }
  0x5a   :  { %2131 = vmatmul.mubr.msk.bf16.gmra.mxu0 %vm560_vm1, %v523_v62  ;;  %2480 = vpow2.f32 %v356_v26  ;;  %v385_v22 = vadd.f32 1.0, %v2461_v54  ;;  %v2463_v63 = vpop.eup %2462  ;;  %v531_v1 = vpack.c.bf16 %v507_v55, %v506_v53  ;;  %v1938_v48 = vmul.f32 -1.5957692, %v212_v57 }
  0x5b   :  { %2134 = vmatprep.mubr.msk.bf16.mxu0 %vm2694_vm0, %v2693_v0  ;;  %2482 = vrcp.f32 %v384_v30  ;;  %v2465_v13 = vpop.eup %2464  ;;  %v524_v62 = vpack.c.bf16 %v493_v47, %v492_v46  ;;  %v1939_v14 = vmul.f32 -1.5957692, %v213_v9  ;;  %v494_v24 = vmul.f32 %v2463_v63, %v2923_v40 }
  0x5c   :  { %2484 = vpow2.f32 %v358_v59  ;;  %v2467_v51 = vpop.eup %2466  ;;  %v396_v5 = vadd.f32 1.0, %v2465_v13  ;;  %v362_v10 = vmul.f32 1.442695, %v1938_v48 }
  0x5d   :  { %2486 = vpow2.f32 %v360_v7  ;;  %v2469_v19 = vpop.eup %2468  ;;  %v397_v12 = vadd.f32 1.0, %v2467_v51  ;;  %v364_v31 = vmul.f32 1.442695, %v1939_v14 }
  0x5e   :  { %2488 = vrcp.f32 %v385_v22  ;;  %v495_v58 = vmul.f32 %v2469_v19, %v2930_v49 }
  0x5f   :  { %2490 = vrcp.f32 %v396_v5 }
  0x60   :  { %2163 = vmatmul.mubr.msk.bf16.gmra.mxu1 %vm560_vm1, %v531_v1  ;;  %2492 = vrcp.f32 %v397_v12  ;;  %v525_v36 = vpack.c.bf16 %v495_v58, %v494_v24  ;;  %v2665_v24 = vld [vmem:[%s4163_s0 + $0x18] sm:$0xff] }
  0x61   :  { %2166 = vmatprep.mubr.msk.bf16.mxu1 %vm2694_vm0, %v2693_v0  ;;  %2494 = vpow2.f32 %v362_v10 }
  0x62   :  { %v2471_v20 = vpop.eup %2470  ;;  %2135 = vmatmul.mubr.msk.bf16.gmra.mxu0 %vm560_vm1, %v524_v62  ;;  %2496 = vpow2.f32 %v364_v31  ;;  %v2356_v31 = vld [vmem:[%s4164_s3] sm:$0xff]  }
  0x63   :  { %v2473_v35 = vpop.eup %2472  ;;  %2138 = vmatprep.mubr.msk.bf16.mxu0 %vm2694_vm0, %v2693_v0  ;;  %v496_v46 = vmul.f32 %v2471_v20, %v2970_v38  ;;  %2269 = vmatpush3.bf16.msra.mxu0 %v2356_v31  ;;  %v2664_v20 = vld [vmem:[%s4163_s0 + $0x10] sm:$0xff] }
  0x64   :  { %v2475_v21 = vpop.eup %2474  ;;  %v497_v37 = vmul.f32 %v2473_v35, %v2976_v2  ;;  %v1283_v58 = vpack.c.bf16 %v2665_v24, %v2664_v20  ;;  %v2666_v35 = vld [vmem:[%s4163_s0 + $0x20] sm:$0xff] }
  0x65   :  { %v2477_v41 = vpop.eup %2476  ;;  %v508_v28 = vmul.f32 %v2475_v21, %v2993_v23  ;;  %v2667_v21 = vld [vmem:[%s4163_s0 + $0x28] sm:$0xff] }
  0x66   :  { %v2479_v33 = vpop.eup %2478  ;;  %v509_v26 = vmul.f32 %v2477_v41, %v3008_v32  ;;  %v526_v56 = vpack.c.bf16 %v497_v37, %v496_v46  ;;  %v1284_v41 = vpack.c.bf16 %v2667_v21, %v2666_v35  ;;  %v1289_v46 = vpack.c.bf16 %v2930_v49, %v2923_v40 }
  0x67   :  { %v2481_v11 = vpop.eup %2480  ;;  %v398_v29 = vadd.f32 1.0, %v2479_v33  ;;  %v2669_v33 = vld [vmem:[%s4163_s0 + $0x38] sm:$0xff]  ;;  %v1290_v37 = vpack.c.bf16 %v2976_v2, %v2970_v38  ;;  %v1291_v49 = vpack.c.bf16 %v3039_v17, %v3023_v3 }
  0x68   :  { %v532_v60 = vpack.c.bf16 %v509_v26, %v508_v28  ;;  %v399_v44 = vadd.f32 1.0, %v2481_v11  ;;  %v2483_v16 = vpop.eup %2482  ;;  %v2668_v28 = vld [vmem:[%s4163_s0 + $0x30] sm:$0xff]  ;;  %v2670_v26 = vld [vmem:[%s4163_s0 + $0x40] sm:$0xff]  ;;  %v2671_v11 = vld [vmem:[%s4163_s0 + $0x48] sm:$0xff] }
  0x69   :  { %2498 = vrcp.f32 %v398_v29  ;;  %v2485_v45 = vpop.eup %2484  ;;  %v498_v22 = vmul.f32 %v2483_v16, %v3023_v3  ;;  %v1286_v29 = vpack.c.bf16 %v2671_v11, %v2670_v26 }
  0x6a   :  { %2139 = vmatmul.mubr.msk.bf16.gmra.mxu0 %vm560_vm1, %v525_v36  ;;  %2167 = vmatmul.mubr.msk.bf16.gmra.mxu1 %vm560_vm1, %v532_v60  ;;  %2500 = vrcp.f32 %v399_v44  ;;  %v2487_v23 = vpop.eup %2486  ;;  %v400_v32 = vadd.f32 1.0, %v2485_v45  ;;  %v1285_v36 = vpack.c.bf16 %v2669_v33, %v2668_v28  ;;  %v2672_v60 = vld [vmem:[%s4163_s0 + $0x50] sm:$0xff]  ;;  %v2673_v44 = vld [vmem:[%s4163_s0 + $0x58] sm:$0xff]  ;;  %v1288_v45 = vpack.c.bf16 %v2890_v39, %v2883_v34  ;;  %v3299_v34 = vld [vmem:[%s4166_s2] ss:$0 sm:$0xff] }
  0x6b   :  { %2142 = vmatprep.mubr.msk.bf16.mxu0 %vm2694_vm0, %v2693_v0  ;;  %2170 = vmatprep.mubr.msk.bf16.mxu1 %vm2694_vm0, %v2693_v0  ;;  %v2489_v50 = vpop.eup %2488  ;;  %v401_v52 = vadd.f32 1.0, %v2487_v23  ;;  %v1287_v16 = vpack.c.bf16 %v2673_v44, %v2672_v60 }
  0x6c   :  { %v2491_v53 = vpop.eup %2490  ;;  %2502 = vrcp.f32 %v400_v32  ;;  %v499_v57 = vmul.f32 %v2489_v50, %v3039_v17 }
  0x6d   :  { %v2493_v55 = vpop.eup %2492  ;;  %v510_v54 = vmul.f32 %v2491_v53, %v3059_v42  ;;  %2504 = vrcp.f32 %v401_v52 }
  0x6e   :  { %v2495_v30 = vpop.eup %2494  ;;  %v511_v59 = vmul.f32 %v2493_v55, %v3065_v15  ;;  %v527_v15 = vpack.c.bf16 %v499_v57, %v498_v22 }
  0x6f   :  { %v2497_v4 = vpop.eup %2496  ;;  %v402_v47 = vadd.f32 1.0, %v2495_v30  ;;  %v2674_v30 = vld [vmem:[%s4163_s0 + $0xa0] sm:$0xff] }
  0x70   :  { %v533_v7 = vpack.c.bf16 %v511_v59, %v510_v54  ;;  %v403_v61 = vadd.f32 1.0, %v2497_v4  ;;  %v2675_v59 = vld [vmem:[%s4163_s0 + $0xa8] sm:$0xff] }
  0x71   :  { %2506 = vrcp.f32 %v402_v47  ;;  %v1292_v4 = vpack.c.bf16 %v2675_v59, %v2674_v30 }
  0x72   :  { %2143 = vmatmul.mubr.msk.bf16.gmra.mxu0 %vm560_vm1, %v526_v56  ;;  %2171 = vmatmul.mubr.msk.bf16.gmra.mxu1 %vm560_vm1, %v533_v7  ;;  %2508 = vrcp.f32 %v403_v61 }
  0x73   :  { %2146 = vmatprep.mubr.msk.bf16.mxu0 %vm2694_vm0, %v2693_v0  ;;  %2174 = vmatprep.mubr.msk.bf16.mxu1 %vm2694_vm0, %v2693_v0 }
  0x76   :  { %v2499_v42 = vpop.eup %2498 }
  0x77   :  { %v2501_v63 = vpop.eup %2500  ;;  %v512_v1 = vmul.f32 %v2499_v42, %v3085_v18 }
  0x78   :  { %v513_v9 = vmul.f32 %v2501_v63, %v3090_v25 }
  0x79   :  { %v2503_v13 = vpop.eup %2502 }
  0x7a   :  { %2147 = vmatmul.mubr.msk.bf16.gmra.mxu0 %vm560_vm1, %v527_v15  ;;  %v534_v48 = vpack.c.bf16 %v513_v9, %v512_v1  ;;  %v2505_v51 = vpop.eup %2504  ;;  %v514_v62 = vmul.f32 %v2503_v13, %v3095_v27  ;;  %v2357_v27 = vld [vmem:[%s4165_s5] sm:$0xff]  }
  0x7b   :  { %2270 = vmatprep.mubr.msk.bf16.mxu0 %vm2694_vm0, %v2693_v0  ;;  %v515_v5 = vmul.f32 %v2505_v51, %v3108_v43  ;;  %2189 = vmatpush3.bf16.msra.mxu1 %v2357_v27  ;;  %v2662_v43 = vld [vmem:[%s4163_s0] sm:$0xff] }
  0x7c   :  { %2175 = vmatmul.mubr.msk.bf16.gmra.mxu1 %vm560_vm1, %v534_v48 }
  0x7d   :  { %2178 = vmatprep.mubr.msk.bf16.mxu1 %vm2694_vm0, %v2693_v0  ;;  %v535_v14 = vpack.c.bf16 %v515_v5, %v514_v62 }
  0x7e   :  { %v2507_v18 = vpop.eup %2506 }
  0x7f   :  { %v2509_v25 = vpop.eup %2508  ;;  %v516_v19 = vmul.f32 %v2507_v18, %v3136_v8  ;;  %v2663_v8 = vld [vmem:[%s4163_s0 + $0x8] sm:$0xff] }
  0x80   :  { %v517_v12 = vmul.f32 %v2509_v25, %v3151_v6  ;;  %v1282_v6 = vpack.c.bf16 %v2663_v8, %v2662_v43 }
  0x82   :  { %v536_v10 = vpack.c.bf16 %v517_v12, %v516_v19 }
  0x84   :  { %2179 = vmatmul.mubr.msk.bf16.gmra.mxu1 %vm560_vm1, %v535_v14 }
  0x85   :  { %2182 = vmatprep.mubr.msk.bf16.mxu1 %vm2694_vm0, %v2693_v0 }
  0x8c   :  { %2183 = vmatmul.mubr.msk.bf16.gmra.mxu1 %vm560_vm1, %v536_v10 }
  0x8d   :  { %2190 = vmatprep.mubr.msk.bf16.mxu1 %vm2694_vm0, %v2693_v0 }
  0x94   :  { %2191 = vmatmul.mubr.msk.bf16.vlgmr.msra.gmra.mxu1 %vm560_vm1, %v1282_v6 }
  0x95   :  { %2194 = vmatprep.mubr.msk.bf16.mxu1 %vm2694_vm0, %v2693_v0 }
  0x9c   :  { %2195 = vmatmul.mubr.msk.bf16.gmra.mxu1 %vm560_vm1, %v1283_v58 }
  0x9d   :  { %2198 = vmatprep.mubr.msk.bf16.mxu1 %vm2694_vm0, %v2693_v0 }
  0xa4   :  { %2199 = vmatmul.mubr.msk.bf16.gmra.mxu1 %vm560_vm1, %v1284_v41 }
  0xa5   :  { %2202 = vmatprep.mubr.msk.bf16.mxu1 %vm2694_vm0, %v2693_v0 }
  0xac   :  { %2203 = vmatmul.mubr.msk.bf16.gmra.mxu1 %vm560_vm1, %v1285_v36 }
  0xad   :  { %2206 = vmatprep.mubr.msk.bf16.mxu1 %vm2694_vm0, %v2693_v0 }
  0xb4   :  { %2207 = vmatmul.mubr.msk.bf16.gmra.mxu1 %vm560_vm1, %v1286_v29 }
  0xb5   :  { %2210 = vmatprep.mubr.msk.bf16.mxu1 %vm2694_vm0, %v2693_v0 }
  0xbc   :  { %2211 = vmatmul.mubr.msk.bf16.gmra.mxu1 %vm560_vm1, %v1287_v16 }
  0xbd   :  { %2214 = vmatprep.mubr.msk.bf16.mxu1 %vm2694_vm0, %v2693_v0 }
  0xc4   :  { %2215 = vmatmul.mubr.msk.bf16.gmra.mxu1 %vm560_vm1, %v1288_v45 }
  0xc5   :  { %2218 = vmatprep.mubr.msk.bf16.mxu1 %vm2694_vm0, %v2693_v0 }
  0xcc   :  { %2219 = vmatmul.mubr.msk.bf16.gmra.mxu1 %vm560_vm1, %v1289_v46 }
  0xcd   :  { %2222 = vmatprep.mubr.msk.bf16.mxu1 %vm2694_vm0, %v2693_v0 }
  0xd4   :  { %2223 = vmatmul.mubr.msk.bf16.gmra.mxu1 %vm560_vm1, %v1290_v37 }
  0xd5   :  { %2226 = vmatprep.mubr.msk.bf16.mxu1 %vm2694_vm0, %v2693_v0 }
  0xdc   :  { %2227 = vmatmul.mubr.msk.bf16.gmra.mxu1 %vm560_vm1, %v1291_v49 }
  0xdd   :  { %2230 = vmatprep.mubr.msk.bf16.mxu1 %vm2694_vm0, %v2693_v0 }
  0xe4   :  { %2231 = vmatmul.mubr.msk.bf16.gmra.mxu1 %vm560_vm1, %v1292_v4 }
  0xe5   :  { %2234 = vmatprep.mubr.msk.bf16.mxu1 %vm2694_vm0, %v2693_v0 }
  0xf2   :  { %v652_v39 = vpop.f32.mrf.mxu0 }
  0xf3   :  { %v3302_v40 = vadd.f32 %v3299_v34, %v652_v39 }
  0xf4   :  { %v2112_v23 = vpop.f32.mrf.mxu0 }
  0xf5   :  { %v803_v38 = vmul.f32 %v3302_v40, %v3302_v40 }
  0xf6   :  { %v655_v2 = vpop.f32.mrf.mxu0 }
  0xf7   :  { %v841_v32 = vmul.f32 %v803_v38, %v3302_v40  ;;  %v3313_v50 = vadd.f32 %v3299_v34, %v655_v2 }
  0xf8   :  { %v2113_v52 = vpop.f32.mrf.mxu0 }
  0xf9   :  { %v879_v53 = vmul.f32 0.044715, %v841_v32  ;;  %v804_v3 = vmul.f32 %v3313_v50, %v3313_v50 }
  0xfa   :  { %v660_v17 = vpop.f32.mrf.mxu0 }
  0xfb   :  { %v917_v55 = vadd.f32 %v879_v53, %v3302_v40  ;;  %v842_v56 = vmul.f32 %v804_v3, %v3313_v50  ;;  %v3320_v54 = vadd.f32 %v3299_v34, %v660_v17  ;;  %v2676_v17 = vld [vmem:[%s4163_s0 + $0xb0] sm:$0xff] }
  0xfc   :  { %v2116_v47 = vpop.f32.mrf.mxu0 }
  0xfd   :  { %v1962_v7 = vmul.f32 -1.5957692, %v917_v55  ;;  %v880_v61 = vmul.f32 0.044715, %v842_v56  ;;  %v805_v22 = vmul.f32 %v3320_v54, %v3320_v54  ;;  %v2677_v55 = vld [vmem:[%s4163_s0 + $0xb8] sm:$0xff] }
  0xfe   :  { %v663_v57 = vpop.f32.mrf.mxu0  ;;  %v1293_v56 = vpack.c.bf16 %v2677_v55, %v2676_v17  ;;  %v2681_v17 = vld [vmem:[%s4163_s0 + $0xd8] sm:$0xff] }
  0xff   :  { %v1031_v42 = vmul.f32 1.442695, %v1962_v7  ;;  %v918_v15 = vadd.f32 %v880_v61, %v3313_v50  ;;  %v843_v63 = vmul.f32 %v805_v22, %v3320_v54  ;;  %v3336_v1 = vadd.f32 %v3299_v34, %v663_v57  ;;  %v732_v9 = vpop.f32.mrf.mxu1 }
 0x100   :  { %v2117_v13 = vpop.f32.mrf.mxu0  ;;  %v3339_v48 = vadd.f32 %v3299_v34, %v732_v9  ;;  %2235 = vmatmul.mubr.msk.bf16.gmra.mxu1 %vm560_vm1, %v1293_v56 }
 0x101   :  { %2510 = vpow2.f32 %v1031_v42  ;;  %v1963_v51 = vmul.f32 -1.5957692, %v918_v15  ;;  %v881_v62 = vmul.f32 0.044715, %v843_v63  ;;  %v806_v5 = vmul.f32 %v3336_v1, %v3336_v1  ;;  %v2152_v18 = vpop.f32.mrf.mxu1  ;;  %2238 = vmatprep.mubr.msk.bf16.mxu1 %vm2694_vm0, %v2693_v0 }
 0x102   :  { %v668_v14 = vpop.f32.mrf.mxu0  ;;  %v823_v25 = vmul.f32 %v3339_v48, %v3339_v48 }
 0x103   :  { %v1033_v19 = vmul.f32 1.442695, %v1963_v51  ;;  %v919_v12 = vadd.f32 %v881_v62, %v3320_v54  ;;  %v844_v10 = vmul.f32 %v806_v5, %v3336_v1  ;;  %v3348_v27 = vadd.f32 %v3299_v34, %v668_v14  ;;  %v735_v43 = vpop.f32.mrf.mxu1 }
 0x104   :  { %v2120_v8 = vpop.f32.mrf.mxu0  ;;  %v861_v6 = vmul.f32 %v823_v25, %v3339_v48  ;;  %v3352_v31 = vadd.f32 %v3299_v34, %v735_v43  ;;  %v2679_v43 = vld [vmem:[%s4163_s0 + $0xc8] sm:$0xff] }
 0x105   :  { %2512 = vpow2.f32 %v1033_v19  ;;  %v1964_v20 = vmul.f32 -1.5957692, %v919_v12  ;;  %v882_v24 = vmul.f32 0.044715, %v844_v10  ;;  %v807_v58 = vmul.f32 %v3348_v27, %v3348_v27  ;;  %v2153_v35 = vpop.f32.mrf.mxu1  ;;  %v2678_v10 = vld [vmem:[%s4163_s0 + $0xc0] sm:$0xff] }
 0x106   :  { %v671_v21 = vpop.f32.mrf.mxu0  ;;  %v899_v41 = vmul.f32 0.044715, %v861_v6  ;;  %v824_v28 = vmul.f32 %v3352_v31, %v3352_v31  ;;  %v1294_v8 = vpack.c.bf16 %v2679_v43, %v2678_v10 }
 0x107   :  { %v1035_v33 = vmul.f32 1.442695, %v1964_v20  ;;  %v920_v36 = vadd.f32 %v882_v24, %v3336_v1  ;;  %v845_v26 = vmul.f32 %v807_v58, %v3348_v27  ;;  %v3361_v11 = vadd.f32 %v3299_v34, %v671_v21 }
 0x108   :  { %v2121_v29 = vpop.f32.mrf.mxu0  ;;  %v937_v60 = vadd.f32 %v899_v41, %v3339_v48  ;;  %v862_v44 = vmul.f32 %v824_v28, %v3352_v31  ;;  %2239 = vmatmul.mubr.msk.bf16.gmra.mxu1 %vm560_vm1, %v1294_v8 }
 0x109   :  { %2514 = vpow2.f32 %v1035_v33  ;;  %v1965_v16 = vmul.f32 -1.5957692, %v920_v36  ;;  %v883_v45 = vmul.f32 0.044715, %v845_v26  ;;  %v808_v46 = vmul.f32 %v3361_v11, %v3361_v11  ;;  %2242 = vmatprep.mubr.msk.bf16.mxu1 %vm2694_vm0, %v2693_v0 }
 0x10a   :  { %v676_v37 = vpop.f32.mrf.mxu0  ;;  %v1982_v39 = vmul.f32 -1.5957692, %v937_v60  ;;  %v900_v49 = vmul.f32 0.044715, %v862_v44 }
 0x10b   :  { %v1037_v23 = vmul.f32 1.442695, %v1965_v16  ;;  %v921_v38 = vadd.f32 %v883_v45, %v3348_v27  ;;  %v846_v2 = vmul.f32 %v808_v46, %v3361_v11  ;;  %v3370_v32 = vadd.f32 %v3299_v34, %v676_v37 }
 0x10c   :  { %v2124_v52 = vpop.f32.mrf.mxu0  ;;  %v1071_v53 = vmul.f32 1.442695, %v1982_v39  ;;  %v938_v3 = vadd.f32 %v900_v49, %v3352_v31 }
 0x10d   :  { %2516 = vpow2.f32 %v1037_v23  ;;  %v1966_v30 = vmul.f32 -1.5957692, %v921_v38  ;;  %v884_v59 = vmul.f32 0.044715, %v846_v2  ;;  %v809_v4 = vmul.f32 %v3370_v32, %v3370_v32 }
 0x10e   :  { %v2511_v47 = vpop.eup %2510  ;;  %v679_v7 = vpop.f32.mrf.mxu0  ;;  %2518 = vpow2.f32 %v1071_v53  ;;  %v1983_v61 = vmul.f32 -1.5957692, %v938_v3  ;;  %v2680_v3 = vld [vmem:[%s4163_s0 + $0xd0] sm:$0xff] }
 0x10f   :  { %v1107_v22 = vadd.f32 1.0, %v2511_v47  ;;  %v1039_v57 = vmul.f32 1.442695, %v1966_v30  ;;  %v922_v42 = vadd.f32 %v884_v59, %v3361_v11  ;;  %v847_v15 = vmul.f32 %v809_v4, %v3370_v32 }
 0x110   :  { %v3387_v63 = vadd.f32 %v3299_v34, %v679_v7  ;;  %v2125_v9 = vpop.f32.mrf.mxu0  ;;  %v1073_v13 = vmul.f32 1.442695, %v1983_v61  ;;  %v740_v51 = vpop.f32.mrf.mxu1  ;;  %v1295_v55 = vpack.c.bf16 %v2681_v17, %v2680_v3 }
 0x111   :  { %2520 = vrcp.f32 %v1107_v22  ;;  %v1967_v62 = vmul.f32 -1.5957692, %v922_v42  ;;  %v885_v5 = vmul.f32 0.044715, %v847_v15  ;;  %v3390_v18 = vadd.f32 %v3299_v34, %v740_v51 }
 0x112   :  { %v2513_v14 = vpop.eup %2512  ;;  %2522 = vpow2.f32 %v1039_v57  ;;  %v810_v25 = vmul.f32 %v3387_v63, %v3387_v63  ;;  %v684_v19 = vpop.f32.mrf.mxu0  ;;  %2243 = vmatmul.mubr.msk.bf16.gmra.mxu1 %vm560_vm1, %v1295_v55 }
 0x113   :  { %v2156_v12 = vpop.f32.mrf.mxu1  ;;  %v1108_v6 = vadd.f32 1.0, %v2513_v14  ;;  %v1041_v20 = vmul.f32 1.442695, %v1967_v62  ;;  %v923_v24 = vadd.f32 %v885_v5, %v3370_v32  ;;  %v3402_v58 = vadd.f32 %v3299_v34, %v684_v19  ;;  %2246 = vmatprep.mubr.msk.bf16.mxu1 %vm2694_vm0, %v2693_v0 }
 0x114   :  { %v848_v35 = vmul.f32 %v810_v25, %v3387_v63  ;;  %v2128_v21 = vpop.f32.mrf.mxu0  ;;  %2524 = vpow2.f32 %v1073_v13  ;;  %v825_v41 = vmul.f32 %v3390_v18, %v3390_v18 }
 0x115   :  { %v743_v28 = vpop.f32.mrf.mxu1  ;;  %2526 = vrcp.f32 %v1108_v6  ;;  %v1968_v33 = vmul.f32 -1.5957692, %v923_v24  ;;  %v811_v36 = vmul.f32 %v3402_v58, %v3402_v58 }
 0x116   :  { %v3410_v26 = vadd.f32 %v3299_v34, %v743_v28  ;;  %v2515_v29 = vpop.eup %2514  ;;  %2528 = vpow2.f32 %v1041_v20  ;;  %v886_v60 = vmul.f32 0.044715, %v848_v35  ;;  %v687_v44 = vpop.f32.mrf.mxu0  ;;  %v863_v16 = vmul.f32 %v825_v41, %v3390_v18 }
 0x117   :  { %v2157_v45 = vpop.f32.mrf.mxu1  ;;  %v1109_v46 = vadd.f32 1.0, %v2515_v29  ;;  %v1043_v37 = vmul.f32 1.442695, %v1968_v33  ;;  %v849_v39 = vmul.f32 %v811_v36, %v3402_v58  ;;  %v3416_v49 = vadd.f32 %v3299_v34, %v687_v44 }
 0x118   :  { %v924_v23 = vadd.f32 %v886_v60, %v3387_v63  ;;  %v2129_v38 = vpop.f32.mrf.mxu0  ;;  %v901_v2 = vmul.f32 0.044715, %v863_v16  ;;  %v826_v52 = vmul.f32 %v3410_v26, %v3410_v26 }
 0x119   :  { %v748_v53 = vpop.f32.mrf.mxu1  ;;  %2530 = vrcp.f32 %v1109_v46  ;;  %v887_v56 = vmul.f32 0.044715, %v849_v39  ;;  %v812_v30 = vmul.f32 %v3416_v49, %v3416_v49 }
 0x11a   :  { %v3432_v59 = vadd.f32 %v3299_v34, %v748_v53  ;;  %v2517_v4 = vpop.eup %2516  ;;  %2532 = vpow2.f32 %v1043_v37  ;;  %v1969_v47 = vmul.f32 -1.5957692, %v924_v23  ;;  %v692_v7 = vpop.f32.mrf.mxu0  ;;  %v939_v61 = vadd.f32 %v901_v2, %v3390_v18 }
 0x11b   :  { %v864_v22 = vmul.f32 %v826_v52, %v3410_v26  ;;  %v2160_v57 = vpop.f32.mrf.mxu1  ;;  %v2519_v42 = vpop.eup %2518  ;;  %v1110_v15 = vadd.f32 1.0, %v2517_v4  ;;  %v925_v9 = vadd.f32 %v887_v56, %v3402_v58  ;;  %v850_v13 = vmul.f32 %v812_v30, %v3416_v49 }
 0x11c   :  { %v3439_v51 = vadd.f32 %v3299_v34, %v692_v7  ;;  %v1045_v62 = vmul.f32 1.442695, %v1969_v47  ;;  %v1127_v5 = vadd.f32 1.0, %v2519_v42  ;;  %v2132_v14 = vpop.f32.mrf.mxu0  ;;  %v1984_v25 = vmul.f32 -1.5957692, %v939_v61 }
 0x11d   :  { %v827_v19 = vmul.f32 %v3432_v59, %v3432_v59  ;;  %v3443_v12 = vpop.f32.mrf.mxu1  ;;  %2534 = vrcp.f32 %v1110_v15  ;;  %v1970_v10 = vmul.f32 -1.5957692, %v925_v9  ;;  %v888_v43 = vmul.f32 0.044715, %v850_v13 }
 0x11e   :  { %v813_v8 = vmul.f32 %v3439_v51, %v3439_v51  ;;  %v2521_v6 = vpop.eup %2520  ;;  %2536 = vpow2.f32 %v1045_v62  ;;  %v1075_v20 = vmul.f32 1.442695, %v1984_v25  ;;  %v695_v24 = vpop.f32.mrf.mxu0  ;;  %v902_v35 = vmul.f32 0.044715, %v864_v22 }
 0x11f   :  { %v865_v21 = vmul.f32 %v827_v19, %v3432_v59  ;;  %v2161_v41 = vpop.f32.mrf.mxu1  ;;  %v2523_v28 = vpop.eup %2522  ;;  %v1221_v33 = vmul.f32 %v2521_v6, %v3302_v40  ;;  %v1047_v36 = vmul.f32 1.442695, %v1970_v10  ;;  %2538 = vrcp.f32 %v1127_v5 }
 0x120   :  { %v926_v29 = vadd.f32 %v888_v43, %v3416_v49  ;;  %v1111_v60 = vadd.f32 1.0, %v2523_v28  ;;  %v851_v44 = vmul.f32 %v813_v8, %v3439_v51  ;;  %2540 = vpow2.f32 %v1075_v20  ;;  %v2133_v45 = vpop.f32.mrf.mxu0 }
 0x121   :  { %v3455_v16 = vadd.f32 %v3299_v34, %v695_v24  ;;  %v756_v46 = vpop.f32.mrf.mxu1  ;;  %v2525_v37 = vpop.eup %2524  ;;  %2542 = vpow2.f32 %v1047_v36  ;;  %v940_v40 = vadd.f32 %v902_v35, %v3410_v26  ;;  %v903_v23 = vmul.f32 0.044715, %v865_v21 }
 0x122   :  { %v1971_v39 = vmul.f32 -1.5957692, %v926_v29  ;;  %v2527_v38 = vpop.eup %2526  ;;  %2544 = vrcp.f32 %v1111_v60  ;;  %v1128_v2 = vadd.f32 1.0, %v2525_v37  ;;  %v889_v52 = vmul.f32 0.044715, %v851_v44  ;;  %v700_v3 = vpop.f32.mrf.mxu0 }
 0x123   :  { %v814_v53 = vmul.f32 %v3455_v16, %v3455_v16  ;;  %v2164_v17 = vpop.f32.mrf.mxu1  ;;  %v2529_v55 = vpop.eup %2528  ;;  %v1222_v56 = vmul.f32 %v2527_v38, %v3313_v50  ;;  %v1985_v4 = vmul.f32 -1.5957692, %v940_v40  ;;  %v3462_v47 = vadd.f32 %v3299_v34, %v700_v3 }
 0x124   :  { %v1049_v30 = vmul.f32 1.442695, %v1971_v39  ;;  %v1112_v7 = vadd.f32 1.0, %v2529_v55  ;;  %v927_v61 = vadd.f32 %v889_v52, %v3439_v51  ;;  %v2136_v57 = vpop.f32.mrf.mxu0  ;;  %v941_v14 = vadd.f32 %v903_v23, %v3432_v59 }
 0x125   :  { %v852_v22 = vmul.f32 %v814_v53, %v3455_v16  ;;  %v759_v42 = vpop.f32.mrf.mxu1  ;;  %v1259_v15 = vpack.c.bf16 %v1222_v56, %v1221_v33  ;;  %v1077_v9 = vmul.f32 1.442695, %v1985_v4  ;;  %v815_v13 = vmul.f32 %v3462_v47, %v3462_v47 }
 0x126   :  { %2546 = vpow2.f32 %v1049_v30  ;;  %v2531_v62 = vpop.eup %2530  ;;  %v1972_v50 = vmul.f32 -1.5957692, %v927_v61  ;;  %v703_v25 = vpop.f32.mrf.mxu0  ;;  %v1986_v35 = vmul.f32 -1.5957692, %v941_v14  ;;  %v3481_v33 = vadd.f32 %v3299_v34, %v3443_v12 }
 0x127   :  { %2548 = vrcp.f32 %v1128_v2  ;;  %v890_v5 = vmul.f32 0.044715, %v852_v22  ;;  %v2165_v19 = vpop.f32.mrf.mxu1  ;;  %v2533_v10 = vpop.eup %2532  ;;  %v853_v43 = vmul.f32 %v815_v13, %v3462_v47  ;;  %v3471_v8 = vadd.f32 %v3299_v34, %v703_v25  ;;  %2271 = vmatmul.mubr.msk.bf16.vlgmr.msra.gmra.mxu0 %vm560_vm1, %v1259_v15 }
 0x128   :  { %2550 = vpow2.f32 %v1077_v9  ;;  %v1113_v6 = vadd.f32 1.0, %v2533_v10  ;;  %v1051_v20 = vmul.f32 1.442695, %v1972_v50  ;;  %v2137_v21 = vpop.f32.mrf.mxu0  ;;  %2274 = vmatprep.mubr.msk.bf16.mxu0 %vm2694_vm0, %v2693_v0  ;;  %v1079_v60 = vmul.f32 1.442695, %v1986_v35 }
 0x129   :  { %v928_v24 = vadd.f32 %v890_v5, %v3455_v16  ;;  %2552 = vrcp.f32 %v1112_v7  ;;  %v891_v41 = vmul.f32 0.044715, %v853_v43  ;;  %v816_v28 = vmul.f32 %v3471_v8, %v3471_v8 }
 0x12a   :  { %v2535_v36 = vpop.eup %2534  ;;  %2554 = vrcp.f32 %v1113_v6  ;;  %v708_v44 = vpop.f32.mrf.mxu0  ;;  %v3484_v45 = vadd.f32 %v3299_v34, %v756_v46  ;;  %v3489_v40 = vmul.f32 %v2531_v62, %v3320_v54  ;;  %v828_v53 = vmul.f32 %v3481_v33, %v3481_v33 }
 0x12b   :  { %v1973_v29 = vmul.f32 -1.5957692, %v928_v24  ;;  %v3486_v37 = vpop.f32.mrf.mxu1  ;;  %v2537_v39 = vpop.eup %2536  ;;  %2556 = vpow2.f32 %v1051_v20  ;;  %v929_v23 = vadd.f32 %v891_v41, %v3462_v47  ;;  %v854_v12 = vmul.f32 %v816_v28, %v3471_v8 }
 0x12c   :  { %v2539_v38 = vpop.eup %2538  ;;  %v1114_v2 = vadd.f32 1.0, %v2537_v39  ;;  %2558 = vpow2.f32 %v1079_v60  ;;  %v2140_v46 = vpop.f32.mrf.mxu0  ;;  %v3496_v54 = vadd.f32 %v3299_v34, %v708_v44  ;;  %v3499_v30 = vadd.f32 %v3299_v34, %v759_v42 }
 0x12d   :  { %v1053_v52 = vmul.f32 1.442695, %v1973_v29  ;;  %v2168_v3 = vpop.f32.mrf.mxu1  ;;  %v2541_v17 = vpop.eup %2540  ;;  %v1974_v55 = vmul.f32 -1.5957692, %v929_v23  ;;  %v892_v56 = vmul.f32 0.044715, %v854_v12  ;;  %v866_v61 = vmul.f32 %v828_v53, %v3481_v33 }
 0x12e   :  { %v2543_v4 = vpop.eup %2542  ;;  %2560 = vrcp.f32 %v1114_v2  ;;  %v1129_v7 = vadd.f32 1.0, %v2541_v17  ;;  %v829_v22 = vmul.f32 %v3484_v45, %v3484_v45  ;;  %v711_v57 = vpop.f32.mrf.mxu0  ;;  %v1224_v13 = vmul.f32 %v2535_v36, %v3336_v1 }
 0x12f   :  { %v3504_v15 = vpop.f32.mrf.mxu1  ;;  %v2545_v9 = vpop.eup %2544  ;;  %2562 = vpow2.f32 %v1053_v52  ;;  %v1055_v62 = vmul.f32 1.442695, %v1974_v55  ;;  %v930_v50 = vadd.f32 %v892_v56, %v3471_v8  ;;  %v1115_v42 = vadd.f32 1.0, %v2543_v4 }
 0x130   :  { %v3509_v5 = vmul.f32 %v2539_v38, %v3339_v48  ;;  %v904_v14 = vmul.f32 0.044715, %v866_v61  ;;  %v817_v25 = vmul.f32 %v3496_v54, %v3496_v54  ;;  %v2141_v19 = vpop.f32.mrf.mxu0  ;;  %2564 = vrcp.f32 %v1129_v7 }
 0x131   :  { %v2169_v10 = vpop.f32.mrf.mxu1  ;;  %v1975_v43 = vmul.f32 -1.5957692, %v930_v50  ;;  %v867_v6 = vmul.f32 %v829_v22, %v3484_v45  ;;  %v3515_v1 = vadd.f32 %v3299_v34, %v711_v57  ;;  %v3518_v24 = vmul.f32 %v2545_v9, %v3348_v27 }
 0x132   :  { %2566 = vpow2.f32 %v1055_v62  ;;  %v942_v48 = vadd.f32 %v904_v14, %v3481_v33  ;;  %v855_v35 = vmul.f32 %v817_v25, %v3496_v54  ;;  %v716_v21 = vpop.f32.mrf.mxu0  ;;  %v1260_v12 = vpack.c.bf16 %v1224_v13, %v3489_v40 }
 0x133   :  { %v2547_v20 = vpop.eup %2546  ;;  %v1057_v36 = vmul.f32 1.442695, %v1975_v43  ;;  %v905_v29 = vmul.f32 0.044715, %v867_v6  ;;  %v818_v60 = vmul.f32 %v3515_v1, %v3515_v1  ;;  %v3524_v44 = vpop.f32.mrf.mxu1  ;;  %2568 = vrcp.f32 %v1115_v42 }
 0x134   :  { %v2549_v41 = vpop.eup %2548  ;;  %v1116_v28 = vadd.f32 1.0, %v2547_v20  ;;  %v1987_v23 = vmul.f32 -1.5957692, %v942_v48  ;;  %v893_v27 = vmul.f32 0.044715, %v855_v35  ;;  %v2144_v38 = vpop.f32.mrf.mxu0  ;;  %2275 = vmatmul.mubr.msk.bf16.gmra.mxu0 %vm560_vm1, %v1260_v12  ;;  %v830_v56 = vmul.f32 %v3499_v30, %v3499_v30 }
 0x135   :  { %v2551_v39 = vpop.eup %2550  ;;  %v943_v52 = vadd.f32 %v905_v29, %v3484_v45  ;;  %v856_v53 = vmul.f32 %v818_v60, %v3515_v1  ;;  %v2172_v46 = vpop.f32.mrf.mxu1  ;;  %v3534_v22 = vadd.f32 %v3299_v34, %v716_v21  ;;  %2278 = vmatprep.mubr.msk.bf16.mxu0 %vm2694_vm0, %v2693_v0  ;;  %v3541_v13 = vmul.f32 %v2549_v41, %v3352_v31 }
 0x136   :  { %2570 = vrcp.f32 %v1116_v28  ;;  %v1130_v2 = vadd.f32 1.0, %v2551_v39  ;;  %v2553_v3 = vpop.eup %2552  ;;  %v1081_v17 = vmul.f32 1.442695, %v1987_v23  ;;  %v931_v55 = vadd.f32 %v893_v27, %v3496_v54  ;;  %v719_v4 = vpop.f32.mrf.mxu0 }
 0x137   :  { %2572 = vpow2.f32 %v1057_v36  ;;  %v2555_v40 = vpop.eup %2554  ;;  %v1988_v7 = vmul.f32 -1.5957692, %v943_v52  ;;  %v894_v61 = vmul.f32 0.044715, %v856_v53  ;;  %v3538_v57 = vpop.f32.mrf.mxu1  ;;  %v868_v50 = vmul.f32 %v830_v56, %v3499_v30 }
 0x138   :  { %2574 = vrcp.f32 %v1130_v2  ;;  %v2557_v9 = vpop.eup %2556  ;;  %v1976_v62 = vmul.f32 -1.5957692, %v931_v55  ;;  %v2145_v42 = vpop.f32.mrf.mxu0  ;;  %v819_v43 = vmul.f32 %v3534_v22, %v3534_v22  ;;  %v3549_v31 = vadd.f32 %v3299_v34, %v3486_v37 }
 0x139   :  { %2576 = vpow2.f32 %v1081_v17  ;;  %v2559_v14 = vpop.eup %2558  ;;  %v1117_v25 = vadd.f32 1.0, %v2557_v9  ;;  %v1083_v19 = vmul.f32 1.442695, %v1988_v7  ;;  %v932_v10 = vadd.f32 %v894_v61, %v3515_v1  ;;  %v2173_v6 = vpop.f32.mrf.mxu1 }
 0x13a   :  { %v1131_v20 = vadd.f32 1.0, %v2559_v14  ;;  %v1059_v48 = vmul.f32 1.442695, %v1976_v62  ;;  %v906_v35 = vmul.f32 0.044715, %v868_v50  ;;  %v724_v21 = vpop.f32.mrf.mxu0  ;;  %v857_v36 = vmul.f32 %v819_v43, %v3534_v22 }
 0x13b   :  { %v2561_v41 = vpop.eup %2560  ;;  %2578 = vrcp.f32 %v1117_v25  ;;  %v1977_v28 = vmul.f32 -1.5957692, %v932_v10  ;;  %v3553_v29 = vadd.f32 %v3299_v34, %v719_v4  ;;  %v1226_v39 = vmul.f32 %v2553_v3, %v3361_v11 }
 0x13c   :  { %v2563_v60 = vpop.eup %2562  ;;  %2580 = vrcp.f32 %v1131_v20  ;;  %v944_v23 = vadd.f32 %v906_v35, %v3499_v30  ;;  %v831_v27 = vmul.f32 %v3549_v31, %v3549_v31  ;;  %v2148_v37 = vpop.f32.mrf.mxu0  ;;  %v895_v52 = vmul.f32 0.044715, %v857_v36 }
 0x13d   :  { %v3559_v12 = vpop.f32.mrf.mxu1  ;;  %v1118_v38 = vadd.f32 1.0, %v2563_v60  ;;  %2582 = vpow2.f32 %v1059_v48  ;;  %v1061_v2 = vmul.f32 1.442695, %v1977_v28  ;;  %v2565_v53 = vpop.eup %2564  ;;  %v3562_v46 = vmul.f32 %v2555_v40, %v3370_v32 }
 0x13e   :  { %2584 = vpow2.f32 %v1083_v19  ;;  %v1989_v17 = vmul.f32 -1.5957692, %v944_v23  ;;  %v869_v11 = vmul.f32 %v831_v27, %v3549_v31  ;;  %v727_v3 = vpop.f32.mrf.mxu0  ;;  %v3566_v4 = vmul.f32 %v2561_v41, %v3387_v63 }
 0x13f   :  { %v2176_v55 = vpop.f32.mrf.mxu1  ;;  %v2567_v56 = vpop.eup %2566  ;;  %2586 = vrcp.f32 %v1118_v38  ;;  %v933_v7 = vadd.f32 %v895_v52, %v3534_v22  ;;  %v820_v61 = vmul.f32 %v3553_v29, %v3553_v29  ;;  %v1261_v63 = vpack.c.bf16 %v1226_v39, %v3518_v24 }
 0x140   :  { %v1119_v9 = vadd.f32 1.0, %v2567_v56  ;;  %2588 = vpow2.f32 %v1061_v2  ;;  %v1085_v32 = vmul.f32 1.442695, %v1989_v17  ;;  %v907_v40 = vmul.f32 0.044715, %v869_v11  ;;  %v2149_v62 = vpop.f32.mrf.mxu0  ;;  %v2569_v42 = vpop.eup %2568 }
 0x141   :  { %v3571_v50 = vpop.f32.mrf.mxu1  ;;  %v1978_v14 = vmul.f32 -1.5957692, %v933_v7  ;;  %v858_v25 = vmul.f32 %v820_v61, %v3553_v29  ;;  %v3577_v19 = vadd.f32 %v3299_v34, %v3504_v15  ;;  %v3581_v6 = vadd.f32 %v3299_v34, %v724_v21  ;;  %2279 = vmatmul.mubr.msk.bf16.gmra.mxu0 %vm560_vm1, %v1261_v63 }
 0x142   :  { %2590 = vrcp.f32 %v1119_v9  ;;  %v945_v43 = vadd.f32 %v907_v40, %v3549_v31  ;;  %v3585_v20 = vadd.f32 %v3299_v34, %v3524_v44  ;;  %v3588_v41 = vmul.f32 %v2565_v53, %v3390_v18  ;;  %2282 = vmatprep.mubr.msk.bf16.mxu0 %vm2694_vm0, %v2693_v0 }
 0x143   :  { %v2571_v10 = vpop.eup %2570  ;;  %v2177_v48 = vpop.f32.mrf.mxu1  ;;  %2592 = vpow2.f32 %v1085_v32  ;;  %v1063_v24 = vmul.f32 1.442695, %v1978_v14  ;;  %v896_v15 = vmul.f32 0.044715, %v858_v25  ;;  %v832_v21 = vmul.f32 %v3577_v19, %v3577_v19 }
 0x144   :  { %v2573_v35 = vpop.eup %2572  ;;  %v1990_v60 = vmul.f32 -1.5957692, %v945_v43  ;;  %v821_v44 = vmul.f32 %v3581_v6, %v3581_v6  ;;  %v3600_v23 = vmul.f32 %v2569_v42, %v3402_v58  ;;  %v833_v37 = vmul.f32 %v3585_v20, %v3585_v20 }
 0x145   :  { %v2575_v28 = vpop.eup %2574  ;;  %v1120_v36 = vadd.f32 1.0, %v2573_v35  ;;  %v3597_v39 = vpop.f32.mrf.mxu1  ;;  %2594 = vpow2.f32 %v1063_v24  ;;  %v934_v27 = vadd.f32 %v896_v15, %v3553_v29  ;;  %v870_v52 = vmul.f32 %v832_v21, %v3577_v19 }
 0x146   :  { %v2577_v18 = vpop.eup %2576  ;;  %v1087_v2 = vmul.f32 1.442695, %v1990_v60  ;;  %v859_v11 = vmul.f32 %v821_v44, %v3581_v6  ;;  %v871_v55 = vmul.f32 %v833_v37, %v3585_v20  ;;  %v3609_v58 = vadd.f32 %v3299_v34, %v727_v3 }
 0x147   :  { %2596 = vrcp.f32 %v1120_v36  ;;  %v1132_v38 = vadd.f32 1.0, %v2577_v18  ;;  %v2180_v53 = vpop.f32.mrf.mxu1  ;;  %v1979_v17 = vmul.f32 -1.5957692, %v934_v27  ;;  %v3612_v7 = vmul.f32 %v2571_v10, %v3416_v49 }
 0x148   :  { %v2579_v56 = vpop.eup %2578  ;;  %v908_v61 = vmul.f32 0.044715, %v870_v52  ;;  %v1262_v9 = vpack.c.bf16 %v3566_v4, %v3562_v46  ;;  %v3618_v32 = vadd.f32 %v3299_v34, %v3538_v57  ;;  %v3623_v42 = vmul.f32 %v2575_v28, %v3410_v26 }
 0x149   :  { %v3620_v40 = vpop.f32.mrf.mxu1  ;;  %v2581_v62 = vpop.eup %2580  ;;  %2598 = vpow2.f32 %v1087_v2  ;;  %v1065_v3 = vmul.f32 1.442695, %v1979_v17  ;;  %v897_v14 = vmul.f32 0.044715, %v859_v11  ;;  %v909_v63 = vmul.f32 0.044715, %v871_v55 }
 0x14a   :  { %v2583_v25 = vpop.eup %2582  ;;  %2600 = vrcp.f32 %v1132_v38  ;;  %v946_v49 = vadd.f32 %v908_v61, %v3577_v19  ;;  %v822_v46 = vmul.f32 %v3609_v58, %v3609_v58  ;;  %2283 = vmatmul.mubr.msk.bf16.gmra.mxu0 %vm560_vm1, %v1262_v9  ;;  %v834_v26 = vmul.f32 %v3618_v32, %v3618_v32 }
 0x14b   :  { %v2181_v4 = vpop.f32.mrf.mxu1  ;;  %v2585_v57 = vpop.eup %2584  ;;  %v1121_v10 = vadd.f32 1.0, %v2583_v25  ;;  %2602 = vpow2.f32 %v1065_v3  ;;  %v935_v43 = vadd.f32 %v897_v14, %v3581_v6  ;;  %v947_v15 = vadd.f32 %v909_v63, %v3585_v20  ;;  %2286 = vmatprep.mubr.msk.bf16.mxu0 %vm2694_vm0, %v2693_v0 }
 0x14c   :  { %v2587_v48 = vpop.eup %2586  ;;  %v1133_v35 = vadd.f32 1.0, %v2585_v57  ;;  %v1991_v24 = vmul.f32 -1.5957692, %v946_v49  ;;  %v860_v28 = vmul.f32 %v822_v46, %v3609_v58  ;;  %v3637_v21 = vmul.f32 %v2579_v56, %v3439_v51 }
 0x14d   :  { %v796_v36 = vpop.f32.mrf.mxu1  ;;  %v2589_v60 = vpop.eup %2588  ;;  %2604 = vrcp.f32 %v1121_v10  ;;  %v1980_v44 = vmul.f32 -1.5957692, %v935_v43  ;;  %v872_v18 = vmul.f32 %v834_v26, %v3618_v32  ;;  %v1992_v38 = vmul.f32 -1.5957692, %v947_v15 }
 0x14e   :  { %2606 = vrcp.f32 %v1133_v35  ;;  %v1122_v27 = vadd.f32 1.0, %v2589_v60  ;;  %v1089_v37 = vmul.f32 1.442695, %v1991_v24  ;;  %v898_v17 = vmul.f32 0.044715, %v860_v28 }
 0x14f   :  { %v2184_v2 = vpop.f32.mrf.mxu1  ;;  %v2591_v52 = vpop.eup %2590  ;;  %v1067_v53 = vmul.f32 1.442695, %v1980_v44  ;;  %v910_v11 = vmul.f32 0.044715, %v872_v18  ;;  %v3642_v55 = vadd.f32 %v3299_v34, %v3559_v12  ;;  %v1232_v51 = vmul.f32 %v2587_v48, %v3455_v16 }
 0x150   :  { %v2593_v61 = vpop.eup %2592  ;;  %2608 = vrcp.f32 %v1122_v27  ;;  %v1091_v56 = vmul.f32 1.442695, %v1992_v38  ;;  %v1263_v9 = vpack.c.bf16 %v3612_v7, %v3600_v23  ;;  %v936_v25 = vadd.f32 %v898_v17, %v3609_v58 }
 0x151   :  { %v3647_v3 = vpop.f32.mrf.mxu1  ;;  %v1134_v14 = vadd.f32 1.0, %v2593_v61  ;;  %2610 = vpow2.f32 %v1089_v37  ;;  %v948_v49 = vadd.f32 %v910_v11, %v3618_v32  ;;  %v835_v12 = vmul.f32 %v3642_v55, %v3642_v55 }
 0x152   :  { %v2595_v63 = vpop.eup %2594  ;;  %2612 = vpow2.f32 %v1067_v53  ;;  %v3655_v16 = vadd.f32 %v3299_v34, %v3571_v50  ;;  %v3659_v23 = vadd.f32 %v3299_v34, %v3597_v39  ;;  %v3662_v4 = vmul.f32 %v2581_v62, %v3432_v59  ;;  %2287 = vmatmul.mubr.msk.bf16.gmra.mxu0 %vm560_vm1, %v1263_v9 }
 0x153   :  { %v2185_v7 = vpop.f32.mrf.mxu1  ;;  %2614 = vrcp.f32 %v1134_v14  ;;  %v1981_v57 = vmul.f32 -1.5957692, %v936_v25  ;;  %v1993_v10 = vmul.f32 -1.5957692, %v948_v49  ;;  %v3666_v43 = vmul.f32 %v2591_v52, %v3462_v47  ;;  %2290 = vmatprep.mubr.msk.bf16.mxu0 %vm2694_vm0, %v2693_v0 }
 0x154   :  { %v2597_v46 = vpop.eup %2596  ;;  %2616 = vpow2.f32 %v1091_v56  ;;  %v873_v50 = vmul.f32 %v835_v12, %v3642_v55  ;;  %v836_v39 = vmul.f32 %v3655_v16, %v3655_v16  ;;  %v1123_v26 = vadd.f32 1.0, %v2595_v63  ;;  %v2682_v7 = vld [vmem:[%s4166_s2] ss:$0 sm:$0xff] }
 0x155   :  { %v1069_v59 = vmul.f32 1.442695, %v1981_v57  ;;  %v1093_v62 = vmul.f32 1.442695, %v1993_v10  ;;  %v837_v48 = vmul.f32 %v3659_v23, %v3659_v23  ;;  %v3676_v24 = vmul.f32 %v2597_v46, %v3471_v8 }
 0x156   :  { %v2599_v35 = vpop.eup %2598  ;;  %v911_v47 = vmul.f32 0.044715, %v873_v50  ;;  %v874_v15 = vmul.f32 %v836_v39, %v3655_v16  ;;  %v1264_v28 = vpack.c.bf16 %v1232_v51, %v3637_v21  ;;  %v3683_v27 = vadd.f32 %v3299_v34, %v3620_v40 }
 0x157   :  { %v2601_v60 = vpop.eup %2600  ;;  %v1135_v44 = vadd.f32 1.0, %v2599_v35  ;;  %2618 = vpow2.f32 %v1069_v59  ;;  %v875_v18 = vmul.f32 %v837_v48, %v3659_v23  ;;  %v3687_v2 = vadd.f32 %v3299_v34, %v796_v36 }
 0x158   :  { %v2603_v37 = vpop.eup %2602  ;;  %2620 = vpow2.f32 %v1093_v62  ;;  %v949_v38 = vadd.f32 %v911_v47, %v3642_v55  ;;  %v912_v8 = vmul.f32 0.044715, %v874_v15  ;;  %v838_v53 = vmul.f32 %v3683_v27, %v3683_v27 }
 0x159   :  { %2622 = vrcp.f32 %v1123_v26  ;;  %v1124_v52 = vadd.f32 1.0, %v2603_v37  ;;  %v913_v21 = vmul.f32 0.044715, %v875_v18  ;;  %v839_v61 = vmul.f32 %v3687_v2, %v3687_v2 }
 0x15a   :  { %v2605_v17 = vpop.eup %2604  ;;  %2624 = vrcp.f32 %v1135_v44  ;;  %v1994_v11 = vmul.f32 -1.5957692, %v949_v38  ;;  %v950_v40 = vadd.f32 %v912_v8, %v3655_v16  ;;  %v3695_v56 = vmul.f32 %v2601_v60, %v3481_v33  ;;  %2291 = vmatmul.mubr.msk.bf16.gmra.mxu0 %vm560_vm1, %v1264_v28 }
 0x15b   :  { %v2607_v51 = vpop.eup %2606  ;;  %2626 = vrcp.f32 %v1124_v52  ;;  %v951_v34 = vadd.f32 %v913_v21, %v3659_v23  ;;  %v876_v36 = vmul.f32 %v838_v53, %v3683_v27  ;;  %v877_v25 = vmul.f32 %v839_v61, %v3687_v2  ;;  %2294 = vmatprep.mubr.msk.bf16.mxu0 %vm2694_vm0, %v2693_v0  ;;  %v3729_v21 = vpop.f32.mrf.mxu1 }
 0x15c   :  { %v1095_v9 = vmul.f32 1.442695, %v1994_v11  ;;  %v1995_v14 = vmul.f32 -1.5957692, %v950_v40  ;;  %v1265_v49 = vpack.c.bf16 %v3676_v24, %v3666_v43  ;;  %v3709_v46 = vadd.f32 %v2682_v7, %v3647_v3 }
 0x15d   :  { %v2609_v63 = vpop.eup %2608  ;;  %v1996_v33 = vmul.f32 -1.5957692, %v951_v34  ;;  %v914_v12 = vmul.f32 0.044715, %v876_v36  ;;  %v1269_v57 = vpack.c.bf16 %v3541_v13, %v3509_v5  ;;  %v1235_v50 = vmul.f32 %v2605_v17, %v3496_v54  ;;  %v2684_v34 = vld [vmem:[%s4163_s0 + $0xe8] sm:$0xff] }
 0x15e   :  { %v2611_v10 = vpop.eup %2610  ;;  %2628 = vpow2.f32 %v1095_v9  ;;  %v1097_v39 = vmul.f32 1.442695, %v1995_v14  ;;  %v915_v26 = vmul.f32 0.044715, %v877_v25  ;;  %v840_v35 = vmul.f32 %v3709_v46, %v3709_v46  ;;  %v2192_v9 = vpop.f32.mrf.mxu1 }
 0x15f   :  { %v2613_v43 = vpop.eup %2612  ;;  %v1136_v59 = vadd.f32 1.0, %v2611_v10  ;;  %v1099_v62 = vmul.f32 1.442695, %v1996_v33  ;;  %v952_v48 = vadd.f32 %v914_v12, %v3683_v27  ;;  %v3718_v3 = vmul.f32 %v2607_v51, %v3484_v45  ;;  %v2683_v51 = vld [vmem:[%s4163_s0 + $0xe0] sm:$0xff] }
 0x160   :  { %v2615_v24 = vpop.eup %2614  ;;  %v1125_v47 = vadd.f32 1.0, %v2613_v43  ;;  %2630 = vpow2.f32 %v1097_v39  ;;  %v953_v15 = vadd.f32 %v915_v26, %v3687_v2  ;;  %v878_v44 = vmul.f32 %v840_v35, %v3709_v46  ;;  %v3745_v12 = vpop.f32.mrf.mxu1 }
 0x161   :  { %v2617_v54 = vpop.eup %2616  ;;  %v3722_v28 = vmul.f32 %v2615_v24, %v3499_v30  ;;  %2632 = vrcp.f32 %v1136_v59  ;;  %v1997_v60 = vmul.f32 -1.5957692, %v952_v48  ;;  %v1270_v38 = vpack.c.bf16 %v3623_v42, %v3588_v41  ;;  %v2686_v59 = vld [vmem:[%s4163_s0 + $0xf8] sm:$0xff] }
 0x162   :  { %2634 = vrcp.f32 %v1125_v47  ;;  %v1137_v18 = vadd.f32 1.0, %v2617_v54  ;;  %v1998_v37 = vmul.f32 -1.5957692, %v953_v15  ;;  %v1236_v45 = vmul.f32 %v2609_v63, %v3515_v1  ;;  %2295 = vmatmul.mubr.msk.bf16.gmra.mxu0 %vm560_vm1, %v1265_v49  ;;  %v2193_v39 = vpop.f32.mrf.mxu1 }
 0x163   :  { %2636 = vpow2.f32 %v1099_v62  ;;  %v1101_v8 = vmul.f32 1.442695, %v1997_v60  ;;  %v916_v52 = vmul.f32 0.044715, %v878_v44  ;;  %2298 = vmatprep.mubr.msk.bf16.mxu0 %vm2694_vm0, %v2693_v0  ;;  %v1271_v17 = vpack.c.bf16 %v3695_v56, %v3662_v4 }
 0x164   :  { %v2619_v30 = vpop.eup %2618  ;;  %2638 = vrcp.f32 %v1137_v18  ;;  %v1103_v53 = vmul.f32 1.442695, %v1998_v37  ;;  %v1272_v11 = vpack.c.bf16 %v3722_v28, %v3718_v3  ;;  %v1296_v36 = vpack.c.bf16 %v2684_v34, %v2683_v51  ;;  %v3759_v35 = vpop.f32.mrf.mxu1 }
 0x165   :  { %v2621_v1 = vpop.eup %2620  ;;  %v1126_v40 = vadd.f32 1.0, %v2619_v30  ;;  %2640 = vpow2.f32 %v1101_v8  ;;  %v954_v61 = vadd.f32 %v916_v52, %v3709_v46  ;;  %v1266_v33 = vpack.c.bf16 %v1236_v45, %v1235_v50  ;;  %v2685_v50 = vld [vmem:[%s4163_s0 + $0xf0] sm:$0xff] }
 0x166   :  { %v2623_v14 = vpop.eup %2622  ;;  %v1138_v25 = vadd.f32 1.0, %v2621_v1  ;;  %2642 = vpow2.f32 %v1103_v53  ;;  %2247 = vmatmul.mubr.msk.bf16.gmra.mxu1 %vm560_vm1, %v1296_v36  ;;  %v1297_v62 = vpack.c.bf16 %v2686_v59, %v2685_v50  ;;  %v2196_v60 = vpop.f32.mrf.mxu1 }
 0x167   :  { %v2625_v49 = vpop.eup %2624  ;;  %2644 = vrcp.f32 %v1126_v40  ;;  %v1999_v63 = vmul.f32 -1.5957692, %v954_v61  ;;  %2250 = vmatprep.mubr.msk.bf16.mxu1 %vm2694_vm0, %v2693_v0  ;;  %v2687_v40 = vld [vmem:[%s4163_s0 + $0x100] sm:$0xff]  ;;  %v2688_v61 = vld [vmem:[%s4163_s0 + $0x108] sm:$0xff] }
 0x168   :  { %v2627_v7 = vpop.eup %2626  ;;  %2646 = vrcp.f32 %v1138_v25  ;;  %v3763_v47 = vmul.f32 %v2625_v49, %v3549_v31  ;;  %v1298_v51 = vpack.c.bf16 %v2688_v61, %v2687_v40 }
 0x169   :  { %v1105_v10 = vmul.f32 1.442695, %v1999_v63  ;;  %v1238_v43 = vmul.f32 %v2627_v7, %v3553_v29  ;;  %v1237_v29 = vmul.f32 %v2623_v14, %v3534_v22  ;;  %v3771_v22 = vpop.f32.mrf.mxu1 }
 0x16a   :  { %2299 = vmatmul.mubr.msk.bf16.gmra.mxu0 %vm560_vm1, %v1266_v33 }
 0x16b   :  { %v2629_v26 = vpop.eup %2628  ;;  %2648 = vpow2.f32 %v1105_v10  ;;  %2302 = vmatprep.mubr.msk.bf16.mxu0 %vm2694_vm0, %v2693_v0  ;;  %v1267_v37 = vpack.c.bf16 %v1238_v43, %v1237_v29  ;;  %v2197_v53 = vpop.f32.mrf.mxu1 }
 0x16c   :  { %v1139_v48 = vadd.f32 1.0, %v2629_v26 }
 0x16d   :  { %v2631_v24 = vpop.eup %2630  ;;  %v3804_v26 = vpop.f32.mrf.mxu1 }
 0x16e   :  { %v2633_v15 = vpop.eup %2632  ;;  %2650 = vrcp.f32 %v1139_v48  ;;  %v1140_v54 = vadd.f32 1.0, %v2631_v24  ;;  %2251 = vmatmul.mubr.msk.bf16.gmra.mxu1 %vm560_vm1, %v1297_v62 }
 0x16f   :  { %v2635_v44 = vpop.eup %2634  ;;  %v3766_v18 = vmul.f32 %v2633_v15, %v3577_v19  ;;  %2254 = vmatprep.mubr.msk.bf16.mxu1 %vm2694_vm0, %v2693_v0  ;;  %v2200_v59 = vpop.f32.mrf.mxu1 }
 0x170   :  { %v2637_v45 = vpop.eup %2636  ;;  %2652 = vrcp.f32 %v1140_v54  ;;  %v1239_v25 = vmul.f32 %v2635_v44, %v3581_v6  ;;  %v2689_v6 = vld [vmem:[%s4163_s0 + $0x110] sm:$0xff]  ;;  %v2692_v44 = vld [vmem:[%s4163_s0 + $0x128] sm:$0xf] }
 0x171   :  { %v2639_v31 = vpop.eup %2638  ;;  %v1141_v8 = vadd.f32 1.0, %v2637_v45  ;;  %v1273_v52 = vpack.c.bf16 %v3766_v18, %v3763_v47  ;;  %v3811_v48 = vpop.f32.mrf.mxu1 }
 0x172   :  { %v2641_v30 = vpop.eup %2640  ;;  %2303 = vmatmul.mubr.msk.bf16.gmra.mxu0 %vm560_vm1, %v1267_v37  ;;  %v3783_v36 = vmul.f32 %v2639_v31, %v3585_v20 }
 0x173   :  { %v2643_v1 = vpop.eup %2642  ;;  %2654 = vrcp.f32 %v1141_v8  ;;  %v1142_v19 = vadd.f32 1.0, %v2641_v30  ;;  %2306 = vmatprep.mubr.msk.bf16.mxu0 %vm2694_vm0, %v2693_v0  ;;  %v2201_v54 = vpop.f32.mrf.mxu1 }
 0x174   :  { %v2645_v34 = vpop.eup %2644  ;;  %v1143_v9 = vadd.f32 1.0, %v2643_v1 }
 0x175   :  { %v2647_v14 = vpop.eup %2646  ;;  %v1240_v49 = vmul.f32 %v2645_v34, %v3609_v58  ;;  %2656 = vrcp.f32 %v1142_v19  ;;  %v2690_v58 = vld [vmem:[%s4163_s0 + $0x118] sm:$0xff]  ;;  %v3831_v13 = vpop.f32.mrf.mxu1 }
 0x176   :  { %v3790_v63 = vmul.f32 %v2647_v14, %v3618_v32  ;;  %2658 = vrcp.f32 %v1143_v9  ;;  %2255 = vmatmul.mubr.msk.bf16.gmra.mxu1 %vm560_vm1, %v1298_v51  ;;  %v1299_v32 = vpack.c.bf16 %v2690_v58, %v2689_v6 }
 0x177   :  { %v1268_v33 = vpack.c.bf16 %v1240_v49, %v1239_v25  ;;  %2258 = vmatprep.mubr.msk.bf16.mxu1 %vm2694_vm0, %v2693_v0  ;;  %v2204_v31 = vpop.f32.mrf.mxu1 }
 0x178   :  { %v2649_v7 = vpop.eup %2648  ;;  %v1274_v20 = vpack.c.bf16 %v3790_v63, %v3783_v36 }
 0x179   :  { %v1144_v10 = vadd.f32 1.0, %v2649_v7  ;;  %v3840_v30 = vpop.f32.mrf.mxu1 }
 0x17a   :  { %2307 = vmatmul.mubr.msk.bf16.gmra.mxu0 %vm560_vm1, %v1268_v33 }
 0x17b   :  { %v2651_v39 = vpop.eup %2650  ;;  %2660 = vrcp.f32 %v1144_v10  ;;  %2310 = vmatprep.mubr.msk.bf16.mxu0 %vm2694_vm0, %v2693_v0 }
 0x17c   :  { %v1253_v43 = vmul.f32 %v2651_v39, %v3642_v55 }
 0x17d   :  { %v2653_v50 = vpop.eup %2652 }
 0x17e   :  { %v1254_v62 = vmul.f32 %v2653_v50, %v3655_v16  ;;  %2259 = vmatmul.mubr.msk.bf16.gmra.mxu1 %vm560_vm1, %v1299_v32  ;;  %v2691_v16 = vld [vmem:[%s4163_s0 + $0x120] sm:$0xff] }
 0x17f   :  { %2262 = vmatprep.mubr.msk.bf16.mxu1 %vm2694_vm0, %v2693_v0  ;;  %v1300_v37 = vpack.c.bf16 %v2692_v44, %v2691_v16 }
 0x180   :  { %v2655_v24 = vpop.eup %2654  ;;  %v1275_v29 = vpack.c.bf16 %v1254_v62, %v1253_v43 }
 0x181   :  { %v1255_v15 = vmul.f32 %v2655_v24, %v3659_v23 }
 0x182   :  { %v2657_v55 = vpop.eup %2656  ;;  %2311 = vmatmul.mubr.msk.bf16.gmra.mxu0 %vm560_vm1, %v1269_v57 }
 0x183   :  { %v1256_v60 = vmul.f32 %v2657_v55, %v3683_v27  ;;  %v2659_v45 = vpop.eup %2658  ;;  %2314 = vmatprep.mubr.msk.bf16.mxu0 %vm2694_vm0, %v2693_v0 }
 0x184   :  { %v1257_v27 = vmul.f32 %v2659_v45, %v3687_v2  ;;  %v2205_v2 = vpop.f32.mrf.mxu1 }
 0x185   :  { %v1276_v23 = vpack.c.bf16 %v1256_v60, %v1255_v15  ;;  %v3913_v15 = vld [vmem:[%s4167_s4] ss:$0 sm:$0xff] }
 0x186   :  { %2263 = vmatmul.mubr.msk.bf16.gmra.mxu1 %vm560_vm1, %v1300_v37  ;;  %v3842_v53 = vpop.f32.mrf.mxu1 }
 0x188   :  { %v2661_v5 = vpop.eup %2660  ;;  %v2208_v1 = vpop.f32.mrf.mxu1 }
 0x189   :  { %v1258_v57 = vmul.f32 %v2661_v5, %v3709_v46 }
 0x18a   :  { %2315 = vmatmul.mubr.msk.bf16.gmra.mxu0 %vm560_vm1, %v1270_v38  ;;  %v3850_v41 = vpop.f32.mrf.mxu1 }
 0x18b   :  { %v1277_v8 = vpack.c.bf16 %v1258_v57, %v1257_v27  ;;  %2318 = vmatprep.mubr.msk.bf16.mxu0 %vm2694_vm0, %v2693_v0 }
 0x18c   :  { %v2209_v42 = vpop.f32.mrf.mxu1 }
 0x18e   :  { %v3852_v46 = vpop.f32.mrf.mxu1 }
 0x190   :  { %v2212_v38 = vpop.f32.mrf.mxu1 }
 0x192   :  { %2319 = vmatmul.mubr.msk.bf16.gmra.mxu0 %vm560_vm1, %v1271_v17  ;;  %v3860_v4 = vpop.f32.mrf.mxu1 }
 0x193   :  { %2322 = vmatprep.mubr.msk.bf16.mxu0 %vm2694_vm0, %v2693_v0 }
 0x194   :  { %v2213_v56 = vpop.f32.mrf.mxu1 }
 0x196   :  { %v3862_v17 = vpop.f32.mrf.mxu1 }
 0x198   :  { %v2216_v19 = vpop.f32.mrf.mxu1 }
 0x19a   :  { %2323 = vmatmul.mubr.msk.bf16.gmra.mxu0 %vm560_vm1, %v1272_v11  ;;  %v3870_v3 = vpop.f32.mrf.mxu1 }
 0x19b   :  { %2326 = vmatprep.mubr.msk.bf16.mxu0 %vm2694_vm0, %v2693_v0 }
 0x19c   :  { %v2217_v28 = vpop.f32.mrf.mxu1 }
 0x19e   :  { %v3872_v11 = vpop.f32.mrf.mxu1 }
 0x1a0   :  { %v2220_v40 = vpop.f32.mrf.mxu1 }
 0x1a2   :  { %2327 = vmatmul.mubr.msk.bf16.gmra.mxu0 %vm560_vm1, %v1273_v52  ;;  %v3877_v61 = vpop.f32.mrf.mxu1 }
 0x1a3   :  { %2330 = vmatprep.mubr.msk.bf16.mxu0 %vm2694_vm0, %v2693_v0 }
 0x1a4   :  { %v2221_v51 = vpop.f32.mrf.mxu1 }
 0x1a6   :  { %v3879_v47 = vpop.f32.mrf.mxu1 }
 0x1a8   :  { %v2224_v18 = vpop.f32.mrf.mxu1 }
 0x1aa   :  { %2331 = vmatmul.mubr.msk.bf16.gmra.mxu0 %vm560_vm1, %v1274_v20  ;;  %v3884_v52 = vpop.f32.mrf.mxu1 }
 0x1ab   :  { %2334 = vmatprep.mubr.msk.bf16.mxu0 %vm2694_vm0, %v2693_v0 }
 0x1ac   :  { %v2225_v34 = vpop.f32.mrf.mxu1 }
 0x1ae   :  { %v3886_v36 = vpop.f32.mrf.mxu1 }
 0x1b0   :  { %v2228_v9 = vpop.f32.mrf.mxu1 }
 0x1b2   :  { %2335 = vmatmul.mubr.msk.bf16.gmra.mxu0 %vm560_vm1, %v1275_v29  ;;  %v3891_v14 = vpop.f32.mrf.mxu1 }
 0x1b3   :  { %2338 = vmatprep.mubr.msk.bf16.mxu0 %vm2694_vm0, %v2693_v0 }
 0x1b4   :  { %v2229_v25 = vpop.f32.mrf.mxu1 }
 0x1b6   :  { %v3893_v49 = vpop.f32.mrf.mxu1 }
 0x1b8   :  { %v2232_v63 = vpop.f32.mrf.mxu1 }
 0x1ba   :  { %2339 = vmatmul.mubr.msk.bf16.gmra.mxu0 %vm560_vm1, %v1276_v23  ;;  %v3896_v33 = vpop.f32.mrf.mxu1 }
 0x1bb   :  { %2342 = vmatprep.mubr.msk.bf16.mxu0 %vm2694_vm0, %v2693_v0 }
 0x1bc   :  { %v2233_v7 = vpop.f32.mrf.mxu1 }
 0x1c0   :  { %v3898_v20 = vpop.f32.mrf.mxu1 }
 0x1c2   :  { %2343 = vmatmul.mubr.msk.bf16.gmra.mxu0 %vm560_vm1, %v1277_v8  ;;  %v2236_v10 = vpop.f32.mrf.mxu1 }
 0x1c4   :  { %v3900_v39 = vpop.f32.mrf.mxu1 }
 0x1c6   :  { %v2237_v6 = vpop.f32.mrf.mxu1 }
 0x1c8   :  { %v3902_v58 = vpop.f32.mrf.mxu1 }
 0x1ca   :  { %v2240_v0 = vpop.f32.mrf.mxu1 }
 0x1cc   :  { %v3904_v32 = vpop.f32.mrf.mxu1 }
 0x1ce   :  { %v2241_v43 = vpop.f32.mrf.mxu1 }
 0x1d2   :  { %v3906_v50 = vpop.f32.mrf.mxu1 }
 0x1d4   :  { %v2244_v59 = vpop.f32.mrf.mxu1 }
 0x1d6   :  { %v3908_v62 = vpop.f32.mrf.mxu1 }
 0x1d8   :  { %v2245_v24 = vpop.f32.mrf.mxu1 }
 0x1e7   :  { %v1662_v29 = vpop.f32.mrf.mxu0 }
 0x1e8   :  { %v1663_v54 = vadd.f32 %v1662_v29, %v3729_v21 }
 0x1e9   :  { %v2272_v55 = vpop.f32.mrf.mxu0 }
 0x1ea   :  { %v1820_v60 = vadd.f32 %v3913_v15, %v1663_v54 }
 0x1eb   :  { %v1665_v16 = vpop.f32.mrf.mxu0 }
 0x1ec   :  { %1859 = vst.msk [vmem:[%s4168_s6] sm:$0xff] %vm1858_vm2, %v1820_v60  ;;  %v1666_v44 = vadd.f32 %v1665_v16, %v3745_v12 }
 0x1ed   :  { %v2273_v37 = vpop.f32.mrf.mxu0 }
 0x1ee   :  { %v1821_v45 = vadd.f32 %v3913_v15, %v1666_v44 }
 0x1f0   :  { %1860 = vst.msk [vmem:[%s4168_s6 + $0x8] sm:$0xff] %vm1858_vm2, %v1821_v45 }
 0x1f4   :  { %v1670_v21 = vpop.f32.mrf.mxu0 }
 0x1f5   :  { %v1671_v23 = vadd.f32 %v1670_v21, %v3759_v35 }
 0x1f6   :  { %v2276_v27 = vpop.f32.mrf.mxu0 }
 0x1f7   :  { %v1822_v5 = vadd.f32 %v3913_v15, %v1671_v23 }
 0x1f8   :  { %v1673_v57 = vpop.f32.mrf.mxu0 }
 0x1f9   :  { %1861 = vst.msk [vmem:[%s4168_s6 + $0x10] sm:$0xff] %vm1858_vm2, %v1822_v5  ;;  %v1674_v12 = vadd.f32 %v1673_v57, %v3771_v22 }
 0x1fa   :  { %v2277_v31 = vpop.f32.mrf.mxu0 }
 0x1fb   :  { %v1823_v8 = vadd.f32 %v3913_v15, %v1674_v12 }
 0x1fd   :  { %1862 = vst.msk [vmem:[%s4168_s6 + $0x18] sm:$0xff] %vm1858_vm2, %v1823_v8 }
 0x201   :  { %v1678_v35 = vpop.f32.mrf.mxu0 }
 0x202   :  { %v1679_v2 = vadd.f32 %v1678_v35, %v3804_v26 }
 0x203   :  { %v2280_v1 = vpop.f32.mrf.mxu0 }
 0x204   :  { %v1824_v42 = vadd.f32 %v3913_v15, %v1679_v2 }
 0x205   :  { %v1681_v38 = vpop.f32.mrf.mxu0 }
 0x206   :  { %1863 = vst.msk [vmem:[%s4168_s6 + $0x20] sm:$0xff] %vm1858_vm2, %v1824_v42  ;;  %v1682_v22 = vadd.f32 %v1681_v38, %v3811_v48 }
 0x207   :  { %v2281_v56 = vpop.f32.mrf.mxu0 }
 0x208   :  { %v1825_v19 = vadd.f32 %v3913_v15, %v1682_v22 }
 0x20a   :  { %v1686_v28 = vpop.f32.mrf.mxu0  ;;  %1864 = vst.msk [vmem:[%s4168_s6 + $0x28] sm:$0xff] %vm1858_vm2, %v1825_v19 }
 0x20b   :  { %v1687_v26 = vadd.f32 %v1686_v28, %v3831_v13 }
 0x20c   :  { %v2284_v40 = vpop.f32.mrf.mxu0 }
 0x20d   :  { %v1826_v51 = vadd.f32 %v3913_v15, %v1687_v26 }
 0x20e   :  { %v1689_v18 = vpop.f32.mrf.mxu0 }
 0x20f   :  { %1865 = vst.msk [vmem:[%s4168_s6 + $0x30] sm:$0xff] %vm1858_vm2, %v1826_v51  ;;  %v1690_v48 = vadd.f32 %v1689_v18, %v3840_v30 }
 0x210   :  { %v2285_v34 = vpop.f32.mrf.mxu0 }
 0x211   :  { %v1827_v9 = vadd.f32 %v3913_v15, %v1690_v48 }
 0x212   :  { %v1694_v25 = vpop.f32.mrf.mxu0 }
 0x213   :  { %1866 = vst.msk [vmem:[%s4168_s6 + $0x38] sm:$0xff] %vm1858_vm2, %v1827_v9  ;;  %v1695_v13 = vadd.f32 %v1694_v25, %v3842_v53 }
 0x214   :  { %v2288_v63 = vpop.f32.mrf.mxu0 }
 0x215   :  { %v1828_v7 = vadd.f32 %v3913_v15, %v1695_v13 }
 0x216   :  { %v1697_v10 = vpop.f32.mrf.mxu0 }
 0x217   :  { %1867 = vst.msk [vmem:[%s4168_s6 + $0x40] sm:$0xff] %vm1858_vm2, %v1828_v7  ;;  %v1698_v30 = vadd.f32 %v1697_v10, %v3850_v41 }
 0x218   :  { %v2289_v6 = vpop.f32.mrf.mxu0 }
 0x219   :  { %v1829_v0 = vadd.f32 %v3913_v15, %v1698_v30 }
 0x21a   :  { %v1702_v43 = vpop.f32.mrf.mxu0 }
 0x21b   :  { %1868 = vst.msk [vmem:[%s4168_s6 + $0x48] sm:$0xff] %vm1858_vm2, %v1829_v0  ;;  %v1703_v53 = vadd.f32 %v1702_v43, %v3852_v46 }
 0x21c   :  { %v2292_v59 = vpop.f32.mrf.mxu0 }
 0x21d   :  { %v1830_v24 = vadd.f32 %v3913_v15, %v1703_v53 }
 0x21e   :  { %v1705_v29 = vpop.f32.mrf.mxu0 }
 0x21f   :  { %1869 = vst.msk [vmem:[%s4168_s6 + $0x50] sm:$0xff] %vm1858_vm2, %v1830_v24  ;;  %v1706_v41 = vadd.f32 %v1705_v29, %v3860_v4 }
 0x220   :  { %v2293_v54 = vpop.f32.mrf.mxu0 }
 0x221   :  { %v1831_v55 = vadd.f32 %v3913_v15, %v1706_v41 }
 0x222   :  { %v1710_v60 = vpop.f32.mrf.mxu0 }
 0x223   :  { %1870 = vst.msk [vmem:[%s4168_s6 + $0x58] sm:$0xff] %vm1858_vm2, %v1831_v55  ;;  %v1711_v46 = vadd.f32 %v1710_v60, %v3862_v17 }
 0x224   :  { %v2296_v16 = vpop.f32.mrf.mxu0 }
 0x225   :  { %v1832_v44 = vadd.f32 %v3913_v15, %v1711_v46 }
 0x226   :  { %v1713_v37 = vpop.f32.mrf.mxu0  ;;  %v3989_v45 = vpop.f32.mrf.mxu1 }
 0x227   :  { %1871 = vst.msk [vmem:[%s4168_s6 + $0x60] sm:$0xff] %vm1858_vm2, %v1832_v44  ;;  %v1714_v4 = vadd.f32 %v1713_v37, %v3870_v3 }
 0x228   :  { %v2297_v21 = vpop.f32.mrf.mxu0  ;;  %v2248_v23 = vpop.f32.mrf.mxu1 }
 0x229   :  { %v1833_v27 = vadd.f32 %v3913_v15, %v1714_v4 }
 0x22a   :  { %v1718_v5 = vpop.f32.mrf.mxu0  ;;  %v3997_v57 = vpop.f32.mrf.mxu1 }
 0x22b   :  { %1872 = vst.msk [vmem:[%s4168_s6 + $0x68] sm:$0xff] %vm1858_vm2, %v1833_v27  ;;  %v1719_v17 = vadd.f32 %v1718_v5, %v3872_v11 }
 0x22c   :  { %v2300_v12 = vpop.f32.mrf.mxu0  ;;  %v2249_v31 = vpop.f32.mrf.mxu1 }
 0x22d   :  { %v1834_v8 = vadd.f32 %v3913_v15, %v1719_v17 }
 0x22e   :  { %v1721_v35 = vpop.f32.mrf.mxu0  ;;  %v4005_v3 = vpop.f32.mrf.mxu1 }
 0x22f   :  { %1873 = vst.msk [vmem:[%s4168_s6 + $0x70] sm:$0xff] %vm1858_vm2, %v1834_v8  ;;  %v1722_v2 = vadd.f32 %v1721_v35, %v3877_v61 }
 0x230   :  { %v2301_v1 = vpop.f32.mrf.mxu0  ;;  %v2252_v42 = vpop.f32.mrf.mxu1 }
 0x231   :  { %v1835_v38 = vadd.f32 %v3913_v15, %v1722_v2 }
 0x232   :  { %v1726_v22 = vpop.f32.mrf.mxu0  ;;  %v4013_v11 = vpop.f32.mrf.mxu1 }
 0x233   :  { %1874 = vst.msk [vmem:[%s4168_s6 + $0x78] sm:$0xff] %vm1858_vm2, %v1835_v38  ;;  %v1727_v56 = vadd.f32 %v1726_v22, %v3879_v47 }
 0x234   :  { %v2304_v19 = vpop.f32.mrf.mxu0  ;;  %v2253_v28 = vpop.f32.mrf.mxu1 }
 0x235   :  { %v1836_v26 = vadd.f32 %v3913_v15, %v1727_v56 }
 0x236   :  { %v1729_v40 = vpop.f32.mrf.mxu0  ;;  %v4021_v61 = vpop.f32.mrf.mxu1 }
 0x237   :  { %1875 = vst.msk [vmem:[%s4168_s6 + $0x80] sm:$0xff] %vm1858_vm2, %v1836_v26  ;;  %v1730_v51 = vadd.f32 %v1729_v40, %v3884_v52 }
 0x238   :  { %v2305_v18 = vpop.f32.mrf.mxu0  ;;  %v2256_v48 = vpop.f32.mrf.mxu1 }
 0x239   :  { %v1837_v34 = vadd.f32 %v3913_v15, %v1730_v51 }
 0x23a   :  { %v1734_v9 = vpop.f32.mrf.mxu0  ;;  %v4029_v47 = vpop.f32.mrf.mxu1 }
 0x23b   :  { %1876 = vst.msk [vmem:[%s4168_s6 + $0x88] sm:$0xff] %vm1858_vm2, %v1837_v34  ;;  %v1735_v25 = vadd.f32 %v1734_v9, %v3886_v36 }
 0x23c   :  { %v2308_v13 = vpop.f32.mrf.mxu0  ;;  %v2257_v63 = vpop.f32.mrf.mxu1 }
 0x23d   :  { %v1838_v7 = vadd.f32 %v3913_v15, %v1735_v25 }
 0x23e   :  { %v1737_v10 = vpop.f32.mrf.mxu0  ;;  %v4037_v52 = vpop.f32.mrf.mxu1 }
 0x23f   :  { %1877 = vst.msk [vmem:[%s4168_s6 + $0x90] sm:$0xff] %vm1858_vm2, %v1838_v7  ;;  %v1738_v30 = vadd.f32 %v1737_v10, %v3891_v14 }
 0x240   :  { %v2309_v6 = vpop.f32.mrf.mxu0  ;;  %v2260_v0 = vpop.f32.mrf.mxu1 }
 0x241   :  { %v1839_v43 = vadd.f32 %v3913_v15, %v1738_v30 }
 0x242   :  { %v1742_v53 = vpop.f32.mrf.mxu0  ;;  %v4045_v36 = vpop.f32.mrf.mxu1 }
 0x243   :  { %1878 = vst.msk [vmem:[%s4168_s6 + $0x98] sm:$0xff] %vm1858_vm2, %v1839_v43  ;;  %v1743_v59 = vadd.f32 %v1742_v53, %v3893_v49 }
 0x244   :  { %v2312_v24 = vpop.f32.mrf.mxu0  ;;  %v2261_v29 = vpop.f32.mrf.mxu1 }
 0x245   :  { %v1840_v41 = vadd.f32 %v3913_v15, %v1743_v59 }
 0x246   :  { %v1745_v54 = vpop.f32.mrf.mxu0  ;;  %v4053_v14 = vpop.f32.mrf.mxu1 }
 0x247   :  { %1879 = vst.msk [vmem:[%s4168_s6 + $0xa0] sm:$0xff] %vm1858_vm2, %v1840_v41  ;;  %v1746_v55 = vadd.f32 %v1745_v54, %v3896_v33 }
 0x248   :  { %v2313_v60 = vpop.f32.mrf.mxu0  ;;  %v2264_v46 = vpop.f32.mrf.mxu1 }
 0x249   :  { %v1841_v16 = vadd.f32 %v3913_v15, %v1746_v55 }
 0x24a   :  { %v1750_v44 = vpop.f32.mrf.mxu0  ;;  %v4061_v49 = vpop.f32.mrf.mxu1 }
 0x24b   :  { %1880 = vst.msk [vmem:[%s4168_s6 + $0xa8] sm:$0xff] %vm1858_vm2, %v1841_v16  ;;  %v1751_v37 = vadd.f32 %v1750_v44, %v3898_v20 }
 0x24c   :  { %v2316_v4 = vpop.f32.mrf.mxu0  ;;  %v2265_v21 = vpop.f32.mrf.mxu1 }
 0x24d   :  { %v1842_v23 = vadd.f32 %v3913_v15, %v1751_v37 }
 0x24e   :  { %v1753_v27 = vpop.f32.mrf.mxu0 }
 0x24f   :  { %1881 = vst.msk [vmem:[%s4168_s6 + $0xb0] sm:$0xff] %vm1858_vm2, %v1842_v23  ;;  %v1754_v33 = vadd.f32 %v1753_v27, %v3900_v39 }
 0x250   :  { %v2317_v5 = vpop.f32.mrf.mxu0 }
 0x251   :  { %v1843_v17 = vadd.f32 %v3913_v15, %v1754_v33 }
 0x252   :  { %v1758_v12 = vpop.f32.mrf.mxu0 }
 0x253   :  { %1882 = vst.msk [vmem:[%s4168_s6 + $0xb8] sm:$0xff] %vm1858_vm2, %v1843_v17  ;;  %v1759_v20 = vadd.f32 %v1758_v12, %v3902_v58 }
 0x254   :  { %v2320_v31 = vpop.f32.mrf.mxu0 }
 0x255   :  { %v1844_v8 = vadd.f32 %v3913_v15, %v1759_v20 }
 0x256   :  { %v1761_v35 = vpop.f32.mrf.mxu0 }
 0x257   :  { %1883 = vst.msk [vmem:[%s4168_s6 + $0xc0] sm:$0xff] %vm1858_vm2, %v1844_v8  ;;  %v1762_v39 = vadd.f32 %v1761_v35, %v3904_v32 }
 0x258   :  { %v2321_v2 = vpop.f32.mrf.mxu0 }
 0x259   :  { %v1845_v1 = vadd.f32 %v3913_v15, %v1762_v39 }
 0x25a   :  { %v1766_v42 = vpop.f32.mrf.mxu0 }
 0x25b   :  { %1884 = vst.msk [vmem:[%s4168_s6 + $0xc8] sm:$0xff] %vm1858_vm2, %v1845_v1  ;;  %v1767_v58 = vadd.f32 %v1766_v42, %v3906_v50 }
 0x25c   :  { %v2324_v38 = vpop.f32.mrf.mxu0 }
 0x25d   :  { %v1846_v22 = vadd.f32 %v3913_v15, %v1767_v58 }
 0x25e   :  { %v1769_v56 = vpop.f32.mrf.mxu0 }
 0x25f   :  { %1885 = vst.msk [vmem:[%s4168_s6 + $0xd0] sm:$0xff] %vm1858_vm2, %v1846_v22  ;;  %v1770_v32 = vadd.f32 %v1769_v56, %v3908_v62 }
 0x260   :  { %v2325_v19 = vpop.f32.mrf.mxu0 }
 0x261   :  { %v1847_v28 = vadd.f32 %v3913_v15, %v1770_v32 }
 0x262   :  { %v1774_v26 = vpop.f32.mrf.mxu0 }
 0x263   :  { %1886 = vst.msk [vmem:[%s4168_s6 + $0xd8] sm:$0xff] %vm1858_vm2, %v1847_v28  ;;  %v1775_v50 = vadd.f32 %v1774_v26, %v3989_v45 }
 0x264   :  { %v2328_v40 = vpop.f32.mrf.mxu0 }
 0x265   :  { %v1848_v51 = vadd.f32 %v3913_v15, %v1775_v50 }
 0x266   :  { %v1777_v18 = vpop.f32.mrf.mxu0 }
 0x267   :  { %1887 = vst.msk [vmem:[%s4168_s6 + $0xe0] sm:$0xff] %vm1858_vm2, %v1848_v51  ;;  %v1778_v62 = vadd.f32 %v1777_v18, %v3997_v57 }
 0x268   :  { %v2329_v48 = vpop.f32.mrf.mxu0 }
 0x269   :  { %v1849_v34 = vadd.f32 %v3913_v15, %v1778_v62 }
 0x26a   :  { %v1782_v9 = vpop.f32.mrf.mxu0 }
 0x26b   :  { %1888 = vst.msk [vmem:[%s4168_s6 + $0xe8] sm:$0xff] %vm1858_vm2, %v1849_v34  ;;  %v1783_v45 = vadd.f32 %v1782_v9, %v4005_v3 }
 0x26c   :  { %v2332_v25 = vpop.f32.mrf.mxu0 }
 0x26d   :  { %v1850_v13 = vadd.f32 %v3913_v15, %v1783_v45 }
 0x26e   :  { %v1785_v63 = vpop.f32.mrf.mxu0 }
 0x26f   :  { %1889 = vst.msk [vmem:[%s4168_s6 + $0xf0] sm:$0xff] %vm1858_vm2, %v1850_v13  ;;  %v1786_v57 = vadd.f32 %v1785_v63, %v4013_v11 }
 0x270   :  { %v2333_v7 = vpop.f32.mrf.mxu0 }
 0x271   :  { %v1851_v10 = vadd.f32 %v3913_v15, %v1786_v57 }
 0x272   :  { %v1790_v30 = vpop.f32.mrf.mxu0 }
 0x273   :  { %1890 = vst.msk [vmem:[%s4168_s6 + $0xf8] sm:$0xff] %vm1858_vm2, %v1851_v10  ;;  %v1791_v3 = vadd.f32 %v1790_v30, %v4021_v61 }
 0x274   :  { %v2336_v6 = vpop.f32.mrf.mxu0 }
 0x275   :  { %v1852_v0 = vadd.f32 %v3913_v15, %v1791_v3 }
 0x276   :  { %v1793_v43 = vpop.f32.mrf.mxu0 }
 0x277   :  { %1891 = vst.msk [vmem:[%s4168_s6 + $0x100] sm:$0xff] %vm1858_vm2, %v1852_v0  ;;  %v1794_v11 = vadd.f32 %v1793_v43, %v4029_v47 }
 0x278   :  { %v2337_v53 = vpop.f32.mrf.mxu0 }
 0x279   :  { %v1853_v59 = vadd.f32 %v3913_v15, %v1794_v11 }
 0x27a   :  { %v1798_v24 = vpop.f32.mrf.mxu0 }
 0x27b   :  { %1892 = vst.msk [vmem:[%s4168_s6 + $0x108] sm:$0xff] %vm1858_vm2, %v1853_v59  ;;  %v1799_v61 = vadd.f32 %v1798_v24, %v4037_v52 }
 0x27c   :  { %v2340_v29 = vpop.f32.mrf.mxu0 }
 0x27d   :  { %v1854_v41 = vadd.f32 %v3913_v15, %v1799_v61 }
 0x27e   :  { %v1801_v54 = vpop.f32.mrf.mxu0 }
 0x27f   :  { %1893 = vst.msk [vmem:[%s4168_s6 + $0x110] sm:$0xff] %vm1858_vm2, %v1854_v41  ;;  %v1802_v47 = vadd.f32 %v1801_v54, %v4045_v36 }
 0x280   :  { %v2341_v55 = vpop.f32.mrf.mxu0 }
 0x281   :  { %v1855_v60 = vadd.f32 %v3913_v15, %v1802_v47 }
 0x282   :  { %v1806_v46 = vpop.f32.mrf.mxu0 }
 0x283   :  { %1894 = vst.msk [vmem:[%s4168_s6 + $0x118] sm:$0xff] %vm1858_vm2, %v1855_v60  ;;  %v1807_v52 = vadd.f32 %v1806_v46, %v4053_v14 }
 0x284   :  { %v2344_v16 = vpop.f32.mrf.mxu0 }
 0x285   :  { %v1856_v44 = vadd.f32 %v3913_v15, %v1807_v52 }
 0x286   :  { %v1809_v37 = vpop.f32.mrf.mxu0 }
 0x287   :  { %1895 = vst.msk [vmem:[%s4168_s6 + $0x120] sm:$0xff] %vm1858_vm2, %v1856_v44  ;;  %v1810_v36 = vadd.f32 %v1809_v37, %v4061_v49 }
 0x288   :  { %v2345_v4 = vpop.f32.mrf.mxu0 }
 0x289   :  { %v1857_v21 = vadd.f32 %v3913_v15, %v1810_v36 }
 0x28b   :  { %1897 = vst.msk [vmem:[%s4168_s6 + $0x128] sm:$0xf] %vm1896_vm3, %v1857_v21 }

</bundles_post_ra>
